<compile_context>
chip_gen: v7x
topology: tpu7x:2x2x1
jax: 0.10.0
libtpu: 0.0.40
codegen_flags: <defaults>
</compile_context>

<pallas_src>
import numpy as np
import jax
import jax.numpy as jnp
from jax import lax
from jax.experimental import pallas as pl
from jax.experimental.pallas import tpu as pltpu

# ---------------- hyperparameters ----------------
N_FINGERPRINT = 50
DIM = 32
LAYER_GNN = 3
LAYER_CNN = 3        # attention_rnn's `layer` argument is unused in the body
LAYER_OUTPUT = 2
WORD_DIM = 101       # nn.Linear(101, dim)
WORD_PAD = 128       # padded K for the folded word/LSTM input projection

# dot_general dimension numbers for A @ B^T (contract last axes of both)
_TRANS_B = (((1,), (1,)), ((), ()))


# ---------------- fused Pallas kernel ----------------
def _cpi_fused_kernel(
        # compound branch
        x0_ref, adj_ref, wgat_t_ref, bgat_ref,
        # protein branch (word-proj folded into LSTM input projection)
        words_ref, win_ref, bin_ref, whh_ref,
        # cross attention (stacked compound/protein projections)
        watt_t_ref, batt_ref,
        # output head
        wout_t_ref, bout_ref, wint_t_ref, bint_ref,
        # outputs
        inter_ref, weights_ref,
        # scratch
        gx_scr, hs_scr):
    D = DIM
    L = hs_scr.shape[0]

    # ---------------- GAT over the compound graph ----------------
    xs = x0_ref[...]
    adj = adj_ref[...]
    for i in range(LAYER_GNN):                       # static unroll over layers
        # one fused [N,D]@[D,3D] matmul per layer (W1^T | W2^T | W3^T)
        hs_all = jnp.maximum(
            jnp.dot(xs, wgat_t_ref[i], preferred_element_type=jnp.float32)
            + bgat_ref[i], 0.0)                                       # [N, 3D]
        hs1 = hs_all[:, 0:D]
        hs2 = hs_all[:, D:2 * D]
        hs3 = hs_all[:, 2 * D:3 * D]
        scores = lax.dot_general(hs1, hs2, _TRANS_B,
                                 preferred_element_type=jnp.float32)  # [N, N]
        xs = xs + jnp.dot(scores * adj, hs3,
                          preferred_element_type=jnp.float32)

    # ---------------- protein branch ----------------
    # word projection is folded into the LSTM input weights: one lane-full
    # [L,128] @ [128,256] matmul produces fwd|bwd gate pre-activations.
    gx_scr[...] = (jnp.dot(words_ref[...], win_ref[...],
                           preferred_element_type=jnp.float32) + bin_ref[...])

    whh_full = whh_ref[...]          # [2D, 8D] = blockdiag(Whh_f^T, Whh_b^T)

    # fully unrolled bidirectional recurrence (L is a compile-time constant);
    # one fused [1,2D]@[2D,8D] matmul per step covers both directions.
    h = jnp.zeros((1, 2 * D), jnp.float32)           # [h_f | h_b]
    c_f = jnp.zeros((1, D), jnp.float32)
    c_b = jnp.zeros((1, D), jnp.float32)
    for k in range(L):
        kb = L - 1 - k
        # concat is at the 128-lane (vreg) boundary -> no relayout
        g_in = jnp.concatenate(
            [gx_scr[pl.ds(k, 1), 0:4 * D],          # forward gates, time k
             gx_scr[pl.ds(kb, 1), 4 * D:8 * D]],    # backward gates, time L-1-k
            axis=-1)                                                  # [1, 8D]
        gates = g_in + jnp.dot(h, whh_full,
                               preferred_element_type=jnp.float32)
        sg = jax.nn.sigmoid(gates)
        th = jnp.tanh(gates)
        # PyTorch gate order (i, f, g, o) per direction
        i_f = sg[:, 0:D];          f_f = sg[:, D:2 * D]
        g_f = th[:, 2 * D:3 * D];  o_f = sg[:, 3 * D:4 * D]
        i_b = sg[:, 4 * D:5 * D];  f_b = sg[:, 5 * D:6 * D]
        g_b = th[:, 6 * D:7 * D];  o_b = sg[:, 7 * D:8 * D]
        c_f = f_f * c_f + i_f * g_f
        c_b = f_b * c_b + i_b * g_b
        h_f = o_f * jnp.tanh(c_f)
        h_b = o_b * jnp.tanh(c_b)
        hs_scr[pl.ds(k, 1), 0:D] = h_f               # forward row, left lanes
        hs_scr[pl.ds(kb, 1), D:2 * D] = h_b          # backward row, right lanes
        h = jnp.concatenate([h_f, h_b], axis=-1)

    hs_lstm = jnp.maximum(hs_scr[...], 0.0)                           # [L, 2D]

    # ---------------- cross attention ----------------
    watt = watt_t_ref[...]                           # [3D, D] stacked weights
    h_c = jnp.maximum(
        jnp.dot(xs, watt[0:D, :], preferred_element_type=jnp.float32)
        + batt_ref[:, 0:D], 0.0)                                      # [N, D]
    hs_p = jnp.maximum(
        jnp.dot(hs_lstm, watt[D:3 * D, :], preferred_element_type=jnp.float32)
        + batt_ref[:, D:2 * D], 0.0)                                  # [L, D]
    w = lax.dot_general(h_c, hs_p, _TRANS_B,
                        preferred_element_type=jnp.float32)           # [N, L]
    weights_ref[...] = w

    wc = jnp.mean(w, axis=1, keepdims=True)          # mean over L -> [N, 1]
    wp = jnp.mean(w, axis=0, keepdims=True)          # mean over N -> [1, L]
    comp = jnp.mean(wc * h_c, axis=0, keepdims=True)                  # [1, D]
    prot = jnp.dot(wp, hs_p,
                   preferred_element_type=jnp.float32) * (1.0 / L)    # [1, D]

    # ---------------- output head ----------------
    cat = jnp.concatenate([comp, prot], axis=1)                       # [1, 2D]
    for j in range(LAYER_OUTPUT):
        cat = jnp.maximum(
            jnp.dot(cat, wout_t_ref[j], preferred_element_type=jnp.float32)
            + bout_ref[j], 0.0)
    inter_ref[...] = (jnp.dot(cat, wint_t_ref[...],
                              preferred_element_type=jnp.float32)
                      + bint_ref[...])


# ---------------- pallas_call wrapper ----------------
def _vmem():
    return pl.BlockSpec(memory_space=pltpu.MemorySpace.VMEM)


def run_cpi_fused(x0, adjacency, words_padded, kp):
    n = x0.shape[0]
    L = words_padded.shape[0]
    return pl.pallas_call(
        _cpi_fused_kernel,
        out_shape=(jax.ShapeDtypeStruct((1, 2), jnp.float32),
                   jax.ShapeDtypeStruct((n, L), jnp.float32)),
        in_specs=[_vmem()] * 14,
        out_specs=(_vmem(), _vmem()),
        scratch_shapes=[pltpu.VMEM((L, 8 * DIM), jnp.float32),   # gate pre-acts
                        pltpu.VMEM((L, 2 * DIM), jnp.float32)],  # LSTM outputs
    )(x0, adjacency, kp['w_gat_t'], kp['b_gat'],
      words_padded, kp['w_in_full'], kp['b_in_full'], kp['whh_full'],
      kp['w_att_t'], kp['b_att'],
      kp['w_out_t'], kp['b_out'], kp['w_int_t'], kp['b_int'])


def cpi_forward(kp, fingerprints, adjacency, words):
    # Embedding gather + word padding are glue (plain JAX); all hot-path
    # compute runs inside the single fused Pallas kernel.
    fingerprint_vectors = kp['emb'][fingerprints]                      # [N, D]
    words_padded = jnp.pad(words, ((0, 0), (0, WORD_PAD - WORD_DIM)))  # [L,128]
    interaction, weights = run_cpi_fused(
        fingerprint_vectors, adjacency, words_padded, kp)
    return interaction, weights


# ---------------- parameter init (PyTorch layout) ----------------
def init_params(key):
    ks = list(jax.random.split(key, 24))
    nxt = iter(ks).__next__

    def init(shape, scale=0.1):
        return scale * jax.random.normal(nxt(), shape, dtype=jnp.float32)

    p = {
        'emb':    init((N_FINGERPRINT, DIM)),
        'w_gnn1': init((LAYER_GNN, DIM, DIM)), 'b_gnn1': init((LAYER_GNN, 1, DIM)),
        'w_gnn2': init((LAYER_GNN, DIM, DIM)), 'b_gnn2': init((LAYER_GNN, 1, DIM)),
        'w_gnn3': init((LAYER_GNN, DIM, DIM)), 'b_gnn3': init((LAYER_GNN, 1, DIM)),
        'w_word': init((DIM, WORD_DIM)),       'b_word': init((1, DIM)),
        # bidirectional LSTM (PyTorch gate order i,f,g,o); b = b_ih + b_hh
        'wih_f': init((4 * DIM, DIM)), 'whh_f': init((4 * DIM, DIM)),
        'b_f':   init((1, 4 * DIM)),
        'wih_b': init((4 * DIM, DIM)), 'whh_b': init((4 * DIM, DIM)),
        'b_b':   init((1, 4 * DIM)),
        'w_att_c': init((DIM, DIM)),        'b_att_c': init((1, DIM)),
        'w_att_p': init((DIM, 2 * DIM)),    'b_att_p': init((1, DIM)),
        'w_out': init((LAYER_OUTPUT, 2 * DIM, 2 * DIM)),
        'b_out': init((LAYER_OUTPUT, 1, 2 * DIM)),
        'w_int': init((2, 2 * DIM)), 'b_int': init((1, 2)),
    }
    return p


def prepare_kernel_params(p):
    """Host-side weight refactors: transpose, fold, fuse, stack."""
    D = DIM

    # GAT: per-layer fused weight [D, 3D] = W1^T | W2^T | W3^T, bias [1, 3D]
    w_gat_t = jnp.concatenate([jnp.swapaxes(p['w_gnn1'], 1, 2),
                               jnp.swapaxes(p['w_gnn2'], 1, 2),
                               jnp.swapaxes(p['w_gnn3'], 1, 2)], axis=2)
    b_gat = jnp.concatenate([p['b_gnn1'], p['b_gnn2'], p['b_gnn3']], axis=2)

    # Word projection folded into LSTM input projections (pure algebra: the
    # word projection has no nonlinearity and only feeds the LSTM).
    w_word_t_pad = jnp.pad(p['w_word'].T,
                           ((0, WORD_PAD - WORD_DIM), (0, 0)))        # [128, D]
    win_f = w_word_t_pad @ p['wih_f'].T                               # [128, 4D]
    win_b = w_word_t_pad @ p['wih_b'].T                               # [128, 4D]
    w_in_full = jnp.concatenate([win_f, win_b], axis=1)               # [128, 8D]
    b_in_f = p['b_word'] @ p['wih_f'].T + p['b_f']                    # [1, 4D]
    b_in_b = p['b_word'] @ p['wih_b'].T + p['b_b']                    # [1, 4D]
    b_in_full = jnp.concatenate([b_in_f, b_in_b], axis=1)             # [1, 8D]

    # Block-diagonal recurrent weight: one [1,2D]@[2D,8D] matmul per step.
    z = jnp.zeros((D, 4 * D), jnp.float32)
    whh_full = jnp.concatenate(
        [jnp.concatenate([p['whh_f'].T, z], axis=1),
         jnp.concatenate([z, p['whh_b'].T], axis=1)], axis=0)         # [2D, 8D]

    # Stacked attention projections.
    w_att_t = jnp.concatenate([p['w_att_c'].T, p['w_att_p'].T], axis=0)  # [3D,D]
    b_att = jnp.concatenate([p['b_att_c'], p['b_att_p']], axis=1)        # [1,2D]

    return {
        'emb': p['emb'],
        'w_gat_t': w_gat_t, 'b_gat': b_gat,
        'w_in_full': w_in_full, 'b_in_full': b_in_full, 'whh_full': whh_full,
        'w_att_t': w_att_t, 'b_att': b_att,
        'w_out_t': jnp.swapaxes(p['w_out'], 1, 2), 'b_out': p['b_out'],
        'w_int_t': p['w_int'].T, 'b_int': p['b_int'],
    }


# ---------------- plain-JAX reference (for validation) ----------------
def reference_forward(p, fingerprints, adjacency, words):
    xs = p['emb'][fingerprints]
    for i in range(LAYER_GNN):
        hs1 = jax.nn.relu(xs @ p['w_gnn1'][i].T + p['b_gnn1'][i])
        hs2 = jax.nn.relu(xs @ p['w_gnn2'][i].T + p['b_gnn2'][i])
        hs3 = jax.nn.relu(xs @ p['w_gnn3'][i].T + p['b_gnn3'][i])
        xs = xs + ((hs1 @ hs2.T) * adjacency) @ hs3
    x = xs

    xp = words @ p['w_word'].T + p['b_word']
    D = DIM

    def lstm(seq, wih, whh, b):
        def step(carry, xt):
            h, c = carry
            g = xt @ wih.T + h @ whh.T + b[0]
            i_ = jax.nn.sigmoid(g[0:D]); f_ = jax.nn.sigmoid(g[D:2 * D])
            gg = jnp.tanh(g[2 * D:3 * D]); o_ = jax.nn.sigmoid(g[3 * D:4 * D])
            c = f_ * c + i_ * gg
            h = o_ * jnp.tanh(c)
            return (h, c), h
        _, hseq = lax.scan(step, (jnp.zeros(D), jnp.zeros(D)), seq)
        return hseq

    hf = lstm(xp, p['wih_f'], p['whh_f'], p['b_f'])
    hb = lstm(xp[::-1], p['wih_b'], p['whh_b'], p['b_b'])[::-1]
    hs_lstm = jax.nn.relu(jnp.concatenate([hf, hb], axis=-1))

    h = jax.nn.relu(x @ p['w_att_c'].T + p['b_att_c'])
    hs = jax.nn.relu(hs_lstm @ p['w_att_p'].T + p['b_att_p'])
    weights = h @ hs.T
    wc = jnp.mean(weights, axis=1, keepdims=True)
    wp = jnp.mean(weights, axis=0, keepdims=True)
    comp = jnp.mean(wc * h, axis=0, keepdims=True)
    prot = jnp.mean(wp.T * hs, axis=0, keepdims=True)
    cat = jnp.concatenate([comp, prot], axis=1)
    for j in range(LAYER_OUTPUT):
        cat = jax.nn.relu(cat @ p['w_out'][j].T + p['b_out'][j])
    inter = cat @ p['w_int'].T + p['b_int']
    return inter, weights


# ---------------- main ----------------
if __name__ == "__main__":
    key = jax.random.PRNGKey(0)
    k_par, k_fp, k_adj, k_words = jax.random.split(key, 4)

    params = init_params(k_par)
    kparams = prepare_kernel_params(params)

    N_ATOMS = 12
    L_WORDS = 16
    fingerprints = jax.random.randint(k_fp, (N_ATOMS,), 0, N_FINGERPRINT,
                                      dtype=jnp.int32)
    adjacency = jax.random.bernoulli(k_adj, 0.4,
                                     (N_ATOMS, N_ATOMS)).astype(jnp.float32)
    adjacency = jnp.maximum(adjacency, adjacency.T)           # symmetric
    words = jax.random.normal(k_words, (L_WORDS, WORD_DIM), dtype=jnp.float32)

    fwd = jax.jit(cpi_forward)
    interaction, weights = fwd(kparams, fingerprints, adjacency, words)
    jax.block_until_ready((interaction, weights))

    ref_interaction, ref_weights = reference_forward(
        params, fingerprints, adjacency, words)
    np.testing.assert_allclose(np.asarray(interaction),
                               np.asarray(ref_interaction),
                               rtol=1e-3, atol=1e-3)
    np.testing.assert_allclose(np.asarray(weights),
                               np.asarray(ref_weights),
                               rtol=1e-3, atol=1e-3)

    print("KERNEL_OK")
</pallas_src>

<mosaic_0001>
module attributes {stable_mosaic.version = 11 : i64} {
  func.func @_cpi_fused_kernel(%arg0: memref<12x32xf32, #tpu.memory_space<vmem>>, %arg1: memref<12x12xf32, #tpu.memory_space<vmem>>, %arg2: memref<3x32x96xf32, #tpu.memory_space<vmem>>, %arg3: memref<3x1x96xf32, #tpu.memory_space<vmem>>, %arg4: memref<16x128xf32, #tpu.memory_space<vmem>>, %arg5: memref<128x256xf32, #tpu.memory_space<vmem>>, %arg6: memref<1x256xf32, #tpu.memory_space<vmem>>, %arg7: memref<64x256xf32, #tpu.memory_space<vmem>>, %arg8: memref<96x32xf32, #tpu.memory_space<vmem>>, %arg9: memref<1x64xf32, #tpu.memory_space<vmem>>, %arg10: memref<2x64x64xf32, #tpu.memory_space<vmem>>, %arg11: memref<2x1x64xf32, #tpu.memory_space<vmem>>, %arg12: memref<64x2xf32, #tpu.memory_space<vmem>>, %arg13: memref<1x2xf32, #tpu.memory_space<vmem>>, %arg14: memref<1x2xf32, #tpu.memory_space<vmem>>, %arg15: memref<12x16xf32, #tpu.memory_space<vmem>>, %arg16: memref<16x256xf32, #tpu.memory_space<vmem>>, %arg17: memref<16x64xf32, #tpu.memory_space<vmem>>) attributes {dimension_semantics = [], scalar_prefetch = 0 : i64, scratch_operands = 2 : i64, tpu.core_type = #tpu.core_type<tc>} {
    %c0 = arith.constant 0 : index
    %c0_0 = arith.constant 0 : index
    %0 = vector.load %arg0[%c0, %c0_0] : memref<12x32xf32, #tpu.memory_space<vmem>>, vector<12x32xf32>
    %c0_1 = arith.constant 0 : index
    %c0_2 = arith.constant 0 : index
    %1 = vector.load %arg1[%c0_1, %c0_2] : memref<12x12xf32, #tpu.memory_space<vmem>>, vector<12x12xf32>
    %c0_3 = arith.constant 0 : index
    %c0_4 = arith.constant 0 : index
    %c0_5 = arith.constant 0 : index
    %2 = vector.load %arg2[%c0_3, %c0_4, %c0_5] : memref<3x32x96xf32, #tpu.memory_space<vmem>>, vector<1x32x96xf32>
    %3 = vector.shape_cast %2 : vector<1x32x96xf32> to vector<32x96xf32>
    %cst = arith.constant dense<0.000000e+00> : vector<12x96xf32>
    %4 = tpu.matmul %0, %3, %cst {dimension_numbers = #tpu.dot_dimension_numbers<[1], [0], [0], [1], [0, 0, 1, 1], [], []>} : vector<12x32xf32>, vector<32x96xf32>, vector<12x96xf32> -> vector<12x96xf32>
    %c0_6 = arith.constant 0 : index
    %c0_7 = arith.constant 0 : index
    %c0_8 = arith.constant 0 : index
    %5 = vector.load %arg3[%c0_6, %c0_7, %c0_8] : memref<3x1x96xf32, #tpu.memory_space<vmem>>, vector<1x1x96xf32>
    %6 = vector.shape_cast %5 : vector<1x1x96xf32> to vector<1x96xf32>
    %7 = vector.broadcast %6 : vector<1x96xf32> to vector<12x96xf32>
    %8 = arith.addf %4, %7 : vector<12x96xf32>
    %cst_9 = arith.constant 0.000000e+00 : f32
    %9 = vector.broadcast %cst_9 : f32 to vector<12x96xf32>
    %10 = arith.maximumf %8, %9 : vector<12x96xf32>
    %11 = vector.extract_strided_slice %10 {offsets = [0, 0], sizes = [12, 32], strides = [1, 1]} : vector<12x96xf32> to vector<12x32xf32>
    %12 = vector.extract_strided_slice %10 {offsets = [0, 32], sizes = [12, 32], strides = [1, 1]} : vector<12x96xf32> to vector<12x32xf32>
    %13 = vector.extract_strided_slice %10 {offsets = [0, 64], sizes = [12, 32], strides = [1, 1]} : vector<12x96xf32> to vector<12x32xf32>
    %cst_10 = arith.constant dense<0.000000e+00> : vector<12x12xf32>
    %14 = tpu.matmul %11, %12, %cst_10 {dimension_numbers = #tpu.dot_dimension_numbers<[1], [1], [0], [0], [0, 0, 1, 0], [], []>} : vector<12x32xf32>, vector<12x32xf32>, vector<12x12xf32> -> vector<12x12xf32>
    %15 = arith.mulf %14, %1 : vector<12x12xf32>
    %cst_11 = arith.constant dense<0.000000e+00> : vector<12x32xf32>
    %16 = tpu.matmul %15, %13, %cst_11 {dimension_numbers = #tpu.dot_dimension_numbers<[1], [0], [0], [1], [0, 0, 1, 1], [], []>} : vector<12x12xf32>, vector<12x32xf32>, vector<12x32xf32> -> vector<12x32xf32>
    %17 = arith.addf %0, %16 : vector<12x32xf32>
    %c1 = arith.constant 1 : index
    %c0_12 = arith.constant 0 : index
    %c0_13 = arith.constant 0 : index
    %18 = vector.load %arg2[%c1, %c0_12, %c0_13] : memref<3x32x96xf32, #tpu.memory_space<vmem>>, vector<1x32x96xf32>
    %19 = vector.shape_cast %18 : vector<1x32x96xf32> to vector<32x96xf32>
    %cst_14 = arith.constant dense<0.000000e+00> : vector<12x96xf32>
    %20 = tpu.matmul %17, %19, %cst_14 {dimension_numbers = #tpu.dot_dimension_numbers<[1], [0], [0], [1], [0, 0, 1, 1], [], []>} : vector<12x32xf32>, vector<32x96xf32>, vector<12x96xf32> -> vector<12x96xf32>
    %c1_15 = arith.constant 1 : index
    %c0_16 = arith.constant 0 : index
    %c0_17 = arith.constant 0 : index
    %21 = vector.load %arg3[%c1_15, %c0_16, %c0_17] : memref<3x1x96xf32, #tpu.memory_space<vmem>>, vector<1x1x96xf32>
    %22 = vector.shape_cast %21 : vector<1x1x96xf32> to vector<1x96xf32>
    %23 = vector.broadcast %22 : vector<1x96xf32> to vector<12x96xf32>
    %24 = arith.addf %20, %23 : vector<12x96xf32>
    %cst_18 = arith.constant 0.000000e+00 : f32
    %25 = vector.broadcast %cst_18 : f32 to vector<12x96xf32>
    %26 = arith.maximumf %24, %25 : vector<12x96xf32>
    %27 = vector.extract_strided_slice %26 {offsets = [0, 0], sizes = [12, 32], strides = [1, 1]} : vector<12x96xf32> to vector<12x32xf32>
    %28 = vector.extract_strided_slice %26 {offsets = [0, 32], sizes = [12, 32], strides = [1, 1]} : vector<12x96xf32> to vector<12x32xf32>
    %29 = vector.extract_strided_slice %26 {offsets = [0, 64], sizes = [12, 32], strides = [1, 1]} : vector<12x96xf32> to vector<12x32xf32>
    %cst_19 = arith.constant dense<0.000000e+00> : vector<12x12xf32>
    %30 = tpu.matmul %27, %28, %cst_19 {dimension_numbers = #tpu.dot_dimension_numbers<[1], [1], [0], [0], [0, 0, 1, 0], [], []>} : vector<12x32xf32>, vector<12x32xf32>, vector<12x12xf32> -> vector<12x12xf32>
    %31 = arith.mulf %30, %1 : vector<12x12xf32>
    %cst_20 = arith.constant dense<0.000000e+00> : vector<12x32xf32>
    %32 = tpu.matmul %31, %29, %cst_20 {dimension_numbers = #tpu.dot_dimension_numbers<[1], [0], [0], [1], [0, 0, 1, 1], [], []>} : vector<12x12xf32>, vector<12x32xf32>, vector<12x32xf32> -> vector<12x32xf32>
    %33 = arith.addf %17, %32 : vector<12x32xf32>
    %c2 = arith.constant 2 : index
    %c0_21 = arith.constant 0 : index
    %c0_22 = arith.constant 0 : index
    %34 = vector.load %arg2[%c2, %c0_21, %c0_22] : memref<3x32x96xf32, #tpu.memory_space<vmem>>, vector<1x32x96xf32>
    %35 = vector.shape_cast %34 : vector<1x32x96xf32> to vector<32x96xf32>
    %cst_23 = arith.constant dense<0.000000e+00> : vector<12x96xf32>
    %36 = tpu.matmul %33, %35, %cst_23 {dimension_numbers = #tpu.dot_dimension_numbers<[1], [0], [0], [1], [0, 0, 1, 1], [], []>} : vector<12x32xf32>, vector<32x96xf32>, vector<12x96xf32> -> vector<12x96xf32>
    %c2_24 = arith.constant 2 : index
    %c0_25 = arith.constant 0 : index
    %c0_26 = arith.constant 0 : index
    %37 = vector.load %arg3[%c2_24, %c0_25, %c0_26] : memref<3x1x96xf32, #tpu.memory_space<vmem>>, vector<1x1x96xf32>
    %38 = vector.shape_cast %37 : vector<1x1x96xf32> to vector<1x96xf32>
    %39 = vector.broadcast %38 : vector<1x96xf32> to vector<12x96xf32>
    %40 = arith.addf %36, %39 : vector<12x96xf32>
    %cst_27 = arith.constant 0.000000e+00 : f32
    %41 = vector.broadcast %cst_27 : f32 to vector<12x96xf32>
    %42 = arith.maximumf %40, %41 : vector<12x96xf32>
    %43 = vector.extract_strided_slice %42 {offsets = [0, 0], sizes = [12, 32], strides = [1, 1]} : vector<12x96xf32> to vector<12x32xf32>
    %44 = vector.extract_strided_slice %42 {offsets = [0, 32], sizes = [12, 32], strides = [1, 1]} : vector<12x96xf32> to vector<12x32xf32>
    %45 = vector.extract_strided_slice %42 {offsets = [0, 64], sizes = [12, 32], strides = [1, 1]} : vector<12x96xf32> to vector<12x32xf32>
    %cst_28 = arith.constant dense<0.000000e+00> : vector<12x12xf32>
    %46 = tpu.matmul %43, %44, %cst_28 {dimension_numbers = #tpu.dot_dimension_numbers<[1], [1], [0], [0], [0, 0, 1, 0], [], []>} : vector<12x32xf32>, vector<12x32xf32>, vector<12x12xf32> -> vector<12x12xf32>
    %47 = arith.mulf %46, %1 : vector<12x12xf32>
    %cst_29 = arith.constant dense<0.000000e+00> : vector<12x32xf32>
    %48 = tpu.matmul %47, %45, %cst_29 {dimension_numbers = #tpu.dot_dimension_numbers<[1], [0], [0], [1], [0, 0, 1, 1], [], []>} : vector<12x12xf32>, vector<12x32xf32>, vector<12x32xf32> -> vector<12x32xf32>
    %49 = arith.addf %33, %48 : vector<12x32xf32>
    %c0_30 = arith.constant 0 : index
    %c0_31 = arith.constant 0 : index
    %50 = vector.load %arg4[%c0_30, %c0_31] : memref<16x128xf32, #tpu.memory_space<vmem>>, vector<16x128xf32>
    %c0_32 = arith.constant 0 : index
    %c0_33 = arith.constant 0 : index
    %51 = vector.load %arg5[%c0_32, %c0_33] : memref<128x256xf32, #tpu.memory_space<vmem>>, vector<128x256xf32>
    %cst_34 = arith.constant dense<0.000000e+00> : vector<16x256xf32>
    %52 = tpu.matmul %50, %51, %cst_34 {dimension_numbers = #tpu.dot_dimension_numbers<[1], [0], [0], [1], [0, 0, 1, 1], [], []>} : vector<16x128xf32>, vector<128x256xf32>, vector<16x256xf32> -> vector<16x256xf32>
    %c0_35 = arith.constant 0 : index
    %c0_36 = arith.constant 0 : index
    %53 = vector.load %arg6[%c0_35, %c0_36] : memref<1x256xf32, #tpu.memory_space<vmem>>, vector<1x256xf32>
    %54 = vector.broadcast %53 : vector<1x256xf32> to vector<16x256xf32>
    %55 = arith.addf %52, %54 : vector<16x256xf32>
    %c0_37 = arith.constant 0 : index
    %c0_38 = arith.constant 0 : index
    %56 = vector.load %arg16[%c0_37, %c0_38] : memref<16x256xf32, #tpu.memory_space<vmem>>, vector<16x256xf32>
    tpu.vector_store %arg16[%c0_37, %c0_38], %55 {strides = array<i32>} : memref<16x256xf32, #tpu.memory_space<vmem>>, vector<16x256xf32>,
    %c0_39 = arith.constant 0 : index
    %c0_40 = arith.constant 0 : index
    %57 = vector.load %arg7[%c0_39, %c0_40] : memref<64x256xf32, #tpu.memory_space<vmem>>, vector<64x256xf32>
    %cst_41 = arith.constant 0.000000e+00 : f32
    %58 = vector.broadcast %cst_41 : f32 to vector<1x64xf32>
    %cst_42 = arith.constant 0.000000e+00 : f32
    %59 = vector.broadcast %cst_42 : f32 to vector<1x32xf32>
    %cst_43 = arith.constant 0.000000e+00 : f32
    %60 = vector.broadcast %cst_43 : f32 to vector<1x32xf32>
    %c0_44 = arith.constant 0 : index
    %c0_45 = arith.constant 0 : index
    %61 = vector.load %arg16[%c0_44, %c0_45] : memref<16x256xf32, #tpu.memory_space<vmem>>, vector<1x128xf32>
    %c15 = arith.constant 15 : index
    %c128 = arith.constant 128 : index
    %62 = vector.load %arg16[%c15, %c128] : memref<16x256xf32, #tpu.memory_space<vmem>>, vector<1x128xf32>
    %63 = tpu.concatenate %61, %62 in 1 : vector<1x128xf32>, vector<1x128xf32> -> vector<1x256xf32>
    %cst_46 = arith.constant dense<0.000000e+00> : vector<1x256xf32>
    %64 = tpu.matmul %58, %57, %cst_46 {dimension_numbers = #tpu.dot_dimension_numbers<[1], [0], [0], [1], [0, 0, 1, 1], [], []>} : vector<1x64xf32>, vector<64x256xf32>, vector<1x256xf32> -> vector<1x256xf32>
    %65 = arith.addf %63, %64 : vector<1x256xf32>
    %66 = arith.negf %65 : vector<1x256xf32>
    %67 = math.exp %66 : vector<1x256xf32>
    %cst_47 = arith.constant 1.000000e+00 : f32
    %68 = vector.broadcast %cst_47 : f32 to vector<1x256xf32>
    %69 = arith.addf %68, %67 : vector<1x256xf32>
    %70 = arith.divf %68, %69 : vector<1x256xf32>
    %71 = math.tanh %65 : vector<1x256xf32>
    %72 = vector.extract_strided_slice %70 {offsets = [0, 0], sizes = [1, 32], strides = [1, 1]} : vector<1x256xf32> to vector<1x32xf32>
    %73 = vector.extract_strided_slice %70 {offsets = [0, 32], sizes = [1, 32], strides = [1, 1]} : vector<1x256xf32> to vector<1x32xf32>
    %74 = vector.extract_strided_slice %71 {offsets = [0, 64], sizes = [1, 32], strides = [1, 1]} : vector<1x256xf32> to vector<1x32xf32>
    %75 = vector.extract_strided_slice %70 {offsets = [0, 96], sizes = [1, 32], strides = [1, 1]} : vector<1x256xf32> to vector<1x32xf32>
    %76 = vector.extract_strided_slice %70 {offsets = [0, 128], sizes = [1, 32], strides = [1, 1]} : vector<1x256xf32> to vector<1x32xf32>
    %77 = vector.extract_strided_slice %70 {offsets = [0, 160], sizes = [1, 32], strides = [1, 1]} : vector<1x256xf32> to vector<1x32xf32>
    %78 = vector.extract_strided_slice %71 {offsets = [0, 192], sizes = [1, 32], strides = [1, 1]} : vector<1x256xf32> to vector<1x32xf32>
    %79 = vector.extract_strided_slice %70 {offsets = [0, 224], sizes = [1, 32], strides = [1, 1]} : vector<1x256xf32> to vector<1x32xf32>
    %80 = arith.mulf %73, %59 : vector<1x32xf32>
    %81 = arith.mulf %72, %74 : vector<1x32xf32>
    %82 = arith.addf %80, %81 : vector<1x32xf32>
    %83 = arith.mulf %77, %60 : vector<1x32xf32>
    %84 = arith.mulf %76, %78 : vector<1x32xf32>
    %85 = arith.addf %83, %84 : vector<1x32xf32>
    %86 = math.tanh %82 : vector<1x32xf32>
    %87 = arith.mulf %75, %86 : vector<1x32xf32>
    %88 = math.tanh %85 : vector<1x32xf32>
    %89 = arith.mulf %79, %88 : vector<1x32xf32>
    %c0_48 = arith.constant 0 : index
    %c0_49 = arith.constant 0 : index
    %90 = vector.load %arg17[%c0_48, %c0_49] : memref<16x64xf32, #tpu.memory_space<vmem>>, vector<1x32xf32>
    tpu.vector_store %arg17[%c0_48, %c0_49], %87 {strides = array<i32>} : memref<16x64xf32, #tpu.memory_space<vmem>>, vector<1x32xf32>,
    %c15_50 = arith.constant 15 : index
    %c32 = arith.constant 32 : index
    %91 = vector.load %arg17[%c15_50, %c32] : memref<16x64xf32, #tpu.memory_space<vmem>>, vector<1x32xf32>
    tpu.vector_store %arg17[%c15_50, %c32], %89 {strides = array<i32>} : memref<16x64xf32, #tpu.memory_space<vmem>>, vector<1x32xf32>,
    %92 = tpu.concatenate %87, %89 in 1 : vector<1x32xf32>, vector<1x32xf32> -> vector<1x64xf32>
    %c1_51 = arith.constant 1 : index
    %c0_52 = arith.constant 0 : index
    %93 = vector.load %arg16[%c1_51, %c0_52] : memref<16x256xf32, #tpu.memory_space<vmem>>, vector<1x128xf32>
    %c14 = arith.constant 14 : index
    %c128_53 = arith.constant 128 : index
    %94 = vector.load %arg16[%c14, %c128_53] : memref<16x256xf32, #tpu.memory_space<vmem>>, vector<1x128xf32>
    %95 = tpu.concatenate %93, %94 in 1 : vector<1x128xf32>, vector<1x128xf32> -> vector<1x256xf32>
    %cst_54 = arith.constant dense<0.000000e+00> : vector<1x256xf32>
    %96 = tpu.matmul %92, %57, %cst_54 {dimension_numbers = #tpu.dot_dimension_numbers<[1], [0], [0], [1], [0, 0, 1, 1], [], []>} : vector<1x64xf32>, vector<64x256xf32>, vector<1x256xf32> -> vector<1x256xf32>
    %97 = arith.addf %95, %96 : vector<1x256xf32>
    %98 = arith.negf %97 : vector<1x256xf32>
    %99 = math.exp %98 : vector<1x256xf32>
    %cst_55 = arith.constant 1.000000e+00 : f32
    %100 = vector.broadcast %cst_55 : f32 to vector<1x256xf32>
    %101 = arith.addf %100, %99 : vector<1x256xf32>
    %102 = arith.divf %100, %101 : vector<1x256xf32>
    %103 = math.tanh %97 : vector<1x256xf32>
    %104 = vector.extract_strided_slice %102 {offsets = [0, 0], sizes = [1, 32], strides = [1, 1]} : vector<1x256xf32> to vector<1x32xf32>
    %105 = vector.extract_strided_slice %102 {offsets = [0, 32], sizes = [1, 32], strides = [1, 1]} : vector<1x256xf32> to vector<1x32xf32>
    %106 = vector.extract_strided_slice %103 {offsets = [0, 64], sizes = [1, 32], strides = [1, 1]} : vector<1x256xf32> to vector<1x32xf32>
    %107 = vector.extract_strided_slice %102 {offsets = [0, 96], sizes = [1, 32], strides = [1, 1]} : vector<1x256xf32> to vector<1x32xf32>
    %108 = vector.extract_strided_slice %102 {offsets = [0, 128], sizes = [1, 32], strides = [1, 1]} : vector<1x256xf32> to vector<1x32xf32>
    %109 = vector.extract_strided_slice %102 {offsets = [0, 160], sizes = [1, 32], strides = [1, 1]} : vector<1x256xf32> to vector<1x32xf32>
    %110 = vector.extract_strided_slice %103 {offsets = [0, 192], sizes = [1, 32], strides = [1, 1]} : vector<1x256xf32> to vector<1x32xf32>
    %111 = vector.extract_strided_slice %102 {offsets = [0, 224], sizes = [1, 32], strides = [1, 1]} : vector<1x256xf32> to vector<1x32xf32>
    %112 = arith.mulf %105, %82 : vector<1x32xf32>
    %113 = arith.mulf %104, %106 : vector<1x32xf32>
    %114 = arith.addf %112, %113 : vector<1x32xf32>
    %115 = arith.mulf %109, %85 : vector<1x32xf32>
    %116 = arith.mulf %108, %110 : vector<1x32xf32>
    %117 = arith.addf %115, %116 : vector<1x32xf32>
    %118 = math.tanh %114 : vector<1x32xf32>
    %119 = arith.mulf %107, %118 : vector<1x32xf32>
    %120 = math.tanh %117 : vector<1x32xf32>
    %121 = arith.mulf %111, %120 : vector<1x32xf32>
    %c1_56 = arith.constant 1 : index
    %c0_57 = arith.constant 0 : index
    %122 = vector.load %arg17[%c1_56, %c0_57] : memref<16x64xf32, #tpu.memory_space<vmem>>, vector<1x32xf32>
    tpu.vector_store %arg17[%c1_56, %c0_57], %119 {strides = array<i32>} : memref<16x64xf32, #tpu.memory_space<vmem>>, vector<1x32xf32>,
    %c14_58 = arith.constant 14 : index
    %c32_59 = arith.constant 32 : index
    %123 = vector.load %arg17[%c14_58, %c32_59] : memref<16x64xf32, #tpu.memory_space<vmem>>, vector<1x32xf32>
    tpu.vector_store %arg17[%c14_58, %c32_59], %121 {strides = array<i32>} : memref<16x64xf32, #tpu.memory_space<vmem>>, vector<1x32xf32>,
    %124 = tpu.concatenate %119, %121 in 1 : vector<1x32xf32>, vector<1x32xf32> -> vector<1x64xf32>
    %c2_60 = arith.constant 2 : index
    %c0_61 = arith.constant 0 : index
    %125 = vector.load %arg16[%c2_60, %c0_61] : memref<16x256xf32, #tpu.memory_space<vmem>>, vector<1x128xf32>
    %c13 = arith.constant 13 : index
    %c128_62 = arith.constant 128 : index
    %126 = vector.load %arg16[%c13, %c128_62] : memref<16x256xf32, #tpu.memory_space<vmem>>, vector<1x128xf32>
    %127 = tpu.concatenate %125, %126 in 1 : vector<1x128xf32>, vector<1x128xf32> -> vector<1x256xf32>
    %cst_63 = arith.constant dense<0.000000e+00> : vector<1x256xf32>
    %128 = tpu.matmul %124, %57, %cst_63 {dimension_numbers = #tpu.dot_dimension_numbers<[1], [0], [0], [1], [0, 0, 1, 1], [], []>} : vector<1x64xf32>, vector<64x256xf32>, vector<1x256xf32> -> vector<1x256xf32>
    %129 = arith.addf %127, %128 : vector<1x256xf32>
    %130 = arith.negf %129 : vector<1x256xf32>
    %131 = math.exp %130 : vector<1x256xf32>
    %cst_64 = arith.constant 1.000000e+00 : f32
    %132 = vector.broadcast %cst_64 : f32 to vector<1x256xf32>
    %133 = arith.addf %132, %131 : vector<1x256xf32>
    %134 = arith.divf %132, %133 : vector<1x256xf32>
    %135 = math.tanh %129 : vector<1x256xf32>
    %136 = vector.extract_strided_slice %134 {offsets = [0, 0], sizes = [1, 32], strides = [1, 1]} : vector<1x256xf32> to vector<1x32xf32>
    %137 = vector.extract_strided_slice %134 {offsets = [0, 32], sizes = [1, 32], strides = [1, 1]} : vector<1x256xf32> to vector<1x32xf32>
    %138 = vector.extract_strided_slice %135 {offsets = [0, 64], sizes = [1, 32], strides = [1, 1]} : vector<1x256xf32> to vector<1x32xf32>
    %139 = vector.extract_strided_slice %134 {offsets = [0, 96], sizes = [1, 32], strides = [1, 1]} : vector<1x256xf32> to vector<1x32xf32>
    %140 = vector.extract_strided_slice %134 {offsets = [0, 128], sizes = [1, 32], strides = [1, 1]} : vector<1x256xf32> to vector<1x32xf32>
    %141 = vector.extract_strided_slice %134 {offsets = [0, 160], sizes = [1, 32], strides = [1, 1]} : vector<1x256xf32> to vector<1x32xf32>
    %142 = vector.extract_strided_slice %135 {offsets = [0, 192], sizes = [1, 32], strides = [1, 1]} : vector<1x256xf32> to vector<1x32xf32>
    %143 = vector.extract_strided_slice %134 {offsets = [0, 224], sizes = [1, 32], strides = [1, 1]} : vector<1x256xf32> to vector<1x32xf32>
    %144 = arith.mulf %137, %114 : vector<1x32xf32>
    %145 = arith.mulf %136, %138 : vector<1x32xf32>
    %146 = arith.addf %144, %145 : vector<1x32xf32>
    %147 = arith.mulf %141, %117 : vector<1x32xf32>
    %148 = arith.mulf %140, %142 : vector<1x32xf32>
    %149 = arith.addf %147, %148 : vector<1x32xf32>
    %150 = math.tanh %146 : vector<1x32xf32>
    %151 = arith.mulf %139, %150 : vector<1x32xf32>
    %152 = math.tanh %149 : vector<1x32xf32>
    %153 = arith.mulf %143, %152 : vector<1x32xf32>
    %c2_65 = arith.constant 2 : index
    %c0_66 = arith.constant 0 : index
    %154 = vector.load %arg17[%c2_65, %c0_66] : memref<16x64xf32, #tpu.memory_space<vmem>>, vector<1x32xf32>
    tpu.vector_store %arg17[%c2_65, %c0_66], %151 {strides = array<i32>} : memref<16x64xf32, #tpu.memory_space<vmem>>, vector<1x32xf32>,
    %c13_67 = arith.constant 13 : index
    %c32_68 = arith.constant 32 : index
    %155 = vector.load %arg17[%c13_67, %c32_68] : memref<16x64xf32, #tpu.memory_space<vmem>>, vector<1x32xf32>
    tpu.vector_store %arg17[%c13_67, %c32_68], %153 {strides = array<i32>} : memref<16x64xf32, #tpu.memory_space<vmem>>, vector<1x32xf32>,
    %156 = tpu.concatenate %151, %153 in 1 : vector<1x32xf32>, vector<1x32xf32> -> vector<1x64xf32>
    %c3 = arith.constant 3 : index
    %c0_69 = arith.constant 0 : index
    %157 = vector.load %arg16[%c3, %c0_69] : memref<16x256xf32, #tpu.memory_space<vmem>>, vector<1x128xf32>
    %c12 = arith.constant 12 : index
    %c128_70 = arith.constant 128 : index
    %158 = vector.load %arg16[%c12, %c128_70] : memref<16x256xf32, #tpu.memory_space<vmem>>, vector<1x128xf32>
    %159 = tpu.concatenate %157, %158 in 1 : vector<1x128xf32>, vector<1x128xf32> -> vector<1x256xf32>
    %cst_71 = arith.constant dense<0.000000e+00> : vector<1x256xf32>
    %160 = tpu.matmul %156, %57, %cst_71 {dimension_numbers = #tpu.dot_dimension_numbers<[1], [0], [0], [1], [0, 0, 1, 1], [], []>} : vector<1x64xf32>, vector<64x256xf32>, vector<1x256xf32> -> vector<1x256xf32>
    %161 = arith.addf %159, %160 : vector<1x256xf32>
    %162 = arith.negf %161 : vector<1x256xf32>
    %163 = math.exp %162 : vector<1x256xf32>
    %cst_72 = arith.constant 1.000000e+00 : f32
    %164 = vector.broadcast %cst_72 : f32 to vector<1x256xf32>
    %165 = arith.addf %164, %163 : vector<1x256xf32>
    %166 = arith.divf %164, %165 : vector<1x256xf32>
    %167 = math.tanh %161 : vector<1x256xf32>
    %168 = vector.extract_strided_slice %166 {offsets = [0, 0], sizes = [1, 32], strides = [1, 1]} : vector<1x256xf32> to vector<1x32xf32>
    %169 = vector.extract_strided_slice %166 {offsets = [0, 32], sizes = [1, 32], strides = [1, 1]} : vector<1x256xf32> to vector<1x32xf32>
    %170 = vector.extract_strided_slice %167 {offsets = [0, 64], sizes = [1, 32], strides = [1, 1]} : vector<1x256xf32> to vector<1x32xf32>
    %171 = vector.extract_strided_slice %166 {offsets = [0, 96], sizes = [1, 32], strides = [1, 1]} : vector<1x256xf32> to vector<1x32xf32>
    %172 = vector.extract_strided_slice %166 {offsets = [0, 128], sizes = [1, 32], strides = [1, 1]} : vector<1x256xf32> to vector<1x32xf32>
    %173 = vector.extract_strided_slice %166 {offsets = [0, 160], sizes = [1, 32], strides = [1, 1]} : vector<1x256xf32> to vector<1x32xf32>
    %174 = vector.extract_strided_slice %167 {offsets = [0, 192], sizes = [1, 32], strides = [1, 1]} : vector<1x256xf32> to vector<1x32xf32>
    %175 = vector.extract_strided_slice %166 {offsets = [0, 224], sizes = [1, 32], strides = [1, 1]} : vector<1x256xf32> to vector<1x32xf32>
    %176 = arith.mulf %169, %146 : vector<1x32xf32>
    %177 = arith.mulf %168, %170 : vector<1x32xf32>
    %178 = arith.addf %176, %177 : vector<1x32xf32>
    %179 = arith.mulf %173, %149 : vector<1x32xf32>
    %180 = arith.mulf %172, %174 : vector<1x32xf32>
    %181 = arith.addf %179, %180 : vector<1x32xf32>
    %182 = math.tanh %178 : vector<1x32xf32>
    %183 = arith.mulf %171, %182 : vector<1x32xf32>
    %184 = math.tanh %181 : vector<1x32xf32>
    %185 = arith.mulf %175, %184 : vector<1x32xf32>
    %c3_73 = arith.constant 3 : index
    %c0_74 = arith.constant 0 : index
    %186 = vector.load %arg17[%c3_73, %c0_74] : memref<16x64xf32, #tpu.memory_space<vmem>>, vector<1x32xf32>
    tpu.vector_store %arg17[%c3_73, %c0_74], %183 {strides = array<i32>} : memref<16x64xf32, #tpu.memory_space<vmem>>, vector<1x32xf32>,
    %c12_75 = arith.constant 12 : index
    %c32_76 = arith.constant 32 : index
    %187 = vector.load %arg17[%c12_75, %c32_76] : memref<16x64xf32, #tpu.memory_space<vmem>>, vector<1x32xf32>
    tpu.vector_store %arg17[%c12_75, %c32_76], %185 {strides = array<i32>} : memref<16x64xf32, #tpu.memory_space<vmem>>, vector<1x32xf32>,
    %188 = tpu.concatenate %183, %185 in 1 : vector<1x32xf32>, vector<1x32xf32> -> vector<1x64xf32>
    %c4 = arith.constant 4 : index
    %c0_77 = arith.constant 0 : index
    %189 = vector.load %arg16[%c4, %c0_77] : memref<16x256xf32, #tpu.memory_space<vmem>>, vector<1x128xf32>
    %c11 = arith.constant 11 : index
    %c128_78 = arith.constant 128 : index
    %190 = vector.load %arg16[%c11, %c128_78] : memref<16x256xf32, #tpu.memory_space<vmem>>, vector<1x128xf32>
    %191 = tpu.concatenate %189, %190 in 1 : vector<1x128xf32>, vector<1x128xf32> -> vector<1x256xf32>
    %cst_79 = arith.constant dense<0.000000e+00> : vector<1x256xf32>
    %192 = tpu.matmul %188, %57, %cst_79 {dimension_numbers = #tpu.dot_dimension_numbers<[1], [0], [0], [1], [0, 0, 1, 1], [], []>} : vector<1x64xf32>, vector<64x256xf32>, vector<1x256xf32> -> vector<1x256xf32>
    %193 = arith.addf %191, %192 : vector<1x256xf32>
    %194 = arith.negf %193 : vector<1x256xf32>
    %195 = math.exp %194 : vector<1x256xf32>
    %cst_80 = arith.constant 1.000000e+00 : f32
    %196 = vector.broadcast %cst_80 : f32 to vector<1x256xf32>
    %197 = arith.addf %196, %195 : vector<1x256xf32>
    %198 = arith.divf %196, %197 : vector<1x256xf32>
    %199 = math.tanh %193 : vector<1x256xf32>
    %200 = vector.extract_strided_slice %198 {offsets = [0, 0], sizes = [1, 32], strides = [1, 1]} : vector<1x256xf32> to vector<1x32xf32>
    %201 = vector.extract_strided_slice %198 {offsets = [0, 32], sizes = [1, 32], strides = [1, 1]} : vector<1x256xf32> to vector<1x32xf32>
    %202 = vector.extract_strided_slice %199 {offsets = [0, 64], sizes = [1, 32], strides = [1, 1]} : vector<1x256xf32> to vector<1x32xf32>
    %203 = vector.extract_strided_slice %198 {offsets = [0, 96], sizes = [1, 32], strides = [1, 1]} : vector<1x256xf32> to vector<1x32xf32>
    %204 = vector.extract_strided_slice %198 {offsets = [0, 128], sizes = [1, 32], strides = [1, 1]} : vector<1x256xf32> to vector<1x32xf32>
    %205 = vector.extract_strided_slice %198 {offsets = [0, 160], sizes = [1, 32], strides = [1, 1]} : vector<1x256xf32> to vector<1x32xf32>
    %206 = vector.extract_strided_slice %199 {offsets = [0, 192], sizes = [1, 32], strides = [1, 1]} : vector<1x256xf32> to vector<1x32xf32>
    %207 = vector.extract_strided_slice %198 {offsets = [0, 224], sizes = [1, 32], strides = [1, 1]} : vector<1x256xf32> to vector<1x32xf32>
    %208 = arith.mulf %201, %178 : vector<1x32xf32>
    %209 = arith.mulf %200, %202 : vector<1x32xf32>
    %210 = arith.addf %208, %209 : vector<1x32xf32>
    %211 = arith.mulf %205, %181 : vector<1x32xf32>
    %212 = arith.mulf %204, %206 : vector<1x32xf32>
    %213 = arith.addf %211, %212 : vector<1x32xf32>
    %214 = math.tanh %210 : vector<1x32xf32>
    %215 = arith.mulf %203, %214 : vector<1x32xf32>
    %216 = math.tanh %213 : vector<1x32xf32>
    %217 = arith.mulf %207, %216 : vector<1x32xf32>
    %c4_81 = arith.constant 4 : index
    %c0_82 = arith.constant 0 : index
    %218 = vector.load %arg17[%c4_81, %c0_82] : memref<16x64xf32, #tpu.memory_space<vmem>>, vector<1x32xf32>
    tpu.vector_store %arg17[%c4_81, %c0_82], %215 {strides = array<i32>} : memref<16x64xf32, #tpu.memory_space<vmem>>, vector<1x32xf32>,
    %c11_83 = arith.constant 11 : index
    %c32_84 = arith.constant 32 : index
    %219 = vector.load %arg17[%c11_83, %c32_84] : memref<16x64xf32, #tpu.memory_space<vmem>>, vector<1x32xf32>
    tpu.vector_store %arg17[%c11_83, %c32_84], %217 {strides = array<i32>} : memref<16x64xf32, #tpu.memory_space<vmem>>, vector<1x32xf32>,
    %220 = tpu.concatenate %215, %217 in 1 : vector<1x32xf32>, vector<1x32xf32> -> vector<1x64xf32>
    %c5 = arith.constant 5 : index
    %c0_85 = arith.constant 0 : index
    %221 = vector.load %arg16[%c5, %c0_85] : memref<16x256xf32, #tpu.memory_space<vmem>>, vector<1x128xf32>
    %c10 = arith.constant 10 : index
    %c128_86 = arith.constant 128 : index
    %222 = vector.load %arg16[%c10, %c128_86] : memref<16x256xf32, #tpu.memory_space<vmem>>, vector<1x128xf32>
    %223 = tpu.concatenate %221, %222 in 1 : vector<1x128xf32>, vector<1x128xf32> -> vector<1x256xf32>
    %cst_87 = arith.constant dense<0.000000e+00> : vector<1x256xf32>
    %224 = tpu.matmul %220, %57, %cst_87 {dimension_numbers = #tpu.dot_dimension_numbers<[1], [0], [0], [1], [0, 0, 1, 1], [], []>} : vector<1x64xf32>, vector<64x256xf32>, vector<1x256xf32> -> vector<1x256xf32>
    %225 = arith.addf %223, %224 : vector<1x256xf32>
    %226 = arith.negf %225 : vector<1x256xf32>
    %227 = math.exp %226 : vector<1x256xf32>
    %cst_88 = arith.constant 1.000000e+00 : f32
    %228 = vector.broadcast %cst_88 : f32 to vector<1x256xf32>
    %229 = arith.addf %228, %227 : vector<1x256xf32>
    %230 = arith.divf %228, %229 : vector<1x256xf32>
    %231 = math.tanh %225 : vector<1x256xf32>
    %232 = vector.extract_strided_slice %230 {offsets = [0, 0], sizes = [1, 32], strides = [1, 1]} : vector<1x256xf32> to vector<1x32xf32>
    %233 = vector.extract_strided_slice %230 {offsets = [0, 32], sizes = [1, 32], strides = [1, 1]} : vector<1x256xf32> to vector<1x32xf32>
    %234 = vector.extract_strided_slice %231 {offsets = [0, 64], sizes = [1, 32], strides = [1, 1]} : vector<1x256xf32> to vector<1x32xf32>
    %235 = vector.extract_strided_slice %230 {offsets = [0, 96], sizes = [1, 32], strides = [1, 1]} : vector<1x256xf32> to vector<1x32xf32>
    %236 = vector.extract_strided_slice %230 {offsets = [0, 128], sizes = [1, 32], strides = [1, 1]} : vector<1x256xf32> to vector<1x32xf32>
    %237 = vector.extract_strided_slice %230 {offsets = [0, 160], sizes = [1, 32], strides = [1, 1]} : vector<1x256xf32> to vector<1x32xf32>
    %238 = vector.extract_strided_slice %231 {offsets = [0, 192], sizes = [1, 32], strides = [1, 1]} : vector<1x256xf32> to vector<1x32xf32>
    %239 = vector.extract_strided_slice %230 {offsets = [0, 224], sizes = [1, 32], strides = [1, 1]} : vector<1x256xf32> to vector<1x32xf32>
    %240 = arith.mulf %233, %210 : vector<1x32xf32>
    %241 = arith.mulf %232, %234 : vector<1x32xf32>
    %242 = arith.addf %240, %241 : vector<1x32xf32>
    %243 = arith.mulf %237, %213 : vector<1x32xf32>
    %244 = arith.mulf %236, %238 : vector<1x32xf32>
    %245 = arith.addf %243, %244 : vector<1x32xf32>
    %246 = math.tanh %242 : vector<1x32xf32>
    %247 = arith.mulf %235, %246 : vector<1x32xf32>
    %248 = math.tanh %245 : vector<1x32xf32>
    %249 = arith.mulf %239, %248 : vector<1x32xf32>
    %c5_89 = arith.constant 5 : index
    %c0_90 = arith.constant 0 : index
    %250 = vector.load %arg17[%c5_89, %c0_90] : memref<16x64xf32, #tpu.memory_space<vmem>>, vector<1x32xf32>
    tpu.vector_store %arg17[%c5_89, %c0_90], %247 {strides = array<i32>} : memref<16x64xf32, #tpu.memory_space<vmem>>, vector<1x32xf32>,
    %c10_91 = arith.constant 10 : index
    %c32_92 = arith.constant 32 : index
    %251 = vector.load %arg17[%c10_91, %c32_92] : memref<16x64xf32, #tpu.memory_space<vmem>>, vector<1x32xf32>
    tpu.vector_store %arg17[%c10_91, %c32_92], %249 {strides = array<i32>} : memref<16x64xf32, #tpu.memory_space<vmem>>, vector<1x32xf32>,
    %252 = tpu.concatenate %247, %249 in 1 : vector<1x32xf32>, vector<1x32xf32> -> vector<1x64xf32>
    %c6 = arith.constant 6 : index
    %c0_93 = arith.constant 0 : index
    %253 = vector.load %arg16[%c6, %c0_93] : memref<16x256xf32, #tpu.memory_space<vmem>>, vector<1x128xf32>
    %c9 = arith.constant 9 : index
    %c128_94 = arith.constant 128 : index
    %254 = vector.load %arg16[%c9, %c128_94] : memref<16x256xf32, #tpu.memory_space<vmem>>, vector<1x128xf32>
    %255 = tpu.concatenate %253, %254 in 1 : vector<1x128xf32>, vector<1x128xf32> -> vector<1x256xf32>
    %cst_95 = arith.constant dense<0.000000e+00> : vector<1x256xf32>
    %256 = tpu.matmul %252, %57, %cst_95 {dimension_numbers = #tpu.dot_dimension_numbers<[1], [0], [0], [1], [0, 0, 1, 1], [], []>} : vector<1x64xf32>, vector<64x256xf32>, vector<1x256xf32> -> vector<1x256xf32>
    %257 = arith.addf %255, %256 : vector<1x256xf32>
    %258 = arith.negf %257 : vector<1x256xf32>
    %259 = math.exp %258 : vector<1x256xf32>
    %cst_96 = arith.constant 1.000000e+00 : f32
    %260 = vector.broadcast %cst_96 : f32 to vector<1x256xf32>
    %261 = arith.addf %260, %259 : vector<1x256xf32>
    %262 = arith.divf %260, %261 : vector<1x256xf32>
    %263 = math.tanh %257 : vector<1x256xf32>
    %264 = vector.extract_strided_slice %262 {offsets = [0, 0], sizes = [1, 32], strides = [1, 1]} : vector<1x256xf32> to vector<1x32xf32>
    %265 = vector.extract_strided_slice %262 {offsets = [0, 32], sizes = [1, 32], strides = [1, 1]} : vector<1x256xf32> to vector<1x32xf32>
    %266 = vector.extract_strided_slice %263 {offsets = [0, 64], sizes = [1, 32], strides = [1, 1]} : vector<1x256xf32> to vector<1x32xf32>
    %267 = vector.extract_strided_slice %262 {offsets = [0, 96], sizes = [1, 32], strides = [1, 1]} : vector<1x256xf32> to vector<1x32xf32>
    %268 = vector.extract_strided_slice %262 {offsets = [0, 128], sizes = [1, 32], strides = [1, 1]} : vector<1x256xf32> to vector<1x32xf32>
    %269 = vector.extract_strided_slice %262 {offsets = [0, 160], sizes = [1, 32], strides = [1, 1]} : vector<1x256xf32> to vector<1x32xf32>
    %270 = vector.extract_strided_slice %263 {offsets = [0, 192], sizes = [1, 32], strides = [1, 1]} : vector<1x256xf32> to vector<1x32xf32>
    %271 = vector.extract_strided_slice %262 {offsets = [0, 224], sizes = [1, 32], strides = [1, 1]} : vector<1x256xf32> to vector<1x32xf32>
    %272 = arith.mulf %265, %242 : vector<1x32xf32>
    %273 = arith.mulf %264, %266 : vector<1x32xf32>
    %274 = arith.addf %272, %273 : vector<1x32xf32>
    %275 = arith.mulf %269, %245 : vector<1x32xf32>
    %276 = arith.mulf %268, %270 : vector<1x32xf32>
    %277 = arith.addf %275, %276 : vector<1x32xf32>
    %278 = math.tanh %274 : vector<1x32xf32>
    %279 = arith.mulf %267, %278 : vector<1x32xf32>
    %280 = math.tanh %277 : vector<1x32xf32>
    %281 = arith.mulf %271, %280 : vector<1x32xf32>
    %c6_97 = arith.constant 6 : index
    %c0_98 = arith.constant 0 : index
    %282 = vector.load %arg17[%c6_97, %c0_98] : memref<16x64xf32, #tpu.memory_space<vmem>>, vector<1x32xf32>
    tpu.vector_store %arg17[%c6_97, %c0_98], %279 {strides = array<i32>} : memref<16x64xf32, #tpu.memory_space<vmem>>, vector<1x32xf32>,
    %c9_99 = arith.constant 9 : index
    %c32_100 = arith.constant 32 : index
    %283 = vector.load %arg17[%c9_99, %c32_100] : memref<16x64xf32, #tpu.memory_space<vmem>>, vector<1x32xf32>
    tpu.vector_store %arg17[%c9_99, %c32_100], %281 {strides = array<i32>} : memref<16x64xf32, #tpu.memory_space<vmem>>, vector<1x32xf32>,
    %284 = tpu.concatenate %279, %281 in 1 : vector<1x32xf32>, vector<1x32xf32> -> vector<1x64xf32>
    %c7 = arith.constant 7 : index
    %c0_101 = arith.constant 0 : index
    %285 = vector.load %arg16[%c7, %c0_101] : memref<16x256xf32, #tpu.memory_space<vmem>>, vector<1x128xf32>
    %c8 = arith.constant 8 : index
    %c128_102 = arith.constant 128 : index
    %286 = vector.load %arg16[%c8, %c128_102] : memref<16x256xf32, #tpu.memory_space<vmem>>, vector<1x128xf32>
    %287 = tpu.concatenate %285, %286 in 1 : vector<1x128xf32>, vector<1x128xf32> -> vector<1x256xf32>
    %cst_103 = arith.constant dense<0.000000e+00> : vector<1x256xf32>
    %288 = tpu.matmul %284, %57, %cst_103 {dimension_numbers = #tpu.dot_dimension_numbers<[1], [0], [0], [1], [0, 0, 1, 1], [], []>} : vector<1x64xf32>, vector<64x256xf32>, vector<1x256xf32> -> vector<1x256xf32>
    %289 = arith.addf %287, %288 : vector<1x256xf32>
    %290 = arith.negf %289 : vector<1x256xf32>
    %291 = math.exp %290 : vector<1x256xf32>
    %cst_104 = arith.constant 1.000000e+00 : f32
    %292 = vector.broadcast %cst_104 : f32 to vector<1x256xf32>
    %293 = arith.addf %292, %291 : vector<1x256xf32>
    %294 = arith.divf %292, %293 : vector<1x256xf32>
    %295 = math.tanh %289 : vector<1x256xf32>
    %296 = vector.extract_strided_slice %294 {offsets = [0, 0], sizes = [1, 32], strides = [1, 1]} : vector<1x256xf32> to vector<1x32xf32>
    %297 = vector.extract_strided_slice %294 {offsets = [0, 32], sizes = [1, 32], strides = [1, 1]} : vector<1x256xf32> to vector<1x32xf32>
    %298 = vector.extract_strided_slice %295 {offsets = [0, 64], sizes = [1, 32], strides = [1, 1]} : vector<1x256xf32> to vector<1x32xf32>
    %299 = vector.extract_strided_slice %294 {offsets = [0, 96], sizes = [1, 32], strides = [1, 1]} : vector<1x256xf32> to vector<1x32xf32>
    %300 = vector.extract_strided_slice %294 {offsets = [0, 128], sizes = [1, 32], strides = [1, 1]} : vector<1x256xf32> to vector<1x32xf32>
    %301 = vector.extract_strided_slice %294 {offsets = [0, 160], sizes = [1, 32], strides = [1, 1]} : vector<1x256xf32> to vector<1x32xf32>
    %302 = vector.extract_strided_slice %295 {offsets = [0, 192], sizes = [1, 32], strides = [1, 1]} : vector<1x256xf32> to vector<1x32xf32>
    %303 = vector.extract_strided_slice %294 {offsets = [0, 224], sizes = [1, 32], strides = [1, 1]} : vector<1x256xf32> to vector<1x32xf32>
    %304 = arith.mulf %297, %274 : vector<1x32xf32>
    %305 = arith.mulf %296, %298 : vector<1x32xf32>
    %306 = arith.addf %304, %305 : vector<1x32xf32>
    %307 = arith.mulf %301, %277 : vector<1x32xf32>
    %308 = arith.mulf %300, %302 : vector<1x32xf32>
    %309 = arith.addf %307, %308 : vector<1x32xf32>
    %310 = math.tanh %306 : vector<1x32xf32>
    %311 = arith.mulf %299, %310 : vector<1x32xf32>
    %312 = math.tanh %309 : vector<1x32xf32>
    %313 = arith.mulf %303, %312 : vector<1x32xf32>
    %c7_105 = arith.constant 7 : index
    %c0_106 = arith.constant 0 : index
    %314 = vector.load %arg17[%c7_105, %c0_106] : memref<16x64xf32, #tpu.memory_space<vmem>>, vector<1x32xf32>
    tpu.vector_store %arg17[%c7_105, %c0_106], %311 {strides = array<i32>} : memref<16x64xf32, #tpu.memory_space<vmem>>, vector<1x32xf32>,
    %c8_107 = arith.constant 8 : index
    %c32_108 = arith.constant 32 : index
    %315 = vector.load %arg17[%c8_107, %c32_108] : memref<16x64xf32, #tpu.memory_space<vmem>>, vector<1x32xf32>
    tpu.vector_store %arg17[%c8_107, %c32_108], %313 {strides = array<i32>} : memref<16x64xf32, #tpu.memory_space<vmem>>, vector<1x32xf32>,
    %316 = tpu.concatenate %311, %313 in 1 : vector<1x32xf32>, vector<1x32xf32> -> vector<1x64xf32>
    %c8_109 = arith.constant 8 : index
    %c0_110 = arith.constant 0 : index
    %317 = vector.load %arg16[%c8_109, %c0_110] : memref<16x256xf32, #tpu.memory_space<vmem>>, vector<1x128xf32>
    %c7_111 = arith.constant 7 : index
    %c128_112 = arith.constant 128 : index
    %318 = vector.load %arg16[%c7_111, %c128_112] : memref<16x256xf32, #tpu.memory_space<vmem>>, vector<1x128xf32>
    %319 = tpu.concatenate %317, %318 in 1 : vector<1x128xf32>, vector<1x128xf32> -> vector<1x256xf32>
    %cst_113 = arith.constant dense<0.000000e+00> : vector<1x256xf32>
    %320 = tpu.matmul %316, %57, %cst_113 {dimension_numbers = #tpu.dot_dimension_numbers<[1], [0], [0], [1], [0, 0, 1, 1], [], []>} : vector<1x64xf32>, vector<64x256xf32>, vector<1x256xf32> -> vector<1x256xf32>
    %321 = arith.addf %319, %320 : vector<1x256xf32>
    %322 = arith.negf %321 : vector<1x256xf32>
    %323 = math.exp %322 : vector<1x256xf32>
    %cst_114 = arith.constant 1.000000e+00 : f32
    %324 = vector.broadcast %cst_114 : f32 to vector<1x256xf32>
    %325 = arith.addf %324, %323 : vector<1x256xf32>
    %326 = arith.divf %324, %325 : vector<1x256xf32>
    %327 = math.tanh %321 : vector<1x256xf32>
    %328 = vector.extract_strided_slice %326 {offsets = [0, 0], sizes = [1, 32], strides = [1, 1]} : vector<1x256xf32> to vector<1x32xf32>
    %329 = vector.extract_strided_slice %326 {offsets = [0, 32], sizes = [1, 32], strides = [1, 1]} : vector<1x256xf32> to vector<1x32xf32>
    %330 = vector.extract_strided_slice %327 {offsets = [0, 64], sizes = [1, 32], strides = [1, 1]} : vector<1x256xf32> to vector<1x32xf32>
    %331 = vector.extract_strided_slice %326 {offsets = [0, 96], sizes = [1, 32], strides = [1, 1]} : vector<1x256xf32> to vector<1x32xf32>
    %332 = vector.extract_strided_slice %326 {offsets = [0, 128], sizes = [1, 32], strides = [1, 1]} : vector<1x256xf32> to vector<1x32xf32>
    %333 = vector.extract_strided_slice %326 {offsets = [0, 160], sizes = [1, 32], strides = [1, 1]} : vector<1x256xf32> to vector<1x32xf32>
    %334 = vector.extract_strided_slice %327 {offsets = [0, 192], sizes = [1, 32], strides = [1, 1]} : vector<1x256xf32> to vector<1x32xf32>
    %335 = vector.extract_strided_slice %326 {offsets = [0, 224], sizes = [1, 32], strides = [1, 1]} : vector<1x256xf32> to vector<1x32xf32>
    %336 = arith.mulf %329, %306 : vector<1x32xf32>
    %337 = arith.mulf %328, %330 : vector<1x32xf32>
    %338 = arith.addf %336, %337 : vector<1x32xf32>
    %339 = arith.mulf %333, %309 : vector<1x32xf32>
    %340 = arith.mulf %332, %334 : vector<1x32xf32>
    %341 = arith.addf %339, %340 : vector<1x32xf32>
    %342 = math.tanh %338 : vector<1x32xf32>
    %343 = arith.mulf %331, %342 : vector<1x32xf32>
    %344 = math.tanh %341 : vector<1x32xf32>
    %345 = arith.mulf %335, %344 : vector<1x32xf32>
    %c8_115 = arith.constant 8 : index
    %c0_116 = arith.constant 0 : index
    %346 = vector.load %arg17[%c8_115, %c0_116] : memref<16x64xf32, #tpu.memory_space<vmem>>, vector<1x32xf32>
    tpu.vector_store %arg17[%c8_115, %c0_116], %343 {strides = array<i32>} : memref<16x64xf32, #tpu.memory_space<vmem>>, vector<1x32xf32>,
    %c7_117 = arith.constant 7 : index
    %c32_118 = arith.constant 32 : index
    %347 = vector.load %arg17[%c7_117, %c32_118] : memref<16x64xf32, #tpu.memory_space<vmem>>, vector<1x32xf32>
    tpu.vector_store %arg17[%c7_117, %c32_118], %345 {strides = array<i32>} : memref<16x64xf32, #tpu.memory_space<vmem>>, vector<1x32xf32>,
    %348 = tpu.concatenate %343, %345 in 1 : vector<1x32xf32>, vector<1x32xf32> -> vector<1x64xf32>
    %c9_119 = arith.constant 9 : index
    %c0_120 = arith.constant 0 : index
    %349 = vector.load %arg16[%c9_119, %c0_120] : memref<16x256xf32, #tpu.memory_space<vmem>>, vector<1x128xf32>
    %c6_121 = arith.constant 6 : index
    %c128_122 = arith.constant 128 : index
    %350 = vector.load %arg16[%c6_121, %c128_122] : memref<16x256xf32, #tpu.memory_space<vmem>>, vector<1x128xf32>
    %351 = tpu.concatenate %349, %350 in 1 : vector<1x128xf32>, vector<1x128xf32> -> vector<1x256xf32>
    %cst_123 = arith.constant dense<0.000000e+00> : vector<1x256xf32>
    %352 = tpu.matmul %348, %57, %cst_123 {dimension_numbers = #tpu.dot_dimension_numbers<[1], [0], [0], [1], [0, 0, 1, 1], [], []>} : vector<1x64xf32>, vector<64x256xf32>, vector<1x256xf32> -> vector<1x256xf32>
    %353 = arith.addf %351, %352 : vector<1x256xf32>
    %354 = arith.negf %353 : vector<1x256xf32>
    %355 = math.exp %354 : vector<1x256xf32>
    %cst_124 = arith.constant 1.000000e+00 : f32
    %356 = vector.broadcast %cst_124 : f32 to vector<1x256xf32>
    %357 = arith.addf %356, %355 : vector<1x256xf32>
    %358 = arith.divf %356, %357 : vector<1x256xf32>
    %359 = math.tanh %353 : vector<1x256xf32>
    %360 = vector.extract_strided_slice %358 {offsets = [0, 0], sizes = [1, 32], strides = [1, 1]} : vector<1x256xf32> to vector<1x32xf32>
    %361 = vector.extract_strided_slice %358 {offsets = [0, 32], sizes = [1, 32], strides = [1, 1]} : vector<1x256xf32> to vector<1x32xf32>
    %362 = vector.extract_strided_slice %359 {offsets = [0, 64], sizes = [1, 32], strides = [1, 1]} : vector<1x256xf32> to vector<1x32xf32>
    %363 = vector.extract_strided_slice %358 {offsets = [0, 96], sizes = [1, 32], strides = [1, 1]} : vector<1x256xf32> to vector<1x32xf32>
    %364 = vector.extract_strided_slice %358 {offsets = [0, 128], sizes = [1, 32], strides = [1, 1]} : vector<1x256xf32> to vector<1x32xf32>
    %365 = vector.extract_strided_slice %358 {offsets = [0, 160], sizes = [1, 32], strides = [1, 1]} : vector<1x256xf32> to vector<1x32xf32>
    %366 = vector.extract_strided_slice %359 {offsets = [0, 192], sizes = [1, 32], strides = [1, 1]} : vector<1x256xf32> to vector<1x32xf32>
    %367 = vector.extract_strided_slice %358 {offsets = [0, 224], sizes = [1, 32], strides = [1, 1]} : vector<1x256xf32> to vector<1x32xf32>
    %368 = arith.mulf %361, %338 : vector<1x32xf32>
    %369 = arith.mulf %360, %362 : vector<1x32xf32>
    %370 = arith.addf %368, %369 : vector<1x32xf32>
    %371 = arith.mulf %365, %341 : vector<1x32xf32>
    %372 = arith.mulf %364, %366 : vector<1x32xf32>
    %373 = arith.addf %371, %372 : vector<1x32xf32>
    %374 = math.tanh %370 : vector<1x32xf32>
    %375 = arith.mulf %363, %374 : vector<1x32xf32>
    %376 = math.tanh %373 : vector<1x32xf32>
    %377 = arith.mulf %367, %376 : vector<1x32xf32>
    %c9_125 = arith.constant 9 : index
    %c0_126 = arith.constant 0 : index
    %378 = vector.load %arg17[%c9_125, %c0_126] : memref<16x64xf32, #tpu.memory_space<vmem>>, vector<1x32xf32>
    tpu.vector_store %arg17[%c9_125, %c0_126], %375 {strides = array<i32>} : memref<16x64xf32, #tpu.memory_space<vmem>>, vector<1x32xf32>,
    %c6_127 = arith.constant 6 : index
    %c32_128 = arith.constant 32 : index
    %379 = vector.load %arg17[%c6_127, %c32_128] : memref<16x64xf32, #tpu.memory_space<vmem>>, vector<1x32xf32>
    tpu.vector_store %arg17[%c6_127, %c32_128], %377 {strides = array<i32>} : memref<16x64xf32, #tpu.memory_space<vmem>>, vector<1x32xf32>,
    %380 = tpu.concatenate %375, %377 in 1 : vector<1x32xf32>, vector<1x32xf32> -> vector<1x64xf32>
    %c10_129 = arith.constant 10 : index
    %c0_130 = arith.constant 0 : index
    %381 = vector.load %arg16[%c10_129, %c0_130] : memref<16x256xf32, #tpu.memory_space<vmem>>, vector<1x128xf32>
    %c5_131 = arith.constant 5 : index
    %c128_132 = arith.constant 128 : index
    %382 = vector.load %arg16[%c5_131, %c128_132] : memref<16x256xf32, #tpu.memory_space<vmem>>, vector<1x128xf32>
    %383 = tpu.concatenate %381, %382 in 1 : vector<1x128xf32>, vector<1x128xf32> -> vector<1x256xf32>
    %cst_133 = arith.constant dense<0.000000e+00> : vector<1x256xf32>
    %384 = tpu.matmul %380, %57, %cst_133 {dimension_numbers = #tpu.dot_dimension_numbers<[1], [0], [0], [1], [0, 0, 1, 1], [], []>} : vector<1x64xf32>, vector<64x256xf32>, vector<1x256xf32> -> vector<1x256xf32>
    %385 = arith.addf %383, %384 : vector<1x256xf32>
    %386 = arith.negf %385 : vector<1x256xf32>
    %387 = math.exp %386 : vector<1x256xf32>
    %cst_134 = arith.constant 1.000000e+00 : f32
    %388 = vector.broadcast %cst_134 : f32 to vector<1x256xf32>
    %389 = arith.addf %388, %387 : vector<1x256xf32>
    %390 = arith.divf %388, %389 : vector<1x256xf32>
    %391 = math.tanh %385 : vector<1x256xf32>
    %392 = vector.extract_strided_slice %390 {offsets = [0, 0], sizes = [1, 32], strides = [1, 1]} : vector<1x256xf32> to vector<1x32xf32>
    %393 = vector.extract_strided_slice %390 {offsets = [0, 32], sizes = [1, 32], strides = [1, 1]} : vector<1x256xf32> to vector<1x32xf32>
    %394 = vector.extract_strided_slice %391 {offsets = [0, 64], sizes = [1, 32], strides = [1, 1]} : vector<1x256xf32> to vector<1x32xf32>
    %395 = vector.extract_strided_slice %390 {offsets = [0, 96], sizes = [1, 32], strides = [1, 1]} : vector<1x256xf32> to vector<1x32xf32>
    %396 = vector.extract_strided_slice %390 {offsets = [0, 128], sizes = [1, 32], strides = [1, 1]} : vector<1x256xf32> to vector<1x32xf32>
    %397 = vector.extract_strided_slice %390 {offsets = [0, 160], sizes = [1, 32], strides = [1, 1]} : vector<1x256xf32> to vector<1x32xf32>
    %398 = vector.extract_strided_slice %391 {offsets = [0, 192], sizes = [1, 32], strides = [1, 1]} : vector<1x256xf32> to vector<1x32xf32>
    %399 = vector.extract_strided_slice %390 {offsets = [0, 224], sizes = [1, 32], strides = [1, 1]} : vector<1x256xf32> to vector<1x32xf32>
    %400 = arith.mulf %393, %370 : vector<1x32xf32>
    %401 = arith.mulf %392, %394 : vector<1x32xf32>
    %402 = arith.addf %400, %401 : vector<1x32xf32>
    %403 = arith.mulf %397, %373 : vector<1x32xf32>
    %404 = arith.mulf %396, %398 : vector<1x32xf32>
    %405 = arith.addf %403, %404 : vector<1x32xf32>
    %406 = math.tanh %402 : vector<1x32xf32>
    %407 = arith.mulf %395, %406 : vector<1x32xf32>
    %408 = math.tanh %405 : vector<1x32xf32>
    %409 = arith.mulf %399, %408 : vector<1x32xf32>
    %c10_135 = arith.constant 10 : index
    %c0_136 = arith.constant 0 : index
    %410 = vector.load %arg17[%c10_135, %c0_136] : memref<16x64xf32, #tpu.memory_space<vmem>>, vector<1x32xf32>
    tpu.vector_store %arg17[%c10_135, %c0_136], %407 {strides = array<i32>} : memref<16x64xf32, #tpu.memory_space<vmem>>, vector<1x32xf32>,
    %c5_137 = arith.constant 5 : index
    %c32_138 = arith.constant 32 : index
    %411 = vector.load %arg17[%c5_137, %c32_138] : memref<16x64xf32, #tpu.memory_space<vmem>>, vector<1x32xf32>
    tpu.vector_store %arg17[%c5_137, %c32_138], %409 {strides = array<i32>} : memref<16x64xf32, #tpu.memory_space<vmem>>, vector<1x32xf32>,
    %412 = tpu.concatenate %407, %409 in 1 : vector<1x32xf32>, vector<1x32xf32> -> vector<1x64xf32>
    %c11_139 = arith.constant 11 : index
    %c0_140 = arith.constant 0 : index
    %413 = vector.load %arg16[%c11_139, %c0_140] : memref<16x256xf32, #tpu.memory_space<vmem>>, vector<1x128xf32>
    %c4_141 = arith.constant 4 : index
    %c128_142 = arith.constant 128 : index
    %414 = vector.load %arg16[%c4_141, %c128_142] : memref<16x256xf32, #tpu.memory_space<vmem>>, vector<1x128xf32>
    %415 = tpu.concatenate %413, %414 in 1 : vector<1x128xf32>, vector<1x128xf32> -> vector<1x256xf32>
    %cst_143 = arith.constant dense<0.000000e+00> : vector<1x256xf32>
    %416 = tpu.matmul %412, %57, %cst_143 {dimension_numbers = #tpu.dot_dimension_numbers<[1], [0], [0], [1], [0, 0, 1, 1], [], []>} : vector<1x64xf32>, vector<64x256xf32>, vector<1x256xf32> -> vector<1x256xf32>
    %417 = arith.addf %415, %416 : vector<1x256xf32>
    %418 = arith.negf %417 : vector<1x256xf32>
    %419 = math.exp %418 : vector<1x256xf32>
    %cst_144 = arith.constant 1.000000e+00 : f32
    %420 = vector.broadcast %cst_144 : f32 to vector<1x256xf32>
    %421 = arith.addf %420, %419 : vector<1x256xf32>
    %422 = arith.divf %420, %421 : vector<1x256xf32>
    %423 = math.tanh %417 : vector<1x256xf32>
    %424 = vector.extract_strided_slice %422 {offsets = [0, 0], sizes = [1, 32], strides = [1, 1]} : vector<1x256xf32> to vector<1x32xf32>
    %425 = vector.extract_strided_slice %422 {offsets = [0, 32], sizes = [1, 32], strides = [1, 1]} : vector<1x256xf32> to vector<1x32xf32>
    %426 = vector.extract_strided_slice %423 {offsets = [0, 64], sizes = [1, 32], strides = [1, 1]} : vector<1x256xf32> to vector<1x32xf32>
    %427 = vector.extract_strided_slice %422 {offsets = [0, 96], sizes = [1, 32], strides = [1, 1]} : vector<1x256xf32> to vector<1x32xf32>
    %428 = vector.extract_strided_slice %422 {offsets = [0, 128], sizes = [1, 32], strides = [1, 1]} : vector<1x256xf32> to vector<1x32xf32>
    %429 = vector.extract_strided_slice %422 {offsets = [0, 160], sizes = [1, 32], strides = [1, 1]} : vector<1x256xf32> to vector<1x32xf32>
    %430 = vector.extract_strided_slice %423 {offsets = [0, 192], sizes = [1, 32], strides = [1, 1]} : vector<1x256xf32> to vector<1x32xf32>
    %431 = vector.extract_strided_slice %422 {offsets = [0, 224], sizes = [1, 32], strides = [1, 1]} : vector<1x256xf32> to vector<1x32xf32>
    %432 = arith.mulf %425, %402 : vector<1x32xf32>
    %433 = arith.mulf %424, %426 : vector<1x32xf32>
    %434 = arith.addf %432, %433 : vector<1x32xf32>
    %435 = arith.mulf %429, %405 : vector<1x32xf32>
    %436 = arith.mulf %428, %430 : vector<1x32xf32>
    %437 = arith.addf %435, %436 : vector<1x32xf32>
    %438 = math.tanh %434 : vector<1x32xf32>
    %439 = arith.mulf %427, %438 : vector<1x32xf32>
    %440 = math.tanh %437 : vector<1x32xf32>
    %441 = arith.mulf %431, %440 : vector<1x32xf32>
    %c11_145 = arith.constant 11 : index
    %c0_146 = arith.constant 0 : index
    %442 = vector.load %arg17[%c11_145, %c0_146] : memref<16x64xf32, #tpu.memory_space<vmem>>, vector<1x32xf32>
    tpu.vector_store %arg17[%c11_145, %c0_146], %439 {strides = array<i32>} : memref<16x64xf32, #tpu.memory_space<vmem>>, vector<1x32xf32>,
    %c4_147 = arith.constant 4 : index
    %c32_148 = arith.constant 32 : index
    %443 = vector.load %arg17[%c4_147, %c32_148] : memref<16x64xf32, #tpu.memory_space<vmem>>, vector<1x32xf32>
    tpu.vector_store %arg17[%c4_147, %c32_148], %441 {strides = array<i32>} : memref<16x64xf32, #tpu.memory_space<vmem>>, vector<1x32xf32>,
    %444 = tpu.concatenate %439, %441 in 1 : vector<1x32xf32>, vector<1x32xf32> -> vector<1x64xf32>
    %c12_149 = arith.constant 12 : index
    %c0_150 = arith.constant 0 : index
    %445 = vector.load %arg16[%c12_149, %c0_150] : memref<16x256xf32, #tpu.memory_space<vmem>>, vector<1x128xf32>
    %c3_151 = arith.constant 3 : index
    %c128_152 = arith.constant 128 : index
    %446 = vector.load %arg16[%c3_151, %c128_152] : memref<16x256xf32, #tpu.memory_space<vmem>>, vector<1x128xf32>
    %447 = tpu.concatenate %445, %446 in 1 : vector<1x128xf32>, vector<1x128xf32> -> vector<1x256xf32>
    %cst_153 = arith.constant dense<0.000000e+00> : vector<1x256xf32>
    %448 = tpu.matmul %444, %57, %cst_153 {dimension_numbers = #tpu.dot_dimension_numbers<[1], [0], [0], [1], [0, 0, 1, 1], [], []>} : vector<1x64xf32>, vector<64x256xf32>, vector<1x256xf32> -> vector<1x256xf32>
    %449 = arith.addf %447, %448 : vector<1x256xf32>
    %450 = arith.negf %449 : vector<1x256xf32>
    %451 = math.exp %450 : vector<1x256xf32>
    %cst_154 = arith.constant 1.000000e+00 : f32
    %452 = vector.broadcast %cst_154 : f32 to vector<1x256xf32>
    %453 = arith.addf %452, %451 : vector<1x256xf32>
    %454 = arith.divf %452, %453 : vector<1x256xf32>
    %455 = math.tanh %449 : vector<1x256xf32>
    %456 = vector.extract_strided_slice %454 {offsets = [0, 0], sizes = [1, 32], strides = [1, 1]} : vector<1x256xf32> to vector<1x32xf32>
    %457 = vector.extract_strided_slice %454 {offsets = [0, 32], sizes = [1, 32], strides = [1, 1]} : vector<1x256xf32> to vector<1x32xf32>
    %458 = vector.extract_strided_slice %455 {offsets = [0, 64], sizes = [1, 32], strides = [1, 1]} : vector<1x256xf32> to vector<1x32xf32>
    %459 = vector.extract_strided_slice %454 {offsets = [0, 96], sizes = [1, 32], strides = [1, 1]} : vector<1x256xf32> to vector<1x32xf32>
    %460 = vector.extract_strided_slice %454 {offsets = [0, 128], sizes = [1, 32], strides = [1, 1]} : vector<1x256xf32> to vector<1x32xf32>
    %461 = vector.extract_strided_slice %454 {offsets = [0, 160], sizes = [1, 32], strides = [1, 1]} : vector<1x256xf32> to vector<1x32xf32>
    %462 = vector.extract_strided_slice %455 {offsets = [0, 192], sizes = [1, 32], strides = [1, 1]} : vector<1x256xf32> to vector<1x32xf32>
    %463 = vector.extract_strided_slice %454 {offsets = [0, 224], sizes = [1, 32], strides = [1, 1]} : vector<1x256xf32> to vector<1x32xf32>
    %464 = arith.mulf %457, %434 : vector<1x32xf32>
    %465 = arith.mulf %456, %458 : vector<1x32xf32>
    %466 = arith.addf %464, %465 : vector<1x32xf32>
    %467 = arith.mulf %461, %437 : vector<1x32xf32>
    %468 = arith.mulf %460, %462 : vector<1x32xf32>
    %469 = arith.addf %467, %468 : vector<1x32xf32>
    %470 = math.tanh %466 : vector<1x32xf32>
    %471 = arith.mulf %459, %470 : vector<1x32xf32>
    %472 = math.tanh %469 : vector<1x32xf32>
    %473 = arith.mulf %463, %472 : vector<1x32xf32>
    %c12_155 = arith.constant 12 : index
    %c0_156 = arith.constant 0 : index
    %474 = vector.load %arg17[%c12_155, %c0_156] : memref<16x64xf32, #tpu.memory_space<vmem>>, vector<1x32xf32>
    tpu.vector_store %arg17[%c12_155, %c0_156], %471 {strides = array<i32>} : memref<16x64xf32, #tpu.memory_space<vmem>>, vector<1x32xf32>,
    %c3_157 = arith.constant 3 : index
    %c32_158 = arith.constant 32 : index
    %475 = vector.load %arg17[%c3_157, %c32_158] : memref<16x64xf32, #tpu.memory_space<vmem>>, vector<1x32xf32>
    tpu.vector_store %arg17[%c3_157, %c32_158], %473 {strides = array<i32>} : memref<16x64xf32, #tpu.memory_space<vmem>>, vector<1x32xf32>,
    %476 = tpu.concatenate %471, %473 in 1 : vector<1x32xf32>, vector<1x32xf32> -> vector<1x64xf32>
    %c13_159 = arith.constant 13 : index
    %c0_160 = arith.constant 0 : index
    %477 = vector.load %arg16[%c13_159, %c0_160] : memref<16x256xf32, #tpu.memory_space<vmem>>, vector<1x128xf32>
    %c2_161 = arith.constant 2 : index
    %c128_162 = arith.constant 128 : index
    %478 = vector.load %arg16[%c2_161, %c128_162] : memref<16x256xf32, #tpu.memory_space<vmem>>, vector<1x128xf32>
    %479 = tpu.concatenate %477, %478 in 1 : vector<1x128xf32>, vector<1x128xf32> -> vector<1x256xf32>
    %cst_163 = arith.constant dense<0.000000e+00> : vector<1x256xf32>
    %480 = tpu.matmul %476, %57, %cst_163 {dimension_numbers = #tpu.dot_dimension_numbers<[1], [0], [0], [1], [0, 0, 1, 1], [], []>} : vector<1x64xf32>, vector<64x256xf32>, vector<1x256xf32> -> vector<1x256xf32>
    %481 = arith.addf %479, %480 : vector<1x256xf32>
    %482 = arith.negf %481 : vector<1x256xf32>
    %483 = math.exp %482 : vector<1x256xf32>
    %cst_164 = arith.constant 1.000000e+00 : f32
    %484 = vector.broadcast %cst_164 : f32 to vector<1x256xf32>
    %485 = arith.addf %484, %483 : vector<1x256xf32>
    %486 = arith.divf %484, %485 : vector<1x256xf32>
    %487 = math.tanh %481 : vector<1x256xf32>
    %488 = vector.extract_strided_slice %486 {offsets = [0, 0], sizes = [1, 32], strides = [1, 1]} : vector<1x256xf32> to vector<1x32xf32>
    %489 = vector.extract_strided_slice %486 {offsets = [0, 32], sizes = [1, 32], strides = [1, 1]} : vector<1x256xf32> to vector<1x32xf32>
    %490 = vector.extract_strided_slice %487 {offsets = [0, 64], sizes = [1, 32], strides = [1, 1]} : vector<1x256xf32> to vector<1x32xf32>
    %491 = vector.extract_strided_slice %486 {offsets = [0, 96], sizes = [1, 32], strides = [1, 1]} : vector<1x256xf32> to vector<1x32xf32>
    %492 = vector.extract_strided_slice %486 {offsets = [0, 128], sizes = [1, 32], strides = [1, 1]} : vector<1x256xf32> to vector<1x32xf32>
    %493 = vector.extract_strided_slice %486 {offsets = [0, 160], sizes = [1, 32], strides = [1, 1]} : vector<1x256xf32> to vector<1x32xf32>
    %494 = vector.extract_strided_slice %487 {offsets = [0, 192], sizes = [1, 32], strides = [1, 1]} : vector<1x256xf32> to vector<1x32xf32>
    %495 = vector.extract_strided_slice %486 {offsets = [0, 224], sizes = [1, 32], strides = [1, 1]} : vector<1x256xf32> to vector<1x32xf32>
    %496 = arith.mulf %489, %466 : vector<1x32xf32>
    %497 = arith.mulf %488, %490 : vector<1x32xf32>
    %498 = arith.addf %496, %497 : vector<1x32xf32>
    %499 = arith.mulf %493, %469 : vector<1x32xf32>
    %500 = arith.mulf %492, %494 : vector<1x32xf32>
    %501 = arith.addf %499, %500 : vector<1x32xf32>
    %502 = math.tanh %498 : vector<1x32xf32>
    %503 = arith.mulf %491, %502 : vector<1x32xf32>
    %504 = math.tanh %501 : vector<1x32xf32>
    %505 = arith.mulf %495, %504 : vector<1x32xf32>
    %c13_165 = arith.constant 13 : index
    %c0_166 = arith.constant 0 : index
    %506 = vector.load %arg17[%c13_165, %c0_166] : memref<16x64xf32, #tpu.memory_space<vmem>>, vector<1x32xf32>
    tpu.vector_store %arg17[%c13_165, %c0_166], %503 {strides = array<i32>} : memref<16x64xf32, #tpu.memory_space<vmem>>, vector<1x32xf32>,
    %c2_167 = arith.constant 2 : index
    %c32_168 = arith.constant 32 : index
    %507 = vector.load %arg17[%c2_167, %c32_168] : memref<16x64xf32, #tpu.memory_space<vmem>>, vector<1x32xf32>
    tpu.vector_store %arg17[%c2_167, %c32_168], %505 {strides = array<i32>} : memref<16x64xf32, #tpu.memory_space<vmem>>, vector<1x32xf32>,
    %508 = tpu.concatenate %503, %505 in 1 : vector<1x32xf32>, vector<1x32xf32> -> vector<1x64xf32>
    %c14_169 = arith.constant 14 : index
    %c0_170 = arith.constant 0 : index
    %509 = vector.load %arg16[%c14_169, %c0_170] : memref<16x256xf32, #tpu.memory_space<vmem>>, vector<1x128xf32>
    %c1_171 = arith.constant 1 : index
    %c128_172 = arith.constant 128 : index
    %510 = vector.load %arg16[%c1_171, %c128_172] : memref<16x256xf32, #tpu.memory_space<vmem>>, vector<1x128xf32>
    %511 = tpu.concatenate %509, %510 in 1 : vector<1x128xf32>, vector<1x128xf32> -> vector<1x256xf32>
    %cst_173 = arith.constant dense<0.000000e+00> : vector<1x256xf32>
    %512 = tpu.matmul %508, %57, %cst_173 {dimension_numbers = #tpu.dot_dimension_numbers<[1], [0], [0], [1], [0, 0, 1, 1], [], []>} : vector<1x64xf32>, vector<64x256xf32>, vector<1x256xf32> -> vector<1x256xf32>
    %513 = arith.addf %511, %512 : vector<1x256xf32>
    %514 = arith.negf %513 : vector<1x256xf32>
    %515 = math.exp %514 : vector<1x256xf32>
    %cst_174 = arith.constant 1.000000e+00 : f32
    %516 = vector.broadcast %cst_174 : f32 to vector<1x256xf32>
    %517 = arith.addf %516, %515 : vector<1x256xf32>
    %518 = arith.divf %516, %517 : vector<1x256xf32>
    %519 = math.tanh %513 : vector<1x256xf32>
    %520 = vector.extract_strided_slice %518 {offsets = [0, 0], sizes = [1, 32], strides = [1, 1]} : vector<1x256xf32> to vector<1x32xf32>
    %521 = vector.extract_strided_slice %518 {offsets = [0, 32], sizes = [1, 32], strides = [1, 1]} : vector<1x256xf32> to vector<1x32xf32>
    %522 = vector.extract_strided_slice %519 {offsets = [0, 64], sizes = [1, 32], strides = [1, 1]} : vector<1x256xf32> to vector<1x32xf32>
    %523 = vector.extract_strided_slice %518 {offsets = [0, 96], sizes = [1, 32], strides = [1, 1]} : vector<1x256xf32> to vector<1x32xf32>
    %524 = vector.extract_strided_slice %518 {offsets = [0, 128], sizes = [1, 32], strides = [1, 1]} : vector<1x256xf32> to vector<1x32xf32>
    %525 = vector.extract_strided_slice %518 {offsets = [0, 160], sizes = [1, 32], strides = [1, 1]} : vector<1x256xf32> to vector<1x32xf32>
    %526 = vector.extract_strided_slice %519 {offsets = [0, 192], sizes = [1, 32], strides = [1, 1]} : vector<1x256xf32> to vector<1x32xf32>
    %527 = vector.extract_strided_slice %518 {offsets = [0, 224], sizes = [1, 32], strides = [1, 1]} : vector<1x256xf32> to vector<1x32xf32>
    %528 = arith.mulf %521, %498 : vector<1x32xf32>
    %529 = arith.mulf %520, %522 : vector<1x32xf32>
    %530 = arith.addf %528, %529 : vector<1x32xf32>
    %531 = arith.mulf %525, %501 : vector<1x32xf32>
    %532 = arith.mulf %524, %526 : vector<1x32xf32>
    %533 = arith.addf %531, %532 : vector<1x32xf32>
    %534 = math.tanh %530 : vector<1x32xf32>
    %535 = arith.mulf %523, %534 : vector<1x32xf32>
    %536 = math.tanh %533 : vector<1x32xf32>
    %537 = arith.mulf %527, %536 : vector<1x32xf32>
    %c14_175 = arith.constant 14 : index
    %c0_176 = arith.constant 0 : index
    %538 = vector.load %arg17[%c14_175, %c0_176] : memref<16x64xf32, #tpu.memory_space<vmem>>, vector<1x32xf32>
    tpu.vector_store %arg17[%c14_175, %c0_176], %535 {strides = array<i32>} : memref<16x64xf32, #tpu.memory_space<vmem>>, vector<1x32xf32>,
    %c1_177 = arith.constant 1 : index
    %c32_178 = arith.constant 32 : index
    %539 = vector.load %arg17[%c1_177, %c32_178] : memref<16x64xf32, #tpu.memory_space<vmem>>, vector<1x32xf32>
    tpu.vector_store %arg17[%c1_177, %c32_178], %537 {strides = array<i32>} : memref<16x64xf32, #tpu.memory_space<vmem>>, vector<1x32xf32>,
    %540 = tpu.concatenate %535, %537 in 1 : vector<1x32xf32>, vector<1x32xf32> -> vector<1x64xf32>
    %c15_179 = arith.constant 15 : index
    %c0_180 = arith.constant 0 : index
    %541 = vector.load %arg16[%c15_179, %c0_180] : memref<16x256xf32, #tpu.memory_space<vmem>>, vector<1x128xf32>
    %c0_181 = arith.constant 0 : index
    %c128_182 = arith.constant 128 : index
    %542 = vector.load %arg16[%c0_181, %c128_182] : memref<16x256xf32, #tpu.memory_space<vmem>>, vector<1x128xf32>
    %543 = tpu.concatenate %541, %542 in 1 : vector<1x128xf32>, vector<1x128xf32> -> vector<1x256xf32>
    %cst_183 = arith.constant dense<0.000000e+00> : vector<1x256xf32>
    %544 = tpu.matmul %540, %57, %cst_183 {dimension_numbers = #tpu.dot_dimension_numbers<[1], [0], [0], [1], [0, 0, 1, 1], [], []>} : vector<1x64xf32>, vector<64x256xf32>, vector<1x256xf32> -> vector<1x256xf32>
    %545 = arith.addf %543, %544 : vector<1x256xf32>
    %546 = arith.negf %545 : vector<1x256xf32>
    %547 = math.exp %546 : vector<1x256xf32>
    %cst_184 = arith.constant 1.000000e+00 : f32
    %548 = vector.broadcast %cst_184 : f32 to vector<1x256xf32>
    %549 = arith.addf %548, %547 : vector<1x256xf32>
    %550 = arith.divf %548, %549 : vector<1x256xf32>
    %551 = math.tanh %545 : vector<1x256xf32>
    %552 = vector.extract_strided_slice %550 {offsets = [0, 0], sizes = [1, 32], strides = [1, 1]} : vector<1x256xf32> to vector<1x32xf32>
    %553 = vector.extract_strided_slice %550 {offsets = [0, 32], sizes = [1, 32], strides = [1, 1]} : vector<1x256xf32> to vector<1x32xf32>
    %554 = vector.extract_strided_slice %551 {offsets = [0, 64], sizes = [1, 32], strides = [1, 1]} : vector<1x256xf32> to vector<1x32xf32>
    %555 = vector.extract_strided_slice %550 {offsets = [0, 96], sizes = [1, 32], strides = [1, 1]} : vector<1x256xf32> to vector<1x32xf32>
    %556 = vector.extract_strided_slice %550 {offsets = [0, 128], sizes = [1, 32], strides = [1, 1]} : vector<1x256xf32> to vector<1x32xf32>
    %557 = vector.extract_strided_slice %550 {offsets = [0, 160], sizes = [1, 32], strides = [1, 1]} : vector<1x256xf32> to vector<1x32xf32>
    %558 = vector.extract_strided_slice %551 {offsets = [0, 192], sizes = [1, 32], strides = [1, 1]} : vector<1x256xf32> to vector<1x32xf32>
    %559 = vector.extract_strided_slice %550 {offsets = [0, 224], sizes = [1, 32], strides = [1, 1]} : vector<1x256xf32> to vector<1x32xf32>
    %560 = arith.mulf %553, %530 : vector<1x32xf32>
    %561 = arith.mulf %552, %554 : vector<1x32xf32>
    %562 = arith.addf %560, %561 : vector<1x32xf32>
    %563 = arith.mulf %557, %533 : vector<1x32xf32>
    %564 = arith.mulf %556, %558 : vector<1x32xf32>
    %565 = arith.addf %563, %564 : vector<1x32xf32>
    %566 = math.tanh %562 : vector<1x32xf32>
    %567 = arith.mulf %555, %566 : vector<1x32xf32>
    %568 = math.tanh %565 : vector<1x32xf32>
    %569 = arith.mulf %559, %568 : vector<1x32xf32>
    %c15_185 = arith.constant 15 : index
    %c0_186 = arith.constant 0 : index
    %570 = vector.load %arg17[%c15_185, %c0_186] : memref<16x64xf32, #tpu.memory_space<vmem>>, vector<1x32xf32>
    tpu.vector_store %arg17[%c15_185, %c0_186], %567 {strides = array<i32>} : memref<16x64xf32, #tpu.memory_space<vmem>>, vector<1x32xf32>,
    %c0_187 = arith.constant 0 : index
    %c32_188 = arith.constant 32 : index
    %571 = vector.load %arg17[%c0_187, %c32_188] : memref<16x64xf32, #tpu.memory_space<vmem>>, vector<1x32xf32>
    tpu.vector_store %arg17[%c0_187, %c32_188], %569 {strides = array<i32>} : memref<16x64xf32, #tpu.memory_space<vmem>>, vector<1x32xf32>,
    %c0_189 = arith.constant 0 : index
    %c0_190 = arith.constant 0 : index
    %572 = vector.load %arg17[%c0_189, %c0_190] : memref<16x64xf32, #tpu.memory_space<vmem>>, vector<16x64xf32>
    %cst_191 = arith.constant 0.000000e+00 : f32
    %573 = vector.broadcast %cst_191 : f32 to vector<16x64xf32>
    %574 = arith.maximumf %572, %573 : vector<16x64xf32>
    %c0_192 = arith.constant 0 : index
    %c0_193 = arith.constant 0 : index
    %575 = vector.load %arg8[%c0_192, %c0_193] : memref<96x32xf32, #tpu.memory_space<vmem>>, vector<96x32xf32>
    %576 = vector.extract_strided_slice %575 {offsets = [0, 0], sizes = [32, 32], strides = [1, 1]} : vector<96x32xf32> to vector<32x32xf32>
    %cst_194 = arith.constant dense<0.000000e+00> : vector<12x32xf32>
    %577 = tpu.matmul %49, %576, %cst_194 {dimension_numbers = #tpu.dot_dimension_numbers<[1], [0], [0], [1], [0, 0, 1, 1], [], []>} : vector<12x32xf32>, vector<32x32xf32>, vector<12x32xf32> -> vector<12x32xf32>
    %c0_195 = arith.constant 0 : index
    %c0_196 = arith.constant 0 : index
    %578 = vector.load %arg9[%c0_195, %c0_196] : memref<1x64xf32, #tpu.memory_space<vmem>>, vector<1x32xf32>
    %579 = vector.broadcast %578 : vector<1x32xf32> to vector<12x32xf32>
    %580 = arith.addf %577, %579 : vector<12x32xf32>
    %cst_197 = arith.constant 0.000000e+00 : f32
    %581 = vector.broadcast %cst_197 : f32 to vector<12x32xf32>
    %582 = arith.maximumf %580, %581 : vector<12x32xf32>
    %583 = vector.extract_strided_slice %575 {offsets = [32, 0], sizes = [64, 32], strides = [1, 1]} : vector<96x32xf32> to vector<64x32xf32>
    %cst_198 = arith.constant dense<0.000000e+00> : vector<16x32xf32>
    %584 = tpu.matmul %574, %583, %cst_198 {dimension_numbers = #tpu.dot_dimension_numbers<[1], [0], [0], [1], [0, 0, 1, 1], [], []>} : vector<16x64xf32>, vector<64x32xf32>, vector<16x32xf32> -> vector<16x32xf32>
    %c0_199 = arith.constant 0 : index
    %c32_200 = arith.constant 32 : index
    %585 = vector.load %arg9[%c0_199, %c32_200] : memref<1x64xf32, #tpu.memory_space<vmem>>, vector<1x32xf32>
    %586 = vector.broadcast %585 : vector<1x32xf32> to vector<16x32xf32>
    %587 = arith.addf %584, %586 : vector<16x32xf32>
    %cst_201 = arith.constant 0.000000e+00 : f32
    %588 = vector.broadcast %cst_201 : f32 to vector<16x32xf32>
    %589 = arith.maximumf %587, %588 : vector<16x32xf32>
    %cst_202 = arith.constant dense<0.000000e+00> : vector<12x16xf32>
    %590 = tpu.matmul %582, %589, %cst_202 {dimension_numbers = #tpu.dot_dimension_numbers<[1], [1], [0], [0], [0, 0, 1, 0], [], []>} : vector<12x32xf32>, vector<16x32xf32>, vector<12x16xf32> -> vector<12x16xf32>
    %c0_203 = arith.constant 0 : index
    %c0_204 = arith.constant 0 : index
    %591 = vector.load %arg15[%c0_203, %c0_204] : memref<12x16xf32, #tpu.memory_space<vmem>>, vector<12x16xf32>
    tpu.vector_store %arg15[%c0_203, %c0_204], %590 {strides = array<i32>} : memref<12x16xf32, #tpu.memory_space<vmem>>, vector<12x16xf32>,
    %cst_205 = arith.constant dense<0.000000e+00> : vector<12xf32>
    %592 = vector.multi_reduction <add>, %590, %cst_205 [1] : vector<12x16xf32> to vector<12xf32>
    %593 = vector.shape_cast %592 : vector<12xf32> to vector<12x1xf32>
    %cst_206 = arith.constant 1.600000e+01 : f32
    %594 = vector.broadcast %cst_206 : f32 to vector<12x1xf32>
    %595 = arith.divf %593, %594 : vector<12x1xf32>
    %cst_207 = arith.constant dense<0.000000e+00> : vector<16xf32>
    %596 = vector.multi_reduction <add>, %590, %cst_207 [0] : vector<12x16xf32> to vector<16xf32>
    %597 = vector.shape_cast %596 : vector<16xf32> to vector<1x16xf32>
    %cst_208 = arith.constant 1.200000e+01 : f32
    %598 = vector.broadcast %cst_208 : f32 to vector<1x16xf32>
    %599 = arith.divf %597, %598 : vector<1x16xf32>
    %600 = vector.broadcast %595 : vector<12x1xf32> to vector<12x32xf32>
    %601 = arith.mulf %600, %582 : vector<12x32xf32>
    %cst_209 = arith.constant dense<0.000000e+00> : vector<32xf32>
    %602 = vector.multi_reduction <add>, %601, %cst_209 [0] : vector<12x32xf32> to vector<32xf32>
    %603 = vector.shape_cast %602 : vector<32xf32> to vector<1x32xf32>
    %cst_210 = arith.constant 1.200000e+01 : f32
    %604 = vector.broadcast %cst_210 : f32 to vector<1x32xf32>
    %605 = arith.divf %603, %604 : vector<1x32xf32>
    %cst_211 = arith.constant dense<0.000000e+00> : vector<1x32xf32>
    %606 = tpu.matmul %599, %589, %cst_211 {dimension_numbers = #tpu.dot_dimension_numbers<[1], [0], [0], [1], [0, 0, 1, 1], [], []>} : vector<1x16xf32>, vector<16x32xf32>, vector<1x32xf32> -> vector<1x32xf32>
    %cst_212 = arith.constant 6.250000e-02 : f32
    %607 = vector.broadcast %cst_212 : f32 to vector<1x32xf32>
    %608 = arith.mulf %606, %607 : vector<1x32xf32>
    %609 = tpu.concatenate %605, %608 in 1 : vector<1x32xf32>, vector<1x32xf32> -> vector<1x64xf32>
    %c0_213 = arith.constant 0 : index
    %c0_214 = arith.constant 0 : index
    %c0_215 = arith.constant 0 : index
    %610 = vector.load %arg10[%c0_213, %c0_214, %c0_215] : memref<2x64x64xf32, #tpu.memory_space<vmem>>, vector<1x64x64xf32>
    %611 = vector.shape_cast %610 : vector<1x64x64xf32> to vector<64x64xf32>
    %cst_216 = arith.constant dense<0.000000e+00> : vector<1x64xf32>
    %612 = tpu.matmul %609, %611, %cst_216 {dimension_numbers = #tpu.dot_dimension_numbers<[1], [0], [0], [1], [0, 0, 1, 1], [], []>} : vector<1x64xf32>, vector<64x64xf32>, vector<1x64xf32> -> vector<1x64xf32>
    %c0_217 = arith.constant 0 : index
    %c0_218 = arith.constant 0 : index
    %c0_219 = arith.constant 0 : index
    %613 = vector.load %arg11[%c0_217, %c0_218, %c0_219] : memref<2x1x64xf32, #tpu.memory_space<vmem>>, vector<1x1x64xf32>
    %614 = vector.shape_cast %613 : vector<1x1x64xf32> to vector<1x64xf32>
    %615 = arith.addf %612, %614 : vector<1x64xf32>
    %cst_220 = arith.constant 0.000000e+00 : f32
    %616 = vector.broadcast %cst_220 : f32 to vector<1x64xf32>
    %617 = arith.maximumf %615, %616 : vector<1x64xf32>
    %c1_221 = arith.constant 1 : index
    %c0_222 = arith.constant 0 : index
    %c0_223 = arith.constant 0 : index
    %618 = vector.load %arg10[%c1_221, %c0_222, %c0_223] : memref<2x64x64xf32, #tpu.memory_space<vmem>>, vector<1x64x64xf32>
    %619 = vector.shape_cast %618 : vector<1x64x64xf32> to vector<64x64xf32>
    %cst_224 = arith.constant dense<0.000000e+00> : vector<1x64xf32>
    %620 = tpu.matmul %617, %619, %cst_224 {dimension_numbers = #tpu.dot_dimension_numbers<[1], [0], [0], [1], [0, 0, 1, 1], [], []>} : vector<1x64xf32>, vector<64x64xf32>, vector<1x64xf32> -> vector<1x64xf32>
    %c1_225 = arith.constant 1 : index
    %c0_226 = arith.constant 0 : index
    %c0_227 = arith.constant 0 : index
    %621 = vector.load %arg11[%c1_225, %c0_226, %c0_227] : memref<2x1x64xf32, #tpu.memory_space<vmem>>, vector<1x1x64xf32>
    %622 = vector.shape_cast %621 : vector<1x1x64xf32> to vector<1x64xf32>
    %623 = arith.addf %620, %622 : vector<1x64xf32>
    %cst_228 = arith.constant 0.000000e+00 : f32
    %624 = vector.broadcast %cst_228 : f32 to vector<1x64xf32>
    %625 = arith.maximumf %623, %624 : vector<1x64xf32>
    %c0_229 = arith.constant 0 : index
    %c0_230 = arith.constant 0 : index
    %626 = vector.load %arg12[%c0_229, %c0_230] : memref<64x2xf32, #tpu.memory_space<vmem>>, vector<64x2xf32>
    %cst_231 = arith.constant dense<0.000000e+00> : vector<1x2xf32>
    %627 = tpu.matmul %625, %626, %cst_231 {dimension_numbers = #tpu.dot_dimension_numbers<[1], [0], [0], [1], [0, 0, 1, 1], [], []>} : vector<1x64xf32>, vector<64x2xf32>, vector<1x2xf32> -> vector<1x2xf32>
    %c0_232 = arith.constant 0 : index
    %c0_233 = arith.constant 0 : index
    %628 = vector.load %arg13[%c0_232, %c0_233] : memref<1x2xf32, #tpu.memory_space<vmem>>, vector<1x2xf32>
    %629 = arith.addf %627, %628 : vector<1x2xf32>
    %c0_234 = arith.constant 0 : index
    %c0_235 = arith.constant 0 : index
    %630 = vector.load %arg14[%c0_234, %c0_235] : memref<1x2xf32, #tpu.memory_space<vmem>>, vector<1x2xf32>
    tpu.vector_store %arg14[%c0_234, %c0_235], %629 {strides = array<i32>} : memref<1x2xf32, #tpu.memory_space<vmem>>, vector<1x2xf32>,
    return
  }
}

</mosaic_0001>

<bundles_post_ra>
// kernel: cpi_forward.1
= control target key start
LH: loop header
LB: loop body
LE: loop exit
PB: predicated region body
PF: predicated region fallthrough
CT: control target
= control target key end

     0   :  { %21 = vsyncpa [#allocation5], 0  ;;  %s6180_s0 = inlined_call_operand.vmem [shape: f32[12,32], index: 0, kind: input, shape index: {}]   ;;  %s6181_s1 = inlined_call_operand.vmem [shape: f32[12,12], index: 1, kind: input, shape index: {}]   ;;  %s6182_s2 = inlined_call_operand.vmem [shape: f32[3,32,96], index: 2, kind: input, shape index: {}]   ;;  %s6183_s3 = inlined_call_operand.hbm [shape: f32[3,1,96], index: 3, kind: input, shape index: {}]   ;;  %s6184_s4 = inlined_call_operand.vmem [shape: f32[16,128], index: 4, kind: input, shape index: {}]   ;;  %s6185_s5 = inlined_call_operand.vmem [shape: f32[128,256], index: 5, kind: input, shape index: {}]   ;;  %s6186_s6 = inlined_call_operand.vmem [shape: f32[1,256], index: 6, kind: input, shape index: {}]   ;;  %s6187_s7 = inlined_call_operand.vmem [shape: f32[64,256], index: 7, kind: input, shape index: {}]   ;;  %s6188_s8 = inlined_call_operand.vmem [shape: f32[96,32], index: 8, kind: input, shape index: {}]   ;;  %s6189_s9 = inlined_call_operand.hbm [shape: f32[1,64], index: 9, kind: input, shape index: {}]   ;;  %s6190_s10 = inlined_call_operand.hbm [shape: f32[2,64,64], index: 10, kind: input, shape index: {}]   ;;  %s6191_s11 = inlined_call_operand.hbm [shape: f32[2,1,64], index: 11, kind: input, shape index: {}]   ;;  %s6192_s12 = inlined_call_operand.vmem [shape: f32[64,2], index: 12, kind: input, shape index: {}]   ;;  %s6193_s13 = inlined_call_operand.hbm [shape: f32[1,2], index: 13, kind: input, shape index: {}]   ;;  %s6194_s14 = inlined_call_operand.hbm [shape: f32[1,2], index: 14, kind: output, shape index: {0}]   ;;  %s6195_s15 = inlined_call_operand.hbm [shape: f32[12,16], index: 15, kind: output, shape index: {1}]  }
   0x1   :  { %22 = vsyncpa [#allocation8], 0 }
   0x2   :  { %23 = vsyncpa [#allocation11], 0 }
   0x3   :  { %24 = vsyncpa [#allocation6], 0 }
   0x4   :  { %25 = vsyncpa [#allocation15], 0  ;;  %s5217_s18 = smov [#allocation7]   ;;  %s5053_s22 = scalar_lea.hbm %s6189_s9, 16 }
   0x5   :  { %s60_s19 = sshll.u32 %s5217_s18, 4  ;;  %p5054_p0 = scmp.ne.s32.totalorder %s6189_s9, %s5053_s22  ;;  %s61_s19 = int_to_ptr.vmem [resolvable:$true] %s60_s19 }
   0x6   :  { %p5057_p1 = scmp.lt.u32.totalorder %s5053_s22, %s6189_s9 }
   0x8   :  { %p5059_p2 = pnand %p5057_p1, %p5054_p0 }
   0xa   :  { %5062 = shalt.err (!%p5059_p2)
}
   0xb   :  { %s5063_s27 = scalar_lea.vmem %s61_s19, 16  ;;  %s5067_s28 = scalar_lea.vmem %s61_s19, 32 }
   0xc   :  { %p5064_p3 = scmp.ne.s32.totalorder %s61_s19, %s5063_s27  ;;  %p5068_p4 = scmp.lt.s32.totalorder %s61_s19, %s61_s19 }
   0xd   :  { %p5069_p5 = scmp.lt.s32.totalorder %s5067_s28, %s5063_s27 }
   0xf   :  { %p5070_p6 = por %p5069_p5, %p5068_p4 }
  0x11   :  { %p5071_p7 = pnand %p5070_p6, %p5064_p3 }
  0x13   :  { %5074 = shalt.err (!%p5071_p7)
}
  0x14   :  { %63 = dma.hbm_to_vmem [thread:$0]  %s6189_s9, 16, %s61_s19, [#allocation8]  }
  0x15   :  { %s5218_s16 = smov [#allocation10]   ;;  %s5219_s18 = smov [#allocation4]  }
  0x16   :  { %s81_s17 = sshll.u32 %s5218_s16, 4  ;;  %s37_s20 = sshll.u32 %s5219_s18, 4  ;;  %s82_s17 = int_to_ptr.vmem [resolvable:$true] %s81_s17  ;;  %s38_s20 = int_to_ptr.vmem [resolvable:$true] %s37_s20 }
  0x17   :  { %s5075_s23 = scalar_lea.hbm %s6191_s11, 32 }
  0x18   :  { %p5076_p8 = scmp.ne.s32.totalorder %s6191_s11, %s5075_s23  ;;  %p5079_p9 = scmp.lt.u32.totalorder %s5075_s23, %s6191_s11 }
  0x1a   :  { %p5081_p10 = pnand %p5079_p9, %p5076_p8 }
  0x1c   :  { %5084 = shalt.err (!%p5081_p10)
}
  0x1d   :  { %s5085_s9 = scalar_lea.vmem %s82_s17, 32  ;;  %p5090_p12 = scmp.lt.s32.totalorder %s82_s17, %s82_s17 }
  0x1e   :  { %p5086_p11 = scmp.ne.s32.totalorder %s82_s17, %s5085_s9  ;;  %p5091_p13 = scmp.lt.s32.totalorder %s5085_s9, %s5085_s9 }
  0x20   :  { %p5092_p0 = por %p5091_p13, %p5090_p12 }
  0x22   :  { %p5093_p1 = pnand %p5092_p0, %p5086_p11 }
  0x24   :  { %5096 = shalt.err (!%p5093_p1)
}
  0x25   :  { %s5220_s19 = smov 16   ;;  %s5221_s28 = smov 1  }
  0x26   :  { %87 = dma.hbm_to_vmem [thread:$0]  %s6191_s11, 32, %s82_s17, [#allocation11], %s5220_s19, %s5220_s19, %s5221_s28  }
  0x27   :  { %s5097_s21 = scalar_lea.hbm %s6183_s3, 48 }
  0x28   :  { %p5098_p2 = scmp.ne.s32.totalorder %s6183_s3, %s5097_s21  ;;  %p5101_p3 = scmp.lt.u32.totalorder %s5097_s21, %s6183_s3 }
  0x2a   :  { %p5103_p4 = pnand %p5101_p3, %p5098_p2 }
  0x2c   :  { %5106 = shalt.err (!%p5103_p4)
}
  0x2d   :  { %s5107_s26 = scalar_lea.vmem %s38_s20, 48  ;;  %s5111_s27 = scalar_lea.vmem %s38_s20, 64 }
  0x2e   :  { %p5108_p5 = scmp.ne.s32.totalorder %s38_s20, %s5107_s26  ;;  %p5112_p6 = scmp.lt.s32.totalorder %s38_s20, %s38_s20 }
  0x2f   :  { %p5113_p7 = scmp.lt.s32.totalorder %s5111_s27, %s5107_s26 }
  0x31   :  { %p5114_p8 = por %p5113_p7, %p5112_p6 }
  0x33   :  { %p5115_p9 = pnand %p5114_p8, %p5108_p5 }
  0x35   :  { %5118 = shalt.err (!%p5115_p9)
}
  0x36   :  { %43 = dma.hbm_to_vmem [thread:$0]  %s6183_s3, 48, %s38_s20, [#allocation5], %s5220_s19, %s5220_s19, %s5221_s28  }
  0x37   :  { %s5222_s9 = smov [#allocation9]   ;;  %s5119_s18 = scalar_lea.hbm %s6190_s10, 2048 }
  0x38   :  { %s69_s29 = sshll.u32 %s5222_s9, 4  ;;  %p5120_p10 = scmp.ne.s32.totalorder %s6190_s10, %s5119_s18  ;;  %s70_s29 = int_to_ptr.vmem [resolvable:$true] %s69_s29 }
  0x39   :  { %p5123_p11 = scmp.lt.u32.totalorder %s5119_s18, %s6190_s10 }
  0x3b   :  { %p5125_p12 = pnand %p5123_p11, %p5120_p10 }
  0x3d   :  { %5128 = shalt.err (!%p5125_p12)
}
  0x3e   :  { %s5129_s25 = scalar_lea.vmem %s70_s29, 2048  ;;  %p5134_p0 = scmp.lt.s32.totalorder %s70_s29, %s70_s29 }
  0x3f   :  { %p5130_p13 = scmp.ne.s32.totalorder %s70_s29, %s5129_s25  ;;  %p5135_p1 = scmp.lt.s32.totalorder %s5129_s25, %s5129_s25 }
  0x41   :  { %p5136_p2 = por %p5135_p1, %p5134_p0 }
  0x43   :  { %p5137_p3 = pnand %p5136_p2, %p5130_p13 }
  0x45   :  { %5140 = shalt.err (!%p5137_p3)
}
  0x46   :  { %s5223_s3 = smov 128   ;;  %s5224_s20 = smov 8  }
  0x47   :  { %75 = dma.hbm_to_vmem [thread:$0]  %s6190_s10, 2048, %s70_s29, [#allocation8], %s5223_s3, %s5223_s3, %s5224_s20  }
  0x48   :  { %s5225_s26 = smov [#allocation12]   ;;  %s5141_s9 = scalar_lea.hbm %s6193_s13, 16 }
  0x49   :  { %s96_s27 = sshll.u32 %s5225_s26, 4  ;;  %p5142_p4 = scmp.ne.s32.totalorder %s6193_s13, %s5141_s9  ;;  %s97_s27 = int_to_ptr.vmem [resolvable:$true] %s96_s27 }
  0x4a   :  { %p5145_p5 = scmp.lt.u32.totalorder %s5141_s9, %s6193_s13 }
  0x4c   :  { %p5147_p6 = pnand %p5145_p5, %p5142_p4 }
  0x4e   :  { %5150 = shalt.err (!%p5147_p6)
}
  0x4f   :  { %s5151_s22 = scalar_lea.vmem %s97_s27, 16  ;;  %s5155_s10 = scalar_lea.vmem %s97_s27, 32 }
  0x50   :  { %p5152_p7 = scmp.ne.s32.totalorder %s97_s27, %s5151_s22  ;;  %p5156_p8 = scmp.lt.s32.totalorder %s97_s27, %s97_s27 }
  0x51   :  { %p5157_p9 = scmp.lt.s32.totalorder %s5155_s10, %s5151_s22 }
  0x53   :  { %p5158_p10 = por %p5157_p9, %p5156_p8 }
  0x55   :  { %p5159_p11 = pnand %p5158_p10, %p5152_p7 }
  0x57   :  { %5162 = shalt.err (!%p5159_p11)
}
  0x58   :  { %99 = dma.hbm_to_vmem [thread:$0]  %s6193_s13, 16, %s97_s27, [#allocation11]  }
  0x59   :  { %5207 = dma.done.wait [#allocation5], 48  }
  0x5a   :  { %5208 = vsyncadd [#allocation5], 4294967248 }
  0x5b   :  { %5209 = dma.done.wait [#allocation8], 2064  }
  0x5c   :  { %5210 = vsyncadd [#allocation8], 4294965232 }
  0x5d   :  { %5211 = dma.done.wait [#allocation11], 48  }
  0x5e   :  { %5212 = vsyncadd [#allocation11], 4294967248  ;;  %vm130_vm0 = vcmask 261120   ;;  %v119_v0 = vld [vmem:[%s6182_s2] sm:$0xff]  ;;  %v120_v1 = vld [vmem:[%s6182_s2 + $0x8] sm:$0xff]  ;;  %s5226_s18 = smov 96  }
  0x5f   :  { %v121_v2 = vld [vmem:[%s6182_s2 + $0x10] sm:$0xff]  ;;  %v4332_v3 = vpack.c.bf16 %v120_v1, %v119_v0  ;;  %v122_v4 = vld [vmem:[%s6182_s2 + $0x18] sm:$0xff]  ;;  %v115_v5 = vld [vmem:[%s6180_s0] sm:$0xff]  ;;  %s5227_s21 = smov 64   ;;  %vm317_vm2 = vcmask 1043456   ;;  %vm5228_vm3 = vmmov 1  }
  0x60   :  { %v4336_v6 = vpack.c.bf16 %v122_v4, %v121_v2  ;;  %4164 = vmatprep.mubr.msk.f32.mxu1 %vm130_vm0, %v115_v5  ;;  %v116_v7 = vld [vmem:[%s6180_s0 + $0x8] sm:$0xf]  ;;  %v3966_v8 = vld [vmem:[#allocation4] ss:$0 sm:$0xff]  ;;  %vm5403_vm1 = vmpackc.low %vm130_vm0, %vm130_vm0  ;;  %vm310_vm5 = vcmask 97280   ;;  %vm1225_vm6 = vcmask 253952  }
  0x61   :  { %4333 = vmatprep.subr.bf16.mxu1 %v4332_v3  ;;  %vm5411_vm4 = vmpackc.low %vm317_vm2, %vm5228_vm3  ;;  %v3976_v26 = vld [vmem:[%s6182_s2 + $0x20] sm:$0xff]  ;;  %v3977_v27 = vld [vmem:[%s6182_s2 + $0x28] sm:$0xff]  ;;  %vm1231_vm7 = vcmask 516352   ;;  %vm1096_vm8 = vcmask 523264   ;;  %vm5232_vm9 = vmmov 0   ;;  %vm3569_vm10 = vcmask 125952  }
  0x62   :  { %4335 = vmatpush3.bf16.msra.mxu1 %v4332_v3  ;;  %v4352_v28 = vpack.c.bf16 %v3977_v27, %v3976_v26  ;;  %v5429_v29 = vld [vmem:[%s6181_s1] sm:$0xff]  ;;  %v5434_v30 = vld [vmem:[%s6181_s1 + $0x8] sm:$0xf]  ;;  %v3978_v35 = vld [vmem:[%s6182_s2 + $0x30] sm:$0xff]  ;;  %vm3567_vm11 = vcmask 130048   ;;  %vm3592_vm12 = vcmask 257024  }
  0x63   :  { %4337 = vmatprep.subr.bf16.mxu1 %v4336_v6  ;;  %v3979_v36 = vld [vmem:[%s6182_s2 + $0x38] sm:$0xff]  ;;  %v3980_v42 = vld [vmem:[#allocation4 + $0x1] ss:$0 sm:$0xff]  ;;  %v3990_v58 = vld [vmem:[%s6182_s2 + $0x40] sm:$0xff]  ;;  %s5233_s30 = smov [#allocation14]  }
  0x64   :  { %v4356_v37 = vpack.c.bf16 %v3979_v36, %v3978_v35  ;;  %v3991_v59 = vld [vmem:[%s6182_s2 + $0x48] sm:$0xff]  ;;  %v3992_v1 = vld [vmem:[%s6182_s2 + $0x50] sm:$0xff]  ;;  %v3993_v2 = vld [vmem:[%s6182_s2 + $0x58] sm:$0xff]  ;;  %s3948_s16 = sshll.u32 %s5233_s30, 4  ;;  %s3949_s16 = int_to_ptr.vmem [resolvable:$true] %s3948_s16 }
  0x65   :  { %v4372_v60 = vpack.c.bf16 %v3991_v59, %v3990_v58  ;;  %v4376_v3 = vpack.c.bf16 %v3993_v2, %v3992_v1  ;;  %v957_v36 = vld [vmem:[%s6185_s5 + $0x20] sm:$0xff]  ;;  %s5163_s0 = scalar_lea.vmem %s3949_s16, 256  ;;  %p5168_p13 = scmp.lt.s32.totalorder %s3949_s16, %s3949_s16 }
  0x66   :  { %4339 = vmatpush3.bf16.msra.mxu1 %v4336_v6  ;;  %v977_v2 = vld [vmem:[%s6185_s5 + $0xc0] sm:$0xff]  ;;  %p5164_p12 = scmp.ne.s32.totalorder %s3949_s16, %s5163_s0  ;;  %p5169_p0 = scmp.lt.s32.totalorder %s5163_s0, %s5163_s0 }
  0x68   :  { %p5170_p1 = por %p5169_p0, %p5168_p13 }
  0x69   :  { %4165 = vmatmul.mubr.msk.f32.vlgmr.msra.gmra.mrb[0].mxu1 %vm130_vm0, %v116_v7 }
  0x6a   :  { %p5171_p2 = pnand %p5170_p1, %p5164_p12 }
 0x13c   :  { %v4166_v9 = vpop.f32.mrb[0].mxu1 }
 0x13d   :  { %v209_v10 = vadd.f32 %v4166_v9, %v3966_v8  ;;  %v203_v11 = vpop.f32.mrb[1].mxu1 }
 0x13e   :  { %v204_v12 = vadd.f32 %v3966_v8, %v203_v11  ;;  %v3994_v8 = vld [vmem:[#allocation4 + $0x2] ss:$0 sm:$0xff] }
 0x13f   :  { %v213_v13 = vmax.f32 %v209_v10, 0.0 }
 0x140   :  { %v212_v14 = vmax.f32 %v204_v12, 0.0 }
 0x142   :  { %4171 = vmatprep.mubr.msk.f32.mxu1 %vm130_vm0, %v212_v14  ;;  %v4767_v15 = vpack.i.bf16 %v213_v13, %v212_v14 }
 0x144   :  { %4768 = vrot.lane.b32.xlu0 %v4767_v15, %s5226_s18 }
 0x148   :  { %4773 = vrot.lane.b32.xlu0 %v4767_v15, %s5227_s21 }
 0x1b6   :  { %v4769_v16 = vpop.permute.xlu0 %4768 }
 0x1b7   :  { %v4771_v17 = vunpack.i.h.bf16 %v4769_v16  ;;  %v4770_v18 = vunpack.i.l.bf16 %v4769_v16 }
 0x1b9   :  { %v4340_v20 = vpack.c.bf16 %v4771_v17, %v4770_v18  ;;  %v954_v18 = vld [vmem:[%s6185_s5 + $0x8] sm:$0xff] }
 0x1ba   :  { %v4774_v21 = vpop.permute.xlu0 %4773 }
 0x1bb   :  { %4342 = vmatprep.subr.msk.bf16.mxu1 %vm5403_vm1, %v4340_v20  ;;  %v4776_v22 = vunpack.i.h.bf16 %v4774_v21  ;;  %v4775_v23 = vunpack.i.l.bf16 %v4774_v21 }
 0x1bc   :  { %4345 = vmatpush3.bf16.xpose.msk.msra.mxu1 %vm5403_vm1, %v4340_v20  ;;  %v956_v20 = vld [vmem:[%s6185_s5 + $0x18] sm:$0xff] }
 0x1bd   :  { %v4346_v25 = vpack.c.bf16 %v4776_v22, %v4775_v23  ;;  %4353 = vmatprep.subr.bf16.mxu1 %v4352_v28 }
 0x1bf   :  { %4348 = vmatprep.subr.msk.bf16.mxu0 %vm5411_vm4, %v4346_v25 }
 0x1c0   :  { %4351 = vmatpush3.bf16.msk.msra.mxu0 %vm5411_vm4, %v4346_v25 }
 0x1c3   :  { %4172 = vmatmul.mubr.msk.f32.vlgmr.msra.gmra.mrb[2].mxu1 %vm130_vm0, %v213_v13 }
 0x1c4   :  { %4355 = vmatpush3.bf16.msra.mxu1 %v4352_v28  ;;  %v4392_v28 = vpack.c.bf16 %v956_v20, %v954_v18  ;;  %v5229_v18 = vmov 0.0   ;;  %v951_v20 = vld [vmem:[%s6184_s4] sm:$0xff] }
 0x1c5   :  { %4357 = vmatprep.subr.bf16.mxu1 %v4356_v37 }
 0x1c8   :  { %4359 = vmatpush3.bf16.msra.mxu1 %v4356_v37  ;;  %v959_v37 = vld [vmem:[%s6185_s5 + $0x30] sm:$0xff] }
 0x296   :  { %v4173_v31 = vpop.f32.mrb[2].mxu1 }
 0x297   :  { %v294_v32 = vpop.f32.mrb[3].mxu1  ;;  %v304_v34 = vmul.f32 %v4173_v31, %v5434_v30  ;;  %v953_v31 = vld [vmem:[%s6185_s5] sm:$0xff] }
 0x298   :  { %v303_v33 = vmul.f32 %v294_v32, %v5429_v29  ;;  %v955_v32 = vld [vmem:[%s6185_s5 + $0x10] sm:$0xff] }
 0x299   :  { %v4394_v35 = vpack.c.bf16 %v955_v32, %v953_v31  ;;  %v1087_v32 = vld [vmem:[%s6187_s7 + $0x48] sm:$0xff] }
 0x29a   :  { %4178 = vmatprep.mubr.msk.f32.mxu0 %vm310_vm5, %v303_v33  ;;  %v958_v33 = vld [vmem:[%s6185_s5 + $0x28] sm:$0xff] }
 0x29b   :  { %4179 = vmatmul.mubr.msk.f32.vlgmr.msra.gmra.mrb[0].mxu0 %vm310_vm5, %v304_v34  ;;  %v960_v34 = vld [vmem:[%s6185_s5 + $0x38] sm:$0xff] }
 0x29c   :  { %v4396_v24 = vpack.c.bf16 %v960_v34, %v958_v33  ;;  %v1089_v33 = vld [vmem:[%s6187_s7 + $0x58] sm:$0xff] }
 0x29d   :  { %v5644_v34 = vpack.c.bf16 %v1089_v33, %v1087_v32 }
 0x36e   :  { %v4180_v38 = vpop.f32.mrb[0].mxu0 }
 0x36f   :  { %v386_v39 = vpop.f32.mrb[1].mxu0  ;;  %v396_v41 = vadd.f32 %v4180_v38, %v116_v7  ;;  %v962_v38 = vld [vmem:[%s6185_s5 + $0x48] sm:$0xff] }
 0x370   :  { %v395_v40 = vadd.f32 %v386_v39, %v115_v5  ;;  %v964_v39 = vld [vmem:[%s6185_s5 + $0x58] sm:$0xff] }
 0x372   :  { %4189 = vmatprep.mubr.msk.f32.mxu1 %vm130_vm0, %v395_v40 }
 0x373   :  { %4190 = vmatmul.mubr.msk.f32.vlgmr.msra.gmra.mrb[4].mxu1 %vm130_vm0, %v396_v41 }
 0x446   :  { %v4191_v43 = vpop.f32.mrb[4].mxu1 }
 0x447   :  { %v488_v44 = vadd.f32 %v4191_v43, %v3980_v42  ;;  %v482_v45 = vpop.f32.mrb[5].mxu1  ;;  %v963_v43 = vld [vmem:[%s6185_s5 + $0x50] sm:$0xff] }
 0x448   :  { %v483_v46 = vadd.f32 %v3980_v42, %v482_v45  ;;  %v961_v42 = vld [vmem:[%s6185_s5 + $0x40] sm:$0xff]  ;;  %v968_v45 = vld [vmem:[%s6185_s5 + $0x78] sm:$0xff] }
 0x449   :  { %v492_v47 = vmax.f32 %v488_v44, 0.0  ;;  %v966_v44 = vld [vmem:[%s6185_s5 + $0x68] sm:$0xff] }
 0x44a   :  { %v491_v48 = vmax.f32 %v483_v46, 0.0  ;;  %v4402_v46 = vpack.c.bf16 %v963_v43, %v961_v42 }
 0x44c   :  { %4196 = vmatprep.mubr.msk.f32.mxu0 %vm130_vm0, %v491_v48  ;;  %v4777_v49 = vpack.i.bf16 %v492_v47, %v491_v48  ;;  %v965_v48 = vld [vmem:[%s6185_s5 + $0x60] sm:$0xff] }
 0x44e   :  { %4778 = vrot.lane.b32.xlu1 %v4777_v49, %s5226_s18 }
 0x452   :  { %4783 = vrot.lane.b32.xlu1 %v4777_v49, %s5227_s21  ;;  %v967_v49 = vld [vmem:[%s6185_s5 + $0x70] sm:$0xff] }
 0x4c0   :  { %v4779_v50 = vpop.permute.xlu1 %4778 }
 0x4c1   :  { %v4781_v51 = vunpack.i.h.bf16 %v4779_v50  ;;  %v4780_v52 = vunpack.i.l.bf16 %v4779_v50  ;;  %v970_v50 = vld [vmem:[%s6185_s5 + $0x88] sm:$0xff] }
 0x4c3   :  { %v4360_v53 = vpack.c.bf16 %v4781_v51, %v4780_v52  ;;  %v972_v51 = vld [vmem:[%s6185_s5 + $0x98] sm:$0xff]  ;;  %v4406_v52 = vpack.c.bf16 %v967_v49, %v965_v48  ;;  %v985_v49 = vld [vmem:[%s6186_s6] sm:$0x3]  ;;  %s5230_s6 = smov 32  }
 0x4c4   :  { %v4784_v54 = vpop.permute.xlu1 %4783 }
 0x4c5   :  { %v4786_v55 = vunpack.i.h.bf16 %v4784_v54  ;;  %v4785_v56 = vunpack.i.l.bf16 %v4784_v54  ;;  %4362 = vmatprep.subr.msk.bf16.mxu0 %vm5403_vm1, %v4360_v53  ;;  %v969_v54 = vld [vmem:[%s6185_s5 + $0x80] sm:$0xff] }
 0x4c6   :  { %4365 = vmatpush3.bf16.xpose.msk.msra.mxu0 %vm5403_vm1, %v4360_v53  ;;  %v4408_v53 = vpack.c.bf16 %v972_v51, %v970_v50 }
 0x4c7   :  { %v4366_v57 = vpack.c.bf16 %v4786_v55, %v4785_v56  ;;  %4373 = vmatprep.subr.bf16.mxu0 %v4372_v60  ;;  %v971_v55 = vld [vmem:[%s6185_s5 + $0x90] sm:$0xff]  ;;  %v974_v56 = vld [vmem:[%s6185_s5 + $0xa8] sm:$0xff] }
 0x4c8   :  { %v4410_v58 = vpack.c.bf16 %v971_v55, %v969_v54 }
 0x4c9   :  { %4368 = vmatprep.subr.msk.bf16.mxu1 %vm5411_vm4, %v4366_v57 }
 0x4ca   :  { %4371 = vmatpush3.bf16.msk.msra.mxu1 %vm5411_vm4, %v4366_v57  ;;  %v976_v57 = vld [vmem:[%s6185_s5 + $0xb8] sm:$0xff] }
 0x4cb   :  { %v4412_v59 = vpack.c.bf16 %v976_v57, %v974_v56 }
 0x4cd   :  { %4197 = vmatmul.mubr.msk.f32.vlgmr.msra.gmra.mrb[2].mxu0 %vm130_vm0, %v492_v47  ;;  %v4404_v47 = vpack.c.bf16 %v968_v45, %v966_v44 }
 0x4ce   :  { %4375 = vmatpush3.bf16.msra.mxu0 %v4372_v60  ;;  %v973_v60 = vld [vmem:[%s6185_s5 + $0xa0] sm:$0xff] }
 0x4cf   :  { %4377 = vmatprep.subr.bf16.mxu0 %v4376_v3 }
 0x4d2   :  { %4379 = vmatpush3.bf16.msra.mxu0 %v4376_v3  ;;  %v979_v3 = vld [vmem:[%s6185_s5 + $0xd0] sm:$0xff] }
 0x5a0   :  { %v4198_v61 = vpop.f32.mrb[2].mxu0 }
 0x5a1   :  { %v573_v62 = vpop.f32.mrb[3].mxu0  ;;  %v583_v0 = vmul.f32 %v4198_v61, %v5434_v30  ;;  %v975_v61 = vld [vmem:[%s6185_s5 + $0xb0] sm:$0xff] }
 0x5a2   :  { %v582_v63 = vmul.f32 %v573_v62, %v5429_v29  ;;  %v978_v62 = vld [vmem:[%s6185_s5 + $0xc8] sm:$0xff] }
 0x5a4   :  { %4203 = vmatprep.mubr.msk.f32.mxu1 %vm310_vm5, %v582_v63  ;;  %v980_v63 = vld [vmem:[%s6185_s5 + $0xd8] sm:$0xff] }
 0x5a5   :  { %4204 = vmatmul.mubr.msk.f32.vlgmr.msra.gmra.mrb[6].mxu1 %vm310_vm5, %v583_v0  ;;  %v4414_v0 = vpack.c.bf16 %v975_v61, %v973_v60  ;;  %v4416_v1 = vpack.c.bf16 %v980_v63, %v978_v62 }
 0x678   :  { %v4205_v4 = vpop.f32.mrb[6].mxu1 }
 0x679   :  { %v663_v5 = vpop.f32.mrb[7].mxu1  ;;  %v5478_v7 = vadd.f32 %v4205_v4, %v396_v41  ;;  %v4400_v41 = vpack.c.bf16 %v964_v39, %v962_v38  ;;  %v4418_v4 = vpack.c.bf16 %v979_v3, %v977_v2  ;;  %v1093_v38 = vld [vmem:[%s6187_s7 + $0x78] sm:$0xff] }
 0x67a   :  { %v5476_v6 = vadd.f32 %v663_v5, %v395_v40  ;;  %v4398_v40 = vpack.c.bf16 %v959_v37, %v957_v36  ;;  %v982_v5 = vld [vmem:[%s6185_s5 + $0xe8] sm:$0xff] }
 0x67b   :  { %v1091_v37 = vld [vmem:[%s6187_s7 + $0x68] sm:$0xff] }
 0x67c   :  { %4214 = vmatprep.mubr.msk.f32.mxu0 %vm130_vm0, %v5476_v6  ;;  %v5662_v39 = vpack.c.bf16 %v1093_v38, %v1091_v37 }
 0x67d   :  { %4215 = vmatmul.mubr.msk.f32.vlgmr.msra.gmra.mrb[4].mxu0 %vm130_vm0, %v5478_v7 }
 0x750   :  { %v4216_v9 = vpop.f32.mrb[4].mxu0 }
 0x751   :  { %v765_v10 = vadd.f32 %v4216_v9, %v3994_v8  ;;  %v759_v11 = vpop.f32.mrb[5].mxu0 }
 0x752   :  { %v760_v12 = vadd.f32 %v3994_v8, %v759_v11  ;;  %v984_v8 = vld [vmem:[%s6185_s5 + $0xf8] sm:$0xff]  ;;  %v983_v11 = vld [vmem:[%s6185_s5 + $0xf0] sm:$0xff] }
 0x753   :  { %v769_v13 = vmax.f32 %v765_v10, 0.0  ;;  %v4420_v9 = vpack.c.bf16 %v984_v8, %v982_v5  ;;  %v981_v10 = vld [vmem:[%s6185_s5 + $0xe0] sm:$0xff] }
 0x754   :  { %v768_v14 = vmax.f32 %v760_v12, 0.0  ;;  %v4422_v12 = vpack.c.bf16 %v983_v11, %v981_v10 }
 0x756   :  { %4221 = vmatprep.mubr.msk.f32.mxu1 %vm130_vm0, %v768_v14  ;;  %v4792_v15 = vpack.i.bf16 %v769_v13, %v768_v14  ;;  %v1081_v14 = vld [vmem:[%s6187_s7 + $0x18] sm:$0xff] }
 0x758   :  { %4793 = vrot.lane.b32.xlu1 %v4792_v15, %s5227_s21  ;;  %4788 = vrot.lane.b32.xlu0 %v4792_v15, %s5226_s18 }
 0x7ca   :  { %v4794_v16 = vpop.permute.xlu1 %4793  ;;  %v4789_v17 = vpop.permute.xlu0 %4788 }
 0x7cb   :  { %v4796_v21 = vunpack.i.h.bf16 %v4794_v16  ;;  %v4795_v22 = vunpack.i.l.bf16 %v4794_v16  ;;  %v4791_v23 = vunpack.i.h.bf16 %v4789_v17  ;;  %v4790_v25 = vunpack.i.l.bf16 %v4789_v17  ;;  %v1078_v16 = vld [vmem:[%s6187_s7] sm:$0xff]  ;;  %v1080_v17 = vld [vmem:[%s6187_s7 + $0x10] sm:$0xff] }
 0x7cd   :  { %v4386_v26 = vpack.c.bf16 %v4796_v21, %v4795_v22  ;;  %v4380_v27 = vpack.c.bf16 %v4791_v23, %v4790_v25  ;;  %v5611_v21 = vpack.c.bf16 %v1080_v17, %v1078_v16  ;;  %v1083_v22 = vld [vmem:[%s6187_s7 + $0x28] sm:$0xff]  ;;  %v1085_v23 = vld [vmem:[%s6187_s7 + $0x38] sm:$0xff] }
 0x7ce   :  { %v5622_v25 = vpack.c.bf16 %v1085_v23, %v1083_v22 }
 0x7cf   :  { %4382 = vmatprep.subr.msk.bf16.mxu1 %vm5403_vm1, %v4380_v27  ;;  %4388 = vmatprep.subr.msk.bf16.mxu0 %vm5411_vm4, %v4386_v26 }
 0x7d0   :  { %4385 = vmatpush3.bf16.xpose.msk.msra.mxu1 %vm5403_vm1, %v4380_v27  ;;  %4391 = vmatpush3.bf16.msk.msra.mxu0 %vm5411_vm4, %v4386_v26  ;;  %v952_v26 = vld [vmem:[%s6184_s4 + $0x8] sm:$0xff]  ;;  %v1082_v27 = vld [vmem:[%s6187_s7 + $0x20] sm:$0xff] }
 0x7d1   :  { %4393 = vmatprep.subr.bf16.mxu1 %v4392_v28  ;;  %v1084_v28 = vld [vmem:[%s6187_s7 + $0x30] sm:$0xff] }
 0x7d2   :  { %v5633_v31 = vpack.c.bf16 %v1084_v28, %v1082_v27 }
 0x7d7   :  { %4222 = vmatmul.mubr.msk.f32.vlgmr.msra.gmra.mrb[8].mxu1 %vm130_vm0, %v769_v13  ;;  %v1079_v13 = vld [vmem:[%s6187_s7 + $0x8] sm:$0xff] }
 0x7d8   :  { %4395 = vmatpush1.bf16.msra.mxu1 %v4394_v35  ;;  %v5598_v15 = vpack.c.bf16 %v1081_v14, %v1079_v13  ;;  %1061 = vmatprep.mubr.f32.mxu1 %v5229_v18  ;;  %v1086_v35 = vld [vmem:[%s6187_s7 + $0x40] sm:$0xff] }
 0x7d9   :  { %4397 = vmatprep.subr.bf16.mxu1 %v4396_v24  ;;  %v1088_v24 = vld [vmem:[%s6187_s7 + $0x50] sm:$0xff] }
 0x7da   :  { %4425 = vmatprep.subr.bf16.mxu0 %v5598_v15  ;;  %v5652_v36 = vpack.c.bf16 %v1088_v24, %v1086_v35 }
 0x7dc   :  { %4399 = vmatpush1.bf16.msra.mxu1 %v4398_v40  ;;  %v1090_v40 = vld [vmem:[%s6187_s7 + $0x60] sm:$0xff] }
 0x7dd   :  { %4401 = vmatprep.subr.bf16.mxu1 %v4400_v41  ;;  %v1092_v41 = vld [vmem:[%s6187_s7 + $0x70] sm:$0xff] }
 0x7de   :  { %v5670_v42 = vpack.c.bf16 %v1092_v41, %v1090_v40 }
 0x7e0   :  { %4403 = vmatpush1.bf16.msra.mxu1 %v4402_v46 }
 0x7e1   :  { %4405 = vmatprep.subr.bf16.mxu1 %v4404_v47 }
 0x7e4   :  { %4407 = vmatpush1.bf16.msra.mxu1 %v4406_v52 }
 0x7e5   :  { %4409 = vmatprep.subr.bf16.mxu1 %v4408_v53 }
 0x7e8   :  { %4411 = vmatpush1.bf16.msra.mxu1 %v4410_v58 }
 0x7e9   :  { %4413 = vmatprep.subr.bf16.mxu1 %v4412_v59 }
 0x7ec   :  { %4415 = vmatpush1.bf16.msra.mxu1 %v4414_v0 }
 0x7ed   :  { %4417 = vmatprep.subr.bf16.mxu1 %v4416_v1 }
 0x7f0   :  { %4419 = vmatpush1.bf16.msra.mxu1 %v4418_v4 }
 0x7f1   :  { %4421 = vmatprep.subr.bf16.mxu1 %v4420_v9 }
 0x7f4   :  { %4423 = vmatpush1.bf16.msra.mxu1 %v4422_v12 }
 0x7f5   :  { %4457 = vmatprep.subr.bf16.mxu1 %v5598_v15 }
 0x7f7   :  { %1062 = vmatmul.mubr.f32.vlgmr.msra.gmra.mrb[10].mxu1 %v951_v20 }
 0x7f8   :  { %1067 = vmatprep.mubr.f32.mxu1 %v5229_v18  ;;  %4459 = vmatpush1.bf16.msra.mxu1 %v5611_v21 }
 0x7f9   :  { %4461 = vmatprep.subr.bf16.mxu1 %v5622_v25 }
 0x7fb   :  { %1068 = vmatmul.mubr.f32.gmra.mrb[12].mxu1 %v952_v26 }
 0x7fc   :  { %4463 = vmatpush1.bf16.msra.mxu1 %v5633_v31  ;;  %1440 = vmatprep.mubr.f32.mxu1 %v5229_v18 }
 0x7fd   :  { %4465 = vmatprep.subr.bf16.mxu1 %v5644_v34 }
 0x800   :  { %4467 = vmatpush1.bf16.msra.mxu1 %v5652_v36 }
 0x801   :  { %4469 = vmatprep.subr.bf16.mxu1 %v5662_v39 }
 0x804   :  { %4471 = vmatpush1.bf16.msra.mxu1 %v5670_v42 }
 0x805   :  { %4489 = vmatprep.subr.bf16.mxu1 %v5598_v15 }
 0x8aa   :  { %v4223_v43 = vpop.f32.mrb[8].mxu1 }
 0x8ab   :  { %v850_v44 = vpop.f32.mrb[9].mxu1  ;;  %v860_v46 = vmul.f32 %v4223_v43, %v5434_v30 }
 0x8ac   :  { %v859_v45 = vmul.f32 %v850_v44, %v5429_v29  ;;  %v987_v29 = vlaneseq }
 0x8ae   :  { %4228 = vmatprep.mubr.msk.f32.mxu0 %vm310_vm5, %v859_v45  ;;  %v988_v30 = vshrl.u32 %v987_v29, 7 }
 0x8af   :  { %4229 = vmatmul.mubr.msk.f32.vlgmr.msra.gmra.mrb[6].mxu0 %vm310_vm5, %v860_v46 }
 0x8b0   :  { %4427 = vmatpush1.bf16.msra.mxu0 %v5611_v21  ;;  %1164 = vmatprep.mubr.f32.mxu0 %v5229_v18  ;;  %v989_v47 = vsub.s32 0, %v988_v30  ;;  %v993_v48 = vsub.s32 1, %v988_v30 }
 0x8b1   :  { %4429 = vmatprep.subr.bf16.mxu0 %v5622_v25 }
 0x8b2   :  { %v990_v50 = vrot.slane %v985_v49, %v989_v47  ;;  %v994_v52 = vrot.slane %v985_v49, %v993_v48 }
 0x8b4   :  { %4431 = vmatpush1.bf16.msra.mxu0 %v5633_v31 }
 0x8b5   :  { %4433 = vmatprep.subr.bf16.mxu0 %v5644_v34 }
 0x8b8   :  { %4435 = vmatpush1.bf16.msra.mxu0 %v5652_v36 }
 0x8b9   :  { %4437 = vmatprep.subr.bf16.mxu0 %v5662_v39 }
 0x8bc   :  { %4439 = vmatpush1.bf16.msra.mxu0 %v5670_v42 }
 0x8bd   :  { %4441 = vmatprep.subr.bf16.mxu0 %v5598_v15 }
 0x8bf   :  { %1165 = vmatmul.mubr.f32.vlgmr.msra.gmra.mrb[8].mxu0 %v5229_v18 }
 0x8c0   :  { %4443 = vmatpush1.bf16.msra.mxu0 %v5611_v21  ;;  %1303 = vmatprep.mubr.f32.mxu0 %v5229_v18 }
 0x8c1   :  { %4445 = vmatprep.subr.bf16.mxu0 %v5622_v25 }
 0x8c4   :  { %4447 = vmatpush1.bf16.msra.mxu0 %v5633_v31 }
 0x8c5   :  { %4449 = vmatprep.subr.bf16.mxu0 %v5644_v34 }
 0x8c8   :  { %4451 = vmatpush1.bf16.msra.mxu0 %v5652_v36 }
 0x8c9   :  { %4453 = vmatprep.subr.bf16.mxu0 %v5662_v39 }
 0x8ca   :  { %v1063_v51 = vpop.f32.mrb[10].mxu1 }
 0x8cb   :  { %v1065_v53 = vpop.f32.mrb[11].mxu1  ;;  %v1064_v54 = vadd.f32 %v1063_v51, %v990_v50 }
 0x8cc   :  { %4455 = vmatpush1.bf16.msra.mxu0 %v5670_v42  ;;  %v1066_v55 = vadd.f32 %v1065_v53, %v994_v52 }
 0x8cd   :  { %4473 = vmatprep.subr.bf16.mxu0 %v5598_v15  ;;  %1074 = vst [vmem:[#allocation2] sm:$0xff] %v1064_v54 }
 0x8ce   :  { %v1069_v56 = vpop.f32.mrb[12].mxu1  ;;  %1075 = vst [vmem:[#allocation2 + $0x8] sm:$0xff] %v1066_v55 }
 0x8cf   :  { %v1070_v57 = vadd.f32 %v1069_v56, %v990_v50  ;;  %v1071_v58 = vpop.f32.mrb[13].mxu1 }
 0x8d0   :  { %v1072_v59 = vadd.f32 %v1071_v58, %v994_v52 }
 0x8d1   :  { %1076 = vst [vmem:[#allocation2 + $0x10] sm:$0xff] %v1070_v57 }
 0x8d2   :  { %1077 = vst [vmem:[#allocation2 + $0x18] sm:$0xff] %v1072_v59 }
 0x8d4   :  { %v1094_v63 = vld [vmem:[#allocation2] ss:$0 sm:$0xff]  ;;  %v1234_v29 = vld [vmem:[#allocation2 + $0x1] ss:$0 sm:$0xff] }
 0x8d9   :  { %v1095_v62 = vld [vmem:[#allocation2 + $0x1f] ss:$0 sm:$0xff]  ;;  %v1235_v48 = vld [vmem:[#allocation2 + $0x1e] ss:$0 sm:$0xff] }
 0x982   :  { %v5701_v60 = vpop.f32.mrb[6].mxu0 }
 0x983   :  { %v5703_v61 = vpop.f32.mrb[7].mxu0 }
 0x992   :  { %v1166_v0 = vpop.f32.mrb[8].mxu0 }
 0x993   :  { %v1171_v1 = vadd.f32 %v1166_v0, %v1094_v63  ;;  %v1168_v2 = vpop.f32.mrb[9].mxu0 }
 0x994   :  { %v1172_v3 = vadd.f32 %v1168_v2, %v1095_v62 }
 0x995   :  { %4797 = vtanh.f32 %v1171_v1  ;;  %v4004_v8 = vmul.f32 -1.442695, %v1171_v1 }
 0x996   :  { %4799 = vtanh.f32 %v1172_v3  ;;  %v4005_v9 = vmul.f32 -1.442695, %v1172_v3 }
 0x997   :  { %4801 = vpow2.f32 %v4004_v8 }
 0x998   :  { %4803 = vpow2.f32 %v4005_v9 }
 0x99f   :  { %v4798_v4 = vpop.eup %4797 }
 0x9a0   :  { %v4800_v5 = vpop.eup %4799  ;;  %1189 = vrot.lane.b32.xlu0 %v4798_v4, %s5227_s21 }
 0x9a1   :  { %1200 = vrot.lane.b32.xlu1 %v4800_v5, %s5227_s21  ;;  %v4802_v10 = vpop.eup %4801 }
 0x9a2   :  { %v4804_v11 = vpop.eup %4803  ;;  %v1179_v12 = vadd.f32 1.0, %v4802_v10 }
 0x9a3   :  { %v1180_v13 = vadd.f32 1.0, %v4804_v11 }
 0x9a4   :  { %4805 = vrcp.f32 %v1179_v12 }
 0x9a5   :  { %4807 = vrcp.f32 %v1180_v13 }
 0x9ae   :  { %v4806_v14 = vpop.eup %4805 }
 0x9af   :  { %v4808_v17 = vpop.eup %4807  ;;  %v1187_v26 = vmul.f32 0.0, %v4806_v14 }
 0x9b0   :  { %v1198_v28 = vmul.f32 0.0, %v4808_v17 }
 0xa12   :  { %v1190_v16 = vpop.permute.xlu0 %1189 }
 0xa13   :  { %v1192_v20 = vmul.f32 %v4806_v14, %v1190_v16  ;;  %v1201_v22 = vpop.permute.xlu1 %1200 }
 0xa14   :  { %v1203_v23 = vmul.f32 %v4808_v17, %v1201_v22 }
 0xa15   :  { %1194 = vrot.lane.b32.xlu0 %v1192_v20, %s5230_s6 }
 0xa16   :  { %1205 = vrot.lane.b32.xlu1 %v1203_v23, %s5230_s6 }
 0xa87   :  { %v1195_v27 = vpop.permute.xlu0 %1194 }
 0xa88   :  { %v5709_v32 = vadd.f32 %v1195_v27, %v1187_v26  ;;  %v1206_v33 = vpop.permute.xlu1 %1205  ;;  %v1371_v26 = vld [vmem:[#allocation2 + $0x2] ss:$0 sm:$0xff] }
 0xa89   :  { %v5711_v35 = vadd.f32 %v1206_v33, %v1198_v28 }
 0xa8a   :  { %4809 = vtanh.f32 %v5709_v32 }
 0xa8b   :  { %4811 = vtanh.f32 %v5711_v35 }
 0xa94   :  { %v4810_v24 = vpop.eup %4809 }
 0xa95   :  { %v4812_v37 = vpop.eup %4811  ;;  %1211 = vrot.lane.b32.xlu0 %v4810_v24, %s5227_s21 }
 0xa96   :  { %1217 = vrot.lane.b32.xlu1 %v4812_v37, %s5227_s21 }
 0xb07   :  { %v1212_v38 = vpop.permute.xlu0 %1211 }
 0xb08   :  { %v1214_v40 = vmul.f32 %v4806_v14, %v1212_v38  ;;  %v1218_v41 = vpop.permute.xlu1 %1217 }
 0xb09   :  { %v1220_v43 = vmul.f32 %v4808_v17, %v1218_v41 }
 0xb0a   :  { %1222 = vrot.lane.b32.xlu0 %v1214_v40, %s5230_s6 }
 0xb0b   :  { %1228 = vrot.lane.b32.xlu1 %v1220_v43, %s5227_s21 }
 0xb7c   :  { %v1223_v44 = vpop.permute.xlu0 %1222 }
 0xb7d   :  { %1226 = vst.msk [vmem:[#allocation3] sm:$0x1] %vm1225_vm6, %v1223_v44  ;;  %v1229_v45 = vpop.permute.xlu1 %1228 }
 0xb7e   :  { %1232 = vst.msk [vmem:[#allocation3 + $0xf] sm:$0x1] %vm1231_vm7, %v1229_v45  ;;  %v1233_v46 = vsel %vm130_vm0, %v1223_v44, %v1229_v45 }
 0xb7f   :  { %4006 = vmatmul.mubr.msk.f32.vlgmr.msra.gmra.mrb[10].mxu0 %vm1096_vm8, %v1233_v46 }
 0xb80   :  { %4475 = vmatpush1.bf16.msra.mxu0 %v5611_v21  ;;  %1577 = vmatprep.mubr.f32.mxu0 %v5229_v18 }
 0xb81   :  { %4477 = vmatprep.subr.bf16.mxu0 %v5622_v25 }
 0xb84   :  { %4479 = vmatpush1.bf16.msra.mxu0 %v5633_v31 }
 0xb85   :  { %4481 = vmatprep.subr.bf16.mxu0 %v5644_v34 }
 0xb88   :  { %4483 = vmatpush1.bf16.msra.mxu0 %v5652_v36 }
 0xb89   :  { %4485 = vmatprep.subr.bf16.mxu0 %v5662_v39 }
 0xb8c   :  { %4487 = vmatpush1.bf16.msra.mxu0 %v5670_v42 }
 0xb8d   :  { %4505 = vmatprep.subr.bf16.mxu0 %v5598_v15 }
 0xc52   :  { %v1305_v30 = vpop.f32.mrb[10].mxu0 }
 0xc53   :  { %v1310_v47 = vadd.f32 %v1305_v30, %v1234_v29  ;;  %v1307_v49 = vpop.f32.mrb[11].mxu0 }
 0xc54   :  { %v1311_v50 = vadd.f32 %v1307_v49, %v1235_v48 }
 0xc55   :  { %4813 = vtanh.f32 %v1310_v47  ;;  %v4007_v53 = vmul.f32 -1.442695, %v1310_v47 }
 0xc56   :  { %4815 = vtanh.f32 %v1311_v50  ;;  %v4008_v54 = vmul.f32 -1.442695, %v1311_v50 }
 0xc57   :  { %4817 = vpow2.f32 %v4007_v53 }
 0xc58   :  { %4819 = vpow2.f32 %v4008_v54 }
 0xc5f   :  { %v4814_v51 = vpop.eup %4813 }
 0xc60   :  { %v4816_v52 = vpop.eup %4815  ;;  %1328 = vrot.lane.b32.xlu0 %v4814_v51, %s5227_s21 }
 0xc61   :  { %1339 = vrot.lane.b32.xlu1 %v4816_v52, %s5227_s21  ;;  %v4818_v55 = vpop.eup %4817 }
 0xc62   :  { %v4820_v56 = vpop.eup %4819  ;;  %v1318_v57 = vadd.f32 1.0, %v4818_v55 }
 0xc63   :  { %v1319_v58 = vadd.f32 1.0, %v4820_v56 }
 0xc64   :  { %4821 = vrcp.f32 %v1318_v57 }
 0xc65   :  { %4823 = vrcp.f32 %v1319_v58 }
 0xc6e   :  { %v4822_v59 = vpop.eup %4821 }
 0xc6f   :  { %v4824_v63 = vpop.eup %4823  ;;  %v1326_v3 = vmul.f32 %v4822_v59, %v5709_v32  ;;  %v1372_v32 = vld [vmem:[#allocation2 + $0x1d] ss:$0 sm:$0xff] }
 0xc70   :  { %v1337_v5 = vmul.f32 %v4824_v63, %v5711_v35 }
 0xcd2   :  { %v1329_v62 = vpop.permute.xlu0 %1328 }
 0xcd3   :  { %v1331_v0 = vmul.f32 %v4822_v59, %v1329_v62  ;;  %v1340_v1 = vpop.permute.xlu1 %1339 }
 0xcd4   :  { %v1342_v2 = vmul.f32 %v4824_v63, %v1340_v1 }
 0xcd5   :  { %1333 = vrot.lane.b32.xlu0 %v1331_v0, %s5230_s6 }
 0xcd6   :  { %1344 = vrot.lane.b32.xlu1 %v1342_v2, %s5230_s6 }
 0xd47   :  { %v1334_v4 = vpop.permute.xlu0 %1333 }
 0xd48   :  { %v1336_v8 = vadd.f32 %v1334_v4, %v1326_v3  ;;  %v1345_v9 = vpop.permute.xlu1 %1344  ;;  %v1508_v3 = vld [vmem:[#allocation2 + $0x3] ss:$0 sm:$0xff] }
 0xd49   :  { %v1347_v10 = vadd.f32 %v1345_v9, %v1337_v5 }
 0xd4a   :  { %4825 = vtanh.f32 %v1336_v8 }
 0xd4b   :  { %4827 = vtanh.f32 %v1347_v10 }
 0xd54   :  { %v4826_v11 = vpop.eup %4825 }
 0xd55   :  { %v4828_v12 = vpop.eup %4827  ;;  %1350 = vrot.lane.b32.xlu0 %v4826_v11, %s5227_s21 }
 0xd56   :  { %1356 = vrot.lane.b32.xlu1 %v4828_v12, %s5227_s21 }
 0xdc7   :  { %v1351_v13 = vpop.permute.xlu0 %1350 }
 0xdc8   :  { %v1353_v14 = vmul.f32 %v4822_v59, %v1351_v13  ;;  %v1357_v16 = vpop.permute.xlu1 %1356 }
 0xdc9   :  { %v1359_v17 = vmul.f32 %v4824_v63, %v1357_v16 }
 0xdca   :  { %1361 = vrot.lane.b32.xlu0 %v1353_v14, %s5230_s6 }
 0xdcb   :  { %1366 = vrot.lane.b32.xlu1 %v1359_v17, %s5227_s21 }
 0xe3c   :  { %v1362_v20 = vpop.permute.xlu0 %1361 }
 0xe3d   :  { %1364 = vst.msk [vmem:[#allocation3 + $0x1] sm:$0x1] %vm1225_vm6, %v1362_v20  ;;  %v1367_v22 = vpop.permute.xlu1 %1366 }
 0xe3e   :  { %1369 = vst.msk [vmem:[#allocation3 + $0xe] sm:$0x1] %vm1231_vm7, %v1367_v22  ;;  %v1370_v23 = vsel %vm130_vm0, %v1362_v20, %v1367_v22 }
 0xe3f   :  { %4009 = vmatmul.mubr.msk.f32.vlgmr.msra.gmra.mrb[14].mxu1 %vm1096_vm8, %v1370_v23 }
 0xe40   :  { %4491 = vmatpush1.bf16.msra.mxu1 %v5611_v21  ;;  %1714 = vmatprep.mubr.f32.mxu1 %v5229_v18 }
 0xe41   :  { %4493 = vmatprep.subr.bf16.mxu1 %v5622_v25 }
 0xe44   :  { %4495 = vmatpush1.bf16.msra.mxu1 %v5633_v31 }
 0xe45   :  { %4497 = vmatprep.subr.bf16.mxu1 %v5644_v34 }
 0xe48   :  { %4499 = vmatpush1.bf16.msra.mxu1 %v5652_v36 }
 0xe49   :  { %4501 = vmatprep.subr.bf16.mxu1 %v5662_v39 }
 0xe4c   :  { %4503 = vmatpush1.bf16.msra.mxu1 %v5670_v42 }
 0xe4d   :  { %4521 = vmatprep.subr.bf16.mxu1 %v5598_v15 }
 0xf12   :  { %v1442_v27 = vpop.f32.mrb[14].mxu1 }
 0xf13   :  { %v1447_v28 = vadd.f32 %v1442_v27, %v1371_v26  ;;  %v1444_v33 = vpop.f32.mrb[15].mxu1 }
 0xf14   :  { %v1448_v35 = vadd.f32 %v1444_v33, %v1372_v32 }
 0xf15   :  { %4829 = vtanh.f32 %v1447_v28  ;;  %v4010_v38 = vmul.f32 -1.442695, %v1447_v28 }
 0xf16   :  { %4831 = vtanh.f32 %v1448_v35  ;;  %v4011_v40 = vmul.f32 -1.442695, %v1448_v35 }
 0xf17   :  { %4833 = vpow2.f32 %v4010_v38 }
 0xf18   :  { %4835 = vpow2.f32 %v4011_v40 }
 0xf1f   :  { %v4830_v24 = vpop.eup %4829 }
 0xf20   :  { %v4832_v37 = vpop.eup %4831  ;;  %1465 = vrot.lane.b32.xlu0 %v4830_v24, %s5227_s21 }
 0xf21   :  { %1476 = vrot.lane.b32.xlu1 %v4832_v37, %s5227_s21  ;;  %v4834_v41 = vpop.eup %4833 }
 0xf22   :  { %v4836_v43 = vpop.eup %4835  ;;  %v1455_v44 = vadd.f32 1.0, %v4834_v41 }
 0xf23   :  { %v1456_v45 = vadd.f32 1.0, %v4836_v43 }
 0xf24   :  { %4837 = vrcp.f32 %v1455_v44 }
 0xf25   :  { %4839 = vrcp.f32 %v1456_v45 }
 0xf2e   :  { %v4838_v46 = vpop.eup %4837 }
 0xf2f   :  { %v4840_v30 = vpop.eup %4839  ;;  %v1463_v50 = vmul.f32 %v4838_v46, %v1336_v8  ;;  %v1509_v8 = vld [vmem:[#allocation2 + $0x1c] ss:$0 sm:$0xff] }
 0xf30   :  { %v1474_v52 = vmul.f32 %v4840_v30, %v1347_v10 }
 0xf92   :  { %v1466_v29 = vpop.permute.xlu0 %1465 }
 0xf93   :  { %v1468_v47 = vmul.f32 %v4838_v46, %v1466_v29  ;;  %v1477_v48 = vpop.permute.xlu1 %1476 }
 0xf94   :  { %v1479_v49 = vmul.f32 %v4840_v30, %v1477_v48 }
 0xf95   :  { %1470 = vrot.lane.b32.xlu0 %v1468_v47, %s5230_s6 }
 0xf96   :  { %1481 = vrot.lane.b32.xlu1 %v1479_v49, %s5230_s6 }
0x1007   :  { %v1471_v51 = vpop.permute.xlu0 %1470 }
0x1008   :  { %v1473_v53 = vadd.f32 %v1471_v51, %v1463_v50  ;;  %v1482_v54 = vpop.permute.xlu1 %1481  ;;  %v1645_v50 = vld [vmem:[#allocation2 + $0x4] ss:$0 sm:$0xff] }
0x1009   :  { %v1484_v55 = vadd.f32 %v1482_v54, %v1474_v52 }
0x100a   :  { %4841 = vtanh.f32 %v1473_v53 }
0x100b   :  { %4843 = vtanh.f32 %v1484_v55 }
0x1014   :  { %v4842_v56 = vpop.eup %4841 }
0x1015   :  { %v4844_v57 = vpop.eup %4843  ;;  %1487 = vrot.lane.b32.xlu0 %v4842_v56, %s5227_s21 }
0x1016   :  { %1493 = vrot.lane.b32.xlu1 %v4844_v57, %s5227_s21 }
0x1087   :  { %v1488_v58 = vpop.permute.xlu0 %1487 }
0x1088   :  { %v1490_v59 = vmul.f32 %v4838_v46, %v1488_v58  ;;  %v1494_v62 = vpop.permute.xlu1 %1493 }
0x1089   :  { %v1496_v63 = vmul.f32 %v4840_v30, %v1494_v62 }
0x108a   :  { %1498 = vrot.lane.b32.xlu0 %v1490_v59, %s5230_s6 }
0x108b   :  { %1503 = vrot.lane.b32.xlu1 %v1496_v63, %s5227_s21 }
0x10fc   :  { %v1499_v0 = vpop.permute.xlu0 %1498 }
0x10fd   :  { %1501 = vst.msk [vmem:[#allocation3 + $0x2] sm:$0x1] %vm1225_vm6, %v1499_v0  ;;  %v1504_v1 = vpop.permute.xlu1 %1503 }
0x10fe   :  { %1506 = vst.msk [vmem:[#allocation3 + $0xd] sm:$0x1] %vm1231_vm7, %v1504_v1  ;;  %v1507_v2 = vsel %vm130_vm0, %v1499_v0, %v1504_v1 }
0x10ff   :  { %4012 = vmatmul.mubr.msk.f32.vlgmr.msra.gmra.mrb[12].mxu0 %vm1096_vm8, %v1507_v2 }
0x1100   :  { %4507 = vmatpush1.bf16.msra.mxu0 %v5611_v21  ;;  %1851 = vmatprep.mubr.f32.mxu0 %v5229_v18 }
0x1101   :  { %4509 = vmatprep.subr.bf16.mxu0 %v5622_v25 }
0x1104   :  { %4511 = vmatpush1.bf16.msra.mxu0 %v5633_v31 }
0x1105   :  { %4513 = vmatprep.subr.bf16.mxu0 %v5644_v34 }
0x1108   :  { %4515 = vmatpush1.bf16.msra.mxu0 %v5652_v36 }
0x1109   :  { %4517 = vmatprep.subr.bf16.mxu0 %v5662_v39 }
0x110c   :  { %4519 = vmatpush1.bf16.msra.mxu0 %v5670_v42 }
0x110d   :  { %4537 = vmatprep.subr.bf16.mxu0 %v5598_v15 }
0x11d2   :  { %v1579_v4 = vpop.f32.mrb[12].mxu0 }
0x11d3   :  { %v1584_v5 = vadd.f32 %v1579_v4, %v1508_v3  ;;  %v1581_v9 = vpop.f32.mrb[13].mxu0 }
0x11d4   :  { %v1585_v10 = vadd.f32 %v1581_v9, %v1509_v8 }
0x11d5   :  { %4845 = vtanh.f32 %v1584_v5  ;;  %v4013_v13 = vmul.f32 -1.442695, %v1584_v5 }
0x11d6   :  { %4847 = vtanh.f32 %v1585_v10  ;;  %v4014_v14 = vmul.f32 -1.442695, %v1585_v10 }
0x11d7   :  { %4849 = vpow2.f32 %v4013_v13 }
0x11d8   :  { %4851 = vpow2.f32 %v4014_v14 }
0x11df   :  { %v4846_v11 = vpop.eup %4845 }
0x11e0   :  { %v4848_v12 = vpop.eup %4847  ;;  %1602 = vrot.lane.b32.xlu0 %v4846_v11, %s5227_s21 }
0x11e1   :  { %1613 = vrot.lane.b32.xlu1 %v4848_v12, %s5227_s21  ;;  %v4850_v16 = vpop.eup %4849 }
0x11e2   :  { %v4852_v17 = vpop.eup %4851  ;;  %v1592_v20 = vadd.f32 1.0, %v4850_v16 }
0x11e3   :  { %v1593_v22 = vadd.f32 1.0, %v4852_v17 }
0x11e4   :  { %4853 = vrcp.f32 %v1592_v20 }
0x11e5   :  { %4855 = vrcp.f32 %v1593_v22 }
0x11ee   :  { %v4854_v23 = vpop.eup %4853 }
0x11ef   :  { %v4856_v27 = vpop.eup %4855  ;;  %v1600_v35 = vmul.f32 %v4854_v23, %v1473_v53  ;;  %v1646_v53 = vld [vmem:[#allocation2 + $0x1b] ss:$0 sm:$0xff] }
0x11f0   :  { %v1611_v37 = vmul.f32 %v4856_v27, %v1484_v55 }
0x1252   :  { %v1603_v26 = vpop.permute.xlu0 %1602 }
0x1253   :  { %v1605_v28 = vmul.f32 %v4854_v23, %v1603_v26  ;;  %v1614_v32 = vpop.permute.xlu1 %1613 }
0x1254   :  { %v1616_v33 = vmul.f32 %v4856_v27, %v1614_v32 }
0x1255   :  { %1607 = vrot.lane.b32.xlu0 %v1605_v28, %s5230_s6 }
0x1256   :  { %1618 = vrot.lane.b32.xlu1 %v1616_v33, %s5230_s6 }
0x12c7   :  { %v1608_v24 = vpop.permute.xlu0 %1607 }
0x12c8   :  { %v1610_v38 = vadd.f32 %v1608_v24, %v1600_v35  ;;  %v1619_v40 = vpop.permute.xlu1 %1618  ;;  %v1782_v35 = vld [vmem:[#allocation2 + $0x5] ss:$0 sm:$0xff] }
0x12c9   :  { %v1621_v41 = vadd.f32 %v1619_v40, %v1611_v37 }
0x12ca   :  { %4857 = vtanh.f32 %v1610_v38 }
0x12cb   :  { %4859 = vtanh.f32 %v1621_v41 }
0x12d4   :  { %v4858_v43 = vpop.eup %4857 }
0x12d5   :  { %v4860_v44 = vpop.eup %4859  ;;  %1624 = vrot.lane.b32.xlu0 %v4858_v43, %s5227_s21 }
0x12d6   :  { %1630 = vrot.lane.b32.xlu1 %v4860_v44, %s5227_s21 }
0x1347   :  { %v1625_v45 = vpop.permute.xlu0 %1624 }
0x1348   :  { %v1627_v46 = vmul.f32 %v4854_v23, %v1625_v45  ;;  %v1631_v29 = vpop.permute.xlu1 %1630 }
0x1349   :  { %v1633_v30 = vmul.f32 %v4856_v27, %v1631_v29 }
0x134a   :  { %1635 = vrot.lane.b32.xlu0 %v1627_v46, %s5230_s6 }
0x134b   :  { %1640 = vrot.lane.b32.xlu1 %v1633_v30, %s5227_s21 }
0x13bc   :  { %v1636_v47 = vpop.permute.xlu0 %1635 }
0x13bd   :  { %1638 = vst.msk [vmem:[#allocation3 + $0x3] sm:$0x1] %vm1225_vm6, %v1636_v47  ;;  %v1641_v48 = vpop.permute.xlu1 %1640 }
0x13be   :  { %1643 = vst.msk [vmem:[#allocation3 + $0xc] sm:$0x1] %vm1231_vm7, %v1641_v48  ;;  %v1644_v49 = vsel %vm130_vm0, %v1636_v47, %v1641_v48 }
0x13bf   :  { %4015 = vmatmul.mubr.msk.f32.vlgmr.msra.gmra.mrb[16].mxu1 %vm1096_vm8, %v1644_v49 }
0x13c0   :  { %4523 = vmatpush1.bf16.msra.mxu1 %v5611_v21  ;;  %1988 = vmatprep.mubr.f32.mxu1 %v5229_v18 }
0x13c1   :  { %4525 = vmatprep.subr.bf16.mxu1 %v5622_v25 }
0x13c4   :  { %4527 = vmatpush1.bf16.msra.mxu1 %v5633_v31 }
0x13c5   :  { %4529 = vmatprep.subr.bf16.mxu1 %v5644_v34 }
0x13c8   :  { %4531 = vmatpush1.bf16.msra.mxu1 %v5652_v36 }
0x13c9   :  { %4533 = vmatprep.subr.bf16.mxu1 %v5662_v39 }
0x13cc   :  { %4535 = vmatpush1.bf16.msra.mxu1 %v5670_v42 }
0x13cd   :  { %4553 = vmatprep.subr.bf16.mxu1 %v5598_v15 }
0x1492   :  { %v1716_v51 = vpop.f32.mrb[16].mxu1 }
0x1493   :  { %v1721_v52 = vadd.f32 %v1716_v51, %v1645_v50  ;;  %v1718_v54 = vpop.f32.mrb[17].mxu1 }
0x1494   :  { %v1722_v55 = vadd.f32 %v1718_v54, %v1646_v53 }
0x1495   :  { %4861 = vtanh.f32 %v1721_v52  ;;  %v4016_v58 = vmul.f32 -1.442695, %v1721_v52 }
0x1496   :  { %4863 = vtanh.f32 %v1722_v55  ;;  %v4017_v59 = vmul.f32 -1.442695, %v1722_v55 }
0x1497   :  { %4865 = vpow2.f32 %v4016_v58 }
0x1498   :  { %4867 = vpow2.f32 %v4017_v59 }
0x149f   :  { %v4862_v56 = vpop.eup %4861 }
0x14a0   :  { %v4864_v57 = vpop.eup %4863  ;;  %1739 = vrot.lane.b32.xlu0 %v4862_v56, %s5227_s21 }
0x14a1   :  { %1750 = vrot.lane.b32.xlu1 %v4864_v57, %s5227_s21  ;;  %v4866_v62 = vpop.eup %4865 }
0x14a2   :  { %v4868_v63 = vpop.eup %4867  ;;  %v1729_v0 = vadd.f32 1.0, %v4866_v62 }
0x14a3   :  { %v1730_v1 = vadd.f32 1.0, %v4868_v63 }
0x14a4   :  { %4869 = vrcp.f32 %v1729_v0 }
0x14a5   :  { %4871 = vrcp.f32 %v1730_v1 }
0x14ae   :  { %v4870_v2 = vpop.eup %4869 }
0x14af   :  { %v4872_v4 = vpop.eup %4871  ;;  %v1737_v10 = vmul.f32 %v4870_v2, %v1610_v38  ;;  %v1783_v38 = vld [vmem:[#allocation2 + $0x1a] ss:$0 sm:$0xff] }
0x14b0   :  { %v1748_v12 = vmul.f32 %v4872_v4, %v1621_v41 }
0x1512   :  { %v1740_v3 = vpop.permute.xlu0 %1739 }
0x1513   :  { %v1742_v5 = vmul.f32 %v4870_v2, %v1740_v3  ;;  %v1751_v8 = vpop.permute.xlu1 %1750 }
0x1514   :  { %v1753_v9 = vmul.f32 %v4872_v4, %v1751_v8 }
0x1515   :  { %1744 = vrot.lane.b32.xlu0 %v1742_v5, %s5230_s6 }
0x1516   :  { %1755 = vrot.lane.b32.xlu1 %v1753_v9, %s5230_s6 }
0x1587   :  { %v1745_v11 = vpop.permute.xlu0 %1744 }
0x1588   :  { %v1747_v13 = vadd.f32 %v1745_v11, %v1737_v10  ;;  %v1756_v14 = vpop.permute.xlu1 %1755  ;;  %v1919_v10 = vld [vmem:[#allocation2 + $0x6] ss:$0 sm:$0xff] }
0x1589   :  { %v1758_v16 = vadd.f32 %v1756_v14, %v1748_v12 }
0x158a   :  { %4873 = vtanh.f32 %v1747_v13 }
0x158b   :  { %4875 = vtanh.f32 %v1758_v16 }
0x1594   :  { %v4874_v17 = vpop.eup %4873 }
0x1595   :  { %v4876_v20 = vpop.eup %4875  ;;  %1761 = vrot.lane.b32.xlu0 %v4874_v17, %s5227_s21 }
0x1596   :  { %1767 = vrot.lane.b32.xlu1 %v4876_v20, %s5227_s21 }
0x1607   :  { %v1762_v22 = vpop.permute.xlu0 %1761 }
0x1608   :  { %v1764_v23 = vmul.f32 %v4870_v2, %v1762_v22  ;;  %v1768_v26 = vpop.permute.xlu1 %1767 }
0x1609   :  { %v1770_v27 = vmul.f32 %v4872_v4, %v1768_v26 }
0x160a   :  { %1772 = vrot.lane.b32.xlu0 %v1764_v23, %s5230_s6 }
0x160b   :  { %1777 = vrot.lane.b32.xlu1 %v1770_v27, %s5227_s21 }
0x167c   :  { %v1773_v28 = vpop.permute.xlu0 %1772 }
0x167d   :  { %1775 = vst.msk [vmem:[#allocation3 + $0x4] sm:$0x1] %vm1225_vm6, %v1773_v28  ;;  %v1778_v32 = vpop.permute.xlu1 %1777 }
0x167e   :  { %1780 = vst.msk [vmem:[#allocation3 + $0xb] sm:$0x1] %vm1231_vm7, %v1778_v32  ;;  %v1781_v33 = vsel %vm130_vm0, %v1773_v28, %v1778_v32 }
0x167f   :  { %4018 = vmatmul.mubr.msk.f32.vlgmr.msra.gmra.mrb[14].mxu0 %vm1096_vm8, %v1781_v33 }
0x1680   :  { %4539 = vmatpush1.bf16.msra.mxu0 %v5611_v21  ;;  %2125 = vmatprep.mubr.f32.mxu0 %v5229_v18 }
0x1681   :  { %4541 = vmatprep.subr.bf16.mxu0 %v5622_v25 }
0x1684   :  { %4543 = vmatpush1.bf16.msra.mxu0 %v5633_v31 }
0x1685   :  { %4545 = vmatprep.subr.bf16.mxu0 %v5644_v34 }
0x1688   :  { %4547 = vmatpush1.bf16.msra.mxu0 %v5652_v36 }
0x1689   :  { %4549 = vmatprep.subr.bf16.mxu0 %v5662_v39 }
0x168c   :  { %4551 = vmatpush1.bf16.msra.mxu0 %v5670_v42 }
0x168d   :  { %4569 = vmatprep.subr.bf16.mxu0 %v5598_v15 }
0x1752   :  { %v1853_v24 = vpop.f32.mrb[14].mxu0 }
0x1753   :  { %v1858_v37 = vadd.f32 %v1853_v24, %v1782_v35  ;;  %v1855_v40 = vpop.f32.mrb[15].mxu0 }
0x1754   :  { %v1859_v41 = vadd.f32 %v1855_v40, %v1783_v38 }
0x1755   :  { %4877 = vtanh.f32 %v1858_v37  ;;  %v4019_v45 = vmul.f32 -1.442695, %v1858_v37 }
0x1756   :  { %4879 = vtanh.f32 %v1859_v41  ;;  %v4020_v46 = vmul.f32 -1.442695, %v1859_v41 }
0x1757   :  { %4881 = vpow2.f32 %v4019_v45 }
0x1758   :  { %4883 = vpow2.f32 %v4020_v46 }
0x175f   :  { %v4878_v43 = vpop.eup %4877 }
0x1760   :  { %v4880_v44 = vpop.eup %4879  ;;  %1876 = vrot.lane.b32.xlu0 %v4878_v43, %s5227_s21 }
0x1761   :  { %1887 = vrot.lane.b32.xlu1 %v4880_v44, %s5227_s21  ;;  %v4882_v29 = vpop.eup %4881 }
0x1762   :  { %v4884_v30 = vpop.eup %4883  ;;  %v1866_v47 = vadd.f32 1.0, %v4882_v29 }
0x1763   :  { %v1867_v48 = vadd.f32 1.0, %v4884_v30 }
0x1764   :  { %4885 = vrcp.f32 %v1866_v47 }
0x1765   :  { %4887 = vrcp.f32 %v1867_v48 }
0x176e   :  { %v4886_v49 = vpop.eup %4885 }
0x176f   :  { %v4888_v51 = vpop.eup %4887  ;;  %v1874_v55 = vmul.f32 %v4886_v49, %v1747_v13  ;;  %v1920_v13 = vld [vmem:[#allocation2 + $0x19] ss:$0 sm:$0xff] }
0x1770   :  { %v1885_v57 = vmul.f32 %v4888_v51, %v1758_v16 }
0x17d2   :  { %v1877_v50 = vpop.permute.xlu0 %1876 }
0x17d3   :  { %v1879_v52 = vmul.f32 %v4886_v49, %v1877_v50  ;;  %v1888_v53 = vpop.permute.xlu1 %1887 }
0x17d4   :  { %v1890_v54 = vmul.f32 %v4888_v51, %v1888_v53 }
0x17d5   :  { %1881 = vrot.lane.b32.xlu0 %v1879_v52, %s5230_s6 }
0x17d6   :  { %1892 = vrot.lane.b32.xlu1 %v1890_v54, %s5230_s6 }
0x1847   :  { %v1882_v56 = vpop.permute.xlu0 %1881 }
0x1848   :  { %v1884_v58 = vadd.f32 %v1882_v56, %v1874_v55  ;;  %v1893_v59 = vpop.permute.xlu1 %1892  ;;  %v2056_v55 = vld [vmem:[#allocation2 + $0x7] ss:$0 sm:$0xff] }
0x1849   :  { %v1895_v62 = vadd.f32 %v1893_v59, %v1885_v57 }
0x184a   :  { %4889 = vtanh.f32 %v1884_v58 }
0x184b   :  { %4891 = vtanh.f32 %v1895_v62 }
0x1854   :  { %v4890_v63 = vpop.eup %4889 }
0x1855   :  { %v4892_v0 = vpop.eup %4891  ;;  %1898 = vrot.lane.b32.xlu0 %v4890_v63, %s5227_s21 }
0x1856   :  { %1904 = vrot.lane.b32.xlu1 %v4892_v0, %s5227_s21 }
0x18c7   :  { %v1899_v1 = vpop.permute.xlu0 %1898 }
0x18c8   :  { %v1901_v2 = vmul.f32 %v4886_v49, %v1899_v1  ;;  %v1905_v3 = vpop.permute.xlu1 %1904 }
0x18c9   :  { %v1907_v4 = vmul.f32 %v4888_v51, %v1905_v3 }
0x18ca   :  { %1909 = vrot.lane.b32.xlu0 %v1901_v2, %s5230_s6 }
0x18cb   :  { %1914 = vrot.lane.b32.xlu1 %v1907_v4, %s5227_s21 }
0x193c   :  { %v1910_v5 = vpop.permute.xlu0 %1909 }
0x193d   :  { %1912 = vst.msk [vmem:[#allocation3 + $0x5] sm:$0x1] %vm1225_vm6, %v1910_v5  ;;  %v1915_v8 = vpop.permute.xlu1 %1914 }
0x193e   :  { %1917 = vst.msk [vmem:[#allocation3 + $0xa] sm:$0x1] %vm1231_vm7, %v1915_v8  ;;  %v1918_v9 = vsel %vm130_vm0, %v1910_v5, %v1915_v8 }
0x193f   :  { %4021 = vmatmul.mubr.msk.f32.vlgmr.msra.gmra.mrb[18].mxu1 %vm1096_vm8, %v1918_v9 }
0x1940   :  { %4555 = vmatpush1.bf16.msra.mxu1 %v5611_v21  ;;  %2262 = vmatprep.mubr.f32.mxu1 %v5229_v18 }
0x1941   :  { %4557 = vmatprep.subr.bf16.mxu1 %v5622_v25 }
0x1944   :  { %4559 = vmatpush1.bf16.msra.mxu1 %v5633_v31 }
0x1945   :  { %4561 = vmatprep.subr.bf16.mxu1 %v5644_v34 }
0x1948   :  { %4563 = vmatpush1.bf16.msra.mxu1 %v5652_v36 }
0x1949   :  { %4565 = vmatprep.subr.bf16.mxu1 %v5662_v39 }
0x194c   :  { %4567 = vmatpush1.bf16.msra.mxu1 %v5670_v42 }
0x194d   :  { %4585 = vmatprep.subr.bf16.mxu1 %v5598_v15 }
0x1a12   :  { %v1990_v11 = vpop.f32.mrb[18].mxu1 }
0x1a13   :  { %v1995_v12 = vadd.f32 %v1990_v11, %v1919_v10  ;;  %v1992_v14 = vpop.f32.mrb[19].mxu1 }
0x1a14   :  { %v1996_v16 = vadd.f32 %v1992_v14, %v1920_v13 }
0x1a15   :  { %4893 = vtanh.f32 %v1995_v12  ;;  %v4022_v22 = vmul.f32 -1.442695, %v1995_v12 }
0x1a16   :  { %4895 = vtanh.f32 %v1996_v16  ;;  %v4023_v23 = vmul.f32 -1.442695, %v1996_v16 }
0x1a17   :  { %4897 = vpow2.f32 %v4022_v22 }
0x1a18   :  { %4899 = vpow2.f32 %v4023_v23 }
0x1a1f   :  { %v4894_v17 = vpop.eup %4893 }
0x1a20   :  { %v4896_v20 = vpop.eup %4895  ;;  %2013 = vrot.lane.b32.xlu0 %v4894_v17, %s5227_s21 }
0x1a21   :  { %2024 = vrot.lane.b32.xlu1 %v4896_v20, %s5227_s21  ;;  %v4898_v26 = vpop.eup %4897 }
0x1a22   :  { %v4900_v27 = vpop.eup %4899  ;;  %v2003_v28 = vadd.f32 1.0, %v4898_v26 }
0x1a23   :  { %v2004_v32 = vadd.f32 1.0, %v4900_v27 }
0x1a24   :  { %4901 = vrcp.f32 %v2003_v28 }
0x1a25   :  { %4903 = vrcp.f32 %v2004_v32 }
0x1a2e   :  { %v4902_v33 = vpop.eup %4901 }
0x1a2f   :  { %v4904_v24 = vpop.eup %4903  ;;  %v2011_v41 = vmul.f32 %v4902_v33, %v1884_v58  ;;  %v2057_v58 = vld [vmem:[#allocation2 + $0x18] ss:$0 sm:$0xff] }
0x1a30   :  { %v2022_v44 = vmul.f32 %v4904_v24, %v1895_v62 }
0x1a92   :  { %v2014_v35 = vpop.permute.xlu0 %2013 }
0x1a93   :  { %v2016_v37 = vmul.f32 %v4902_v33, %v2014_v35  ;;  %v2025_v38 = vpop.permute.xlu1 %2024 }
0x1a94   :  { %v2027_v40 = vmul.f32 %v4904_v24, %v2025_v38 }
0x1a95   :  { %2018 = vrot.lane.b32.xlu0 %v2016_v37, %s5230_s6 }
0x1a96   :  { %2029 = vrot.lane.b32.xlu1 %v2027_v40, %s5230_s6 }
0x1b07   :  { %v2019_v43 = vpop.permute.xlu0 %2018 }
0x1b08   :  { %v2021_v45 = vadd.f32 %v2019_v43, %v2011_v41  ;;  %v2030_v46 = vpop.permute.xlu1 %2029  ;;  %v2193_v41 = vld [vmem:[#allocation2 + $0x10] ss:$0 sm:$0xff] }
0x1b09   :  { %v2032_v29 = vadd.f32 %v2030_v46, %v2022_v44 }
0x1b0a   :  { %4905 = vtanh.f32 %v2021_v45 }
0x1b0b   :  { %4907 = vtanh.f32 %v2032_v29 }
0x1b14   :  { %v4906_v30 = vpop.eup %4905 }
0x1b15   :  { %v4908_v47 = vpop.eup %4907  ;;  %2035 = vrot.lane.b32.xlu0 %v4906_v30, %s5227_s21 }
0x1b16   :  { %2041 = vrot.lane.b32.xlu1 %v4908_v47, %s5227_s21 }
0x1b87   :  { %v2036_v48 = vpop.permute.xlu0 %2035 }
0x1b88   :  { %v2038_v49 = vmul.f32 %v4902_v33, %v2036_v48  ;;  %v2042_v50 = vpop.permute.xlu1 %2041 }
0x1b89   :  { %v2044_v51 = vmul.f32 %v4904_v24, %v2042_v50 }
0x1b8a   :  { %2046 = vrot.lane.b32.xlu0 %v2038_v49, %s5230_s6 }
0x1b8b   :  { %2051 = vrot.lane.b32.xlu1 %v2044_v51, %s5227_s21 }
0x1bfc   :  { %v2047_v52 = vpop.permute.xlu0 %2046 }
0x1bfd   :  { %2049 = vst.msk [vmem:[#allocation3 + $0x6] sm:$0x1] %vm1225_vm6, %v2047_v52  ;;  %v2052_v53 = vpop.permute.xlu1 %2051 }
0x1bfe   :  { %2054 = vst.msk [vmem:[#allocation3 + $0x9] sm:$0x1] %vm1231_vm7, %v2052_v53  ;;  %v2055_v54 = vsel %vm130_vm0, %v2047_v52, %v2052_v53 }
0x1bff   :  { %4024 = vmatmul.mubr.msk.f32.vlgmr.msra.gmra.mrb[16].mxu0 %vm1096_vm8, %v2055_v54 }
0x1c00   :  { %4571 = vmatpush1.bf16.msra.mxu0 %v5611_v21  ;;  %2399 = vmatprep.mubr.f32.mxu0 %v5229_v18 }
0x1c01   :  { %4573 = vmatprep.subr.bf16.mxu0 %v5622_v25 }
0x1c04   :  { %4575 = vmatpush1.bf16.msra.mxu0 %v5633_v31 }
0x1c05   :  { %4577 = vmatprep.subr.bf16.mxu0 %v5644_v34 }
0x1c08   :  { %4579 = vmatpush1.bf16.msra.mxu0 %v5652_v36 }
0x1c09   :  { %4581 = vmatprep.subr.bf16.mxu0 %v5662_v39 }
0x1c0c   :  { %4583 = vmatpush1.bf16.msra.mxu0 %v5670_v42 }
0x1c0d   :  { %4601 = vmatprep.subr.bf16.mxu0 %v5598_v15 }
0x1cd2   :  { %v2127_v56 = vpop.f32.mrb[16].mxu0 }
0x1cd3   :  { %v2132_v57 = vadd.f32 %v2127_v56, %v2056_v55  ;;  %v2129_v59 = vpop.f32.mrb[17].mxu0 }
0x1cd4   :  { %v2133_v62 = vadd.f32 %v2129_v59, %v2057_v58 }
0x1cd5   :  { %4909 = vtanh.f32 %v2132_v57  ;;  %v4025_v1 = vmul.f32 -1.442695, %v2132_v57 }
0x1cd6   :  { %4911 = vtanh.f32 %v2133_v62  ;;  %v4026_v2 = vmul.f32 -1.442695, %v2133_v62 }
0x1cd7   :  { %4913 = vpow2.f32 %v4025_v1 }
0x1cd8   :  { %4915 = vpow2.f32 %v4026_v2 }
0x1cdf   :  { %v4910_v63 = vpop.eup %4909 }
0x1ce0   :  { %v4912_v0 = vpop.eup %4911  ;;  %2150 = vrot.lane.b32.xlu0 %v4910_v63, %s5227_s21 }
0x1ce1   :  { %2161 = vrot.lane.b32.xlu1 %v4912_v0, %s5227_s21  ;;  %v4914_v3 = vpop.eup %4913 }
0x1ce2   :  { %v4916_v4 = vpop.eup %4915  ;;  %v2140_v5 = vadd.f32 1.0, %v4914_v3 }
0x1ce3   :  { %v2141_v8 = vadd.f32 1.0, %v4916_v4 }
0x1ce4   :  { %4917 = vrcp.f32 %v2140_v5 }
0x1ce5   :  { %4919 = vrcp.f32 %v2141_v8 }
0x1cee   :  { %v4918_v9 = vpop.eup %4917 }
0x1cef   :  { %v4920_v11 = vpop.eup %4919  ;;  %v2148_v16 = vmul.f32 %v4918_v9, %v2021_v45  ;;  %v2194_v45 = vld [vmem:[#allocation2 + $0xf] ss:$0 sm:$0xff] }
0x1cf0   :  { %v2159_v20 = vmul.f32 %v4920_v11, %v2032_v29 }
0x1d52   :  { %v2151_v10 = vpop.permute.xlu0 %2150 }
0x1d53   :  { %v2153_v12 = vmul.f32 %v4918_v9, %v2151_v10  ;;  %v2162_v13 = vpop.permute.xlu1 %2161 }
0x1d54   :  { %v2164_v14 = vmul.f32 %v4920_v11, %v2162_v13 }
0x1d55   :  { %2155 = vrot.lane.b32.xlu0 %v2153_v12, %s5230_s6 }
0x1d56   :  { %2166 = vrot.lane.b32.xlu1 %v2164_v14, %s5230_s6 }
0x1dc7   :  { %v2156_v17 = vpop.permute.xlu0 %2155 }
0x1dc8   :  { %v2158_v22 = vadd.f32 %v2156_v17, %v2148_v16  ;;  %v2167_v23 = vpop.permute.xlu1 %2166  ;;  %v2330_v16 = vld [vmem:[#allocation2 + $0x11] ss:$0 sm:$0xff] }
0x1dc9   :  { %v2169_v26 = vadd.f32 %v2167_v23, %v2159_v20 }
0x1dca   :  { %4921 = vtanh.f32 %v2158_v22 }
0x1dcb   :  { %4923 = vtanh.f32 %v2169_v26 }
0x1dd4   :  { %v4922_v27 = vpop.eup %4921 }
0x1dd5   :  { %v4924_v28 = vpop.eup %4923  ;;  %2172 = vrot.lane.b32.xlu0 %v4922_v27, %s5227_s21 }
0x1dd6   :  { %2178 = vrot.lane.b32.xlu1 %v4924_v28, %s5227_s21 }
0x1e47   :  { %v2173_v32 = vpop.permute.xlu0 %2172 }
0x1e48   :  { %v2175_v33 = vmul.f32 %v4918_v9, %v2173_v32  ;;  %v2179_v35 = vpop.permute.xlu1 %2178 }
0x1e49   :  { %v2181_v24 = vmul.f32 %v4920_v11, %v2179_v35 }
0x1e4a   :  { %2183 = vrot.lane.b32.xlu0 %v2175_v33, %s5230_s6 }
0x1e4b   :  { %2188 = vrot.lane.b32.xlu1 %v2181_v24, %s5227_s21 }
0x1ebc   :  { %v2184_v37 = vpop.permute.xlu0 %2183 }
0x1ebd   :  { %2186 = vst.msk [vmem:[#allocation3 + $0x7] sm:$0x1] %vm1225_vm6, %v2184_v37  ;;  %v2189_v38 = vpop.permute.xlu1 %2188 }
0x1ebe   :  { %2191 = vst.msk [vmem:[#allocation3 + $0x8] sm:$0x1] %vm1231_vm7, %v2189_v38  ;;  %v2192_v40 = vsel %vm130_vm0, %v2184_v37, %v2189_v38 }
0x1ebf   :  { %4027 = vmatmul.mubr.msk.f32.vlgmr.msra.gmra.mrb[20].mxu1 %vm1096_vm8, %v2192_v40 }
0x1ec0   :  { %4587 = vmatpush1.bf16.msra.mxu1 %v5611_v21  ;;  %2536 = vmatprep.mubr.f32.mxu1 %v5229_v18 }
0x1ec1   :  { %4589 = vmatprep.subr.bf16.mxu1 %v5622_v25 }
0x1ec4   :  { %4591 = vmatpush1.bf16.msra.mxu1 %v5633_v31 }
0x1ec5   :  { %4593 = vmatprep.subr.bf16.mxu1 %v5644_v34 }
0x1ec8   :  { %4595 = vmatpush1.bf16.msra.mxu1 %v5652_v36 }
0x1ec9   :  { %4597 = vmatprep.subr.bf16.mxu1 %v5662_v39 }
0x1ecc   :  { %4599 = vmatpush1.bf16.msra.mxu1 %v5670_v42 }
0x1ecd   :  { %4617 = vmatprep.subr.bf16.mxu1 %v5598_v15 }
0x1f92   :  { %v2264_v43 = vpop.f32.mrb[20].mxu1 }
0x1f93   :  { %v2269_v44 = vadd.f32 %v2264_v43, %v2193_v41  ;;  %v2266_v46 = vpop.f32.mrb[21].mxu1 }
0x1f94   :  { %v2270_v29 = vadd.f32 %v2266_v46, %v2194_v45 }
0x1f95   :  { %4925 = vtanh.f32 %v2269_v44  ;;  %v4028_v48 = vmul.f32 -1.442695, %v2269_v44 }
0x1f96   :  { %4927 = vtanh.f32 %v2270_v29  ;;  %v4029_v49 = vmul.f32 -1.442695, %v2270_v29 }
0x1f97   :  { %4929 = vpow2.f32 %v4028_v48 }
0x1f98   :  { %4931 = vpow2.f32 %v4029_v49 }
0x1f9f   :  { %v4926_v30 = vpop.eup %4925 }
0x1fa0   :  { %v4928_v47 = vpop.eup %4927  ;;  %2287 = vrot.lane.b32.xlu0 %v4926_v30, %s5227_s21 }
0x1fa1   :  { %2298 = vrot.lane.b32.xlu1 %v4928_v47, %s5227_s21  ;;  %v4930_v50 = vpop.eup %4929 }
0x1fa2   :  { %v4932_v51 = vpop.eup %4931  ;;  %v2277_v52 = vadd.f32 1.0, %v4930_v50 }
0x1fa3   :  { %v2278_v53 = vadd.f32 1.0, %v4932_v51 }
0x1fa4   :  { %4933 = vrcp.f32 %v2277_v52 }
0x1fa5   :  { %4935 = vrcp.f32 %v2278_v53 }
0x1fae   :  { %v4934_v54 = vpop.eup %4933 }
0x1faf   :  { %v4936_v56 = vpop.eup %4935  ;;  %v2285_v62 = vmul.f32 %v4934_v54, %v2158_v22  ;;  %v2331_v22 = vld [vmem:[#allocation2 + $0xe] ss:$0 sm:$0xff] }
0x1fb0   :  { %v2296_v0 = vmul.f32 %v4936_v56, %v2169_v26 }
0x2012   :  { %v2288_v55 = vpop.permute.xlu0 %2287 }
0x2013   :  { %v2290_v57 = vmul.f32 %v4934_v54, %v2288_v55  ;;  %v2299_v58 = vpop.permute.xlu1 %2298 }
0x2014   :  { %v2301_v59 = vmul.f32 %v4936_v56, %v2299_v58 }
0x2015   :  { %2292 = vrot.lane.b32.xlu0 %v2290_v57, %s5230_s6 }
0x2016   :  { %2303 = vrot.lane.b32.xlu1 %v2301_v59, %s5230_s6 }
0x2087   :  { %v2293_v63 = vpop.permute.xlu0 %2292 }
0x2088   :  { %v2295_v1 = vadd.f32 %v2293_v63, %v2285_v62  ;;  %v2304_v2 = vpop.permute.xlu1 %2303  ;;  %v2467_v62 = vld [vmem:[#allocation2 + $0x12] ss:$0 sm:$0xff] }
0x2089   :  { %v2306_v3 = vadd.f32 %v2304_v2, %v2296_v0 }
0x208a   :  { %4937 = vtanh.f32 %v2295_v1 }
0x208b   :  { %4939 = vtanh.f32 %v2306_v3 }
0x2094   :  { %v4938_v4 = vpop.eup %4937 }
0x2095   :  { %v4940_v5 = vpop.eup %4939  ;;  %2309 = vrot.lane.b32.xlu0 %v4938_v4, %s5227_s21 }
0x2096   :  { %2315 = vrot.lane.b32.xlu1 %v4940_v5, %s5227_s21 }
0x2107   :  { %v2310_v8 = vpop.permute.xlu0 %2309 }
0x2108   :  { %v2312_v9 = vmul.f32 %v4934_v54, %v2310_v8  ;;  %v2316_v10 = vpop.permute.xlu1 %2315 }
0x2109   :  { %v2318_v11 = vmul.f32 %v4936_v56, %v2316_v10 }
0x210a   :  { %2320 = vrot.lane.b32.xlu0 %v2312_v9, %s5230_s6 }
0x210b   :  { %2325 = vrot.lane.b32.xlu1 %v2318_v11, %s5227_s21 }
0x217c   :  { %v2321_v12 = vpop.permute.xlu0 %2320 }
0x217d   :  { %2323 = vst.msk [vmem:[#allocation3 + $0x8] sm:$0x1] %vm1225_vm6, %v2321_v12  ;;  %v2326_v13 = vpop.permute.xlu1 %2325 }
0x217e   :  { %2328 = vst.msk [vmem:[#allocation3 + $0x7] sm:$0x1] %vm1231_vm7, %v2326_v13  ;;  %v2329_v14 = vsel %vm130_vm0, %v2321_v12, %v2326_v13 }
0x217f   :  { %4030 = vmatmul.mubr.msk.f32.vlgmr.msra.gmra.mrb[18].mxu0 %vm1096_vm8, %v2329_v14 }
0x2180   :  { %4603 = vmatpush1.bf16.msra.mxu0 %v5611_v21  ;;  %2673 = vmatprep.mubr.f32.mxu0 %v5229_v18 }
0x2181   :  { %4605 = vmatprep.subr.bf16.mxu0 %v5622_v25 }
0x2184   :  { %4607 = vmatpush1.bf16.msra.mxu0 %v5633_v31 }
0x2185   :  { %4609 = vmatprep.subr.bf16.mxu0 %v5644_v34 }
0x2188   :  { %4611 = vmatpush1.bf16.msra.mxu0 %v5652_v36 }
0x2189   :  { %4613 = vmatprep.subr.bf16.mxu0 %v5662_v39 }
0x218c   :  { %4615 = vmatpush1.bf16.msra.mxu0 %v5670_v42 }
0x218d   :  { %4633 = vmatprep.subr.bf16.mxu0 %v5598_v15 }
0x2252   :  { %v2401_v17 = vpop.f32.mrb[18].mxu0 }
0x2253   :  { %v2406_v20 = vadd.f32 %v2401_v17, %v2330_v16  ;;  %v2403_v23 = vpop.f32.mrb[19].mxu0 }
0x2254   :  { %v2407_v26 = vadd.f32 %v2403_v23, %v2331_v22 }
0x2255   :  { %4941 = vtanh.f32 %v2406_v20  ;;  %v4031_v32 = vmul.f32 -1.442695, %v2406_v20 }
0x2256   :  { %4943 = vtanh.f32 %v2407_v26  ;;  %v4032_v33 = vmul.f32 -1.442695, %v2407_v26 }
0x2257   :  { %4945 = vpow2.f32 %v4031_v32 }
0x2258   :  { %4947 = vpow2.f32 %v4032_v33 }
0x225f   :  { %v4942_v27 = vpop.eup %4941 }
0x2260   :  { %v4944_v28 = vpop.eup %4943  ;;  %2424 = vrot.lane.b32.xlu0 %v4942_v27, %s5227_s21 }
0x2261   :  { %2435 = vrot.lane.b32.xlu1 %v4944_v28, %s5227_s21  ;;  %v4946_v35 = vpop.eup %4945 }
0x2262   :  { %v4948_v24 = vpop.eup %4947  ;;  %v2414_v37 = vadd.f32 1.0, %v4946_v35 }
0x2263   :  { %v2415_v38 = vadd.f32 1.0, %v4948_v24 }
0x2264   :  { %4949 = vrcp.f32 %v2414_v37 }
0x2265   :  { %4951 = vrcp.f32 %v2415_v38 }
0x226e   :  { %v4950_v40 = vpop.eup %4949 }
0x226f   :  { %v4952_v43 = vpop.eup %4951  ;;  %v2422_v29 = vmul.f32 %v4950_v40, %v2295_v1  ;;  %v2468_v1 = vld [vmem:[#allocation2 + $0xd] ss:$0 sm:$0xff] }
0x2270   :  { %v2433_v47 = vmul.f32 %v4952_v43, %v2306_v3 }
0x22d2   :  { %v2425_v41 = vpop.permute.xlu0 %2424 }
0x22d3   :  { %v2427_v44 = vmul.f32 %v4950_v40, %v2425_v41  ;;  %v2436_v45 = vpop.permute.xlu1 %2435 }
0x22d4   :  { %v2438_v46 = vmul.f32 %v4952_v43, %v2436_v45 }
0x22d5   :  { %2429 = vrot.lane.b32.xlu0 %v2427_v44, %s5230_s6 }
0x22d6   :  { %2440 = vrot.lane.b32.xlu1 %v2438_v46, %s5230_s6 }
0x2347   :  { %v2430_v30 = vpop.permute.xlu0 %2429 }
0x2348   :  { %v2432_v48 = vadd.f32 %v2430_v30, %v2422_v29  ;;  %v2441_v49 = vpop.permute.xlu1 %2440  ;;  %v2604_v29 = vld [vmem:[#allocation2 + $0x13] ss:$0 sm:$0xff] }
0x2349   :  { %v2443_v50 = vadd.f32 %v2441_v49, %v2433_v47 }
0x234a   :  { %4953 = vtanh.f32 %v2432_v48 }
0x234b   :  { %4955 = vtanh.f32 %v2443_v50 }
0x2354   :  { %v4954_v51 = vpop.eup %4953 }
0x2355   :  { %v4956_v52 = vpop.eup %4955  ;;  %2446 = vrot.lane.b32.xlu0 %v4954_v51, %s5227_s21 }
0x2356   :  { %2452 = vrot.lane.b32.xlu1 %v4956_v52, %s5227_s21 }
0x23c7   :  { %v2447_v53 = vpop.permute.xlu0 %2446 }
0x23c8   :  { %v2449_v54 = vmul.f32 %v4950_v40, %v2447_v53  ;;  %v2453_v55 = vpop.permute.xlu1 %2452 }
0x23c9   :  { %v2455_v56 = vmul.f32 %v4952_v43, %v2453_v55 }
0x23ca   :  { %2457 = vrot.lane.b32.xlu0 %v2449_v54, %s5230_s6 }
0x23cb   :  { %2462 = vrot.lane.b32.xlu1 %v2455_v56, %s5227_s21 }
0x243c   :  { %v2458_v57 = vpop.permute.xlu0 %2457 }
0x243d   :  { %2460 = vst.msk [vmem:[#allocation3 + $0x9] sm:$0x1] %vm1225_vm6, %v2458_v57  ;;  %v2463_v58 = vpop.permute.xlu1 %2462 }
0x243e   :  { %2465 = vst.msk [vmem:[#allocation3 + $0x6] sm:$0x1] %vm1231_vm7, %v2463_v58  ;;  %v2466_v59 = vsel %vm130_vm0, %v2458_v57, %v2463_v58 }
0x243f   :  { %4033 = vmatmul.mubr.msk.f32.vlgmr.msra.gmra.mrb[22].mxu1 %vm1096_vm8, %v2466_v59 }
0x2440   :  { %4619 = vmatpush1.bf16.msra.mxu1 %v5611_v21  ;;  %2810 = vmatprep.mubr.f32.mxu1 %v5229_v18 }
0x2441   :  { %4621 = vmatprep.subr.bf16.mxu1 %v5622_v25 }
0x2444   :  { %4623 = vmatpush1.bf16.msra.mxu1 %v5633_v31 }
0x2445   :  { %4625 = vmatprep.subr.bf16.mxu1 %v5644_v34 }
0x2448   :  { %4627 = vmatpush1.bf16.msra.mxu1 %v5652_v36 }
0x2449   :  { %4629 = vmatprep.subr.bf16.mxu1 %v5662_v39 }
0x244c   :  { %4631 = vmatpush1.bf16.msra.mxu1 %v5670_v42 }
0x244d   :  { %4649 = vmatprep.subr.bf16.mxu1 %v5598_v15 }
0x2512   :  { %v2538_v63 = vpop.f32.mrb[22].mxu1 }
0x2513   :  { %v2543_v0 = vadd.f32 %v2538_v63, %v2467_v62  ;;  %v2540_v2 = vpop.f32.mrb[23].mxu1 }
0x2514   :  { %v2544_v3 = vadd.f32 %v2540_v2, %v2468_v1 }
0x2515   :  { %4957 = vtanh.f32 %v2543_v0  ;;  %v4034_v8 = vmul.f32 -1.442695, %v2543_v0 }
0x2516   :  { %4959 = vtanh.f32 %v2544_v3  ;;  %v4035_v9 = vmul.f32 -1.442695, %v2544_v3 }
0x2517   :  { %4961 = vpow2.f32 %v4034_v8 }
0x2518   :  { %4963 = vpow2.f32 %v4035_v9 }
0x251f   :  { %v4958_v4 = vpop.eup %4957 }
0x2520   :  { %v4960_v5 = vpop.eup %4959  ;;  %2561 = vrot.lane.b32.xlu0 %v4958_v4, %s5227_s21 }
0x2521   :  { %2572 = vrot.lane.b32.xlu1 %v4960_v5, %s5227_s21  ;;  %v4962_v10 = vpop.eup %4961 }
0x2522   :  { %v4964_v11 = vpop.eup %4963  ;;  %v2551_v12 = vadd.f32 1.0, %v4962_v10 }
0x2523   :  { %v2552_v13 = vadd.f32 1.0, %v4964_v11 }
0x2524   :  { %4965 = vrcp.f32 %v2551_v12 }
0x2525   :  { %4967 = vrcp.f32 %v2552_v13 }
0x252e   :  { %v4966_v14 = vpop.eup %4965 }
0x252f   :  { %v4968_v17 = vpop.eup %4967  ;;  %v2559_v26 = vmul.f32 %v4966_v14, %v2432_v48  ;;  %v2605_v48 = vld [vmem:[#allocation2 + $0xc] ss:$0 sm:$0xff] }
0x2530   :  { %v2570_v28 = vmul.f32 %v4968_v17, %v2443_v50 }
0x2592   :  { %v2562_v16 = vpop.permute.xlu0 %2561 }
0x2593   :  { %v2564_v20 = vmul.f32 %v4966_v14, %v2562_v16  ;;  %v2573_v22 = vpop.permute.xlu1 %2572 }
0x2594   :  { %v2575_v23 = vmul.f32 %v4968_v17, %v2573_v22 }
0x2595   :  { %2566 = vrot.lane.b32.xlu0 %v2564_v20, %s5230_s6 }
0x2596   :  { %2577 = vrot.lane.b32.xlu1 %v2575_v23, %s5230_s6  ;;  %v2741_v23 = vld [vmem:[#allocation2 + $0x14] ss:$0 sm:$0xff] }
0x2607   :  { %v2567_v27 = vpop.permute.xlu0 %2566 }
0x2608   :  { %v2569_v32 = vadd.f32 %v2567_v27, %v2559_v26  ;;  %v2578_v33 = vpop.permute.xlu1 %2577 }
0x2609   :  { %v2580_v35 = vadd.f32 %v2578_v33, %v2570_v28  ;;  %v2742_v28 = vld [vmem:[#allocation2 + $0xb] ss:$0 sm:$0xff] }
0x260a   :  { %4969 = vtanh.f32 %v2569_v32 }
0x260b   :  { %4971 = vtanh.f32 %v2580_v35 }
0x2614   :  { %v4970_v24 = vpop.eup %4969 }
0x2615   :  { %v4972_v37 = vpop.eup %4971  ;;  %2583 = vrot.lane.b32.xlu0 %v4970_v24, %s5227_s21 }
0x2616   :  { %2589 = vrot.lane.b32.xlu1 %v4972_v37, %s5227_s21 }
0x2687   :  { %v2584_v38 = vpop.permute.xlu0 %2583 }
0x2688   :  { %v2586_v40 = vmul.f32 %v4966_v14, %v2584_v38  ;;  %v2590_v41 = vpop.permute.xlu1 %2589 }
0x2689   :  { %v2592_v43 = vmul.f32 %v4968_v17, %v2590_v41 }
0x268a   :  { %2594 = vrot.lane.b32.xlu0 %v2586_v40, %s5230_s6 }
0x268b   :  { %2599 = vrot.lane.b32.xlu1 %v2592_v43, %s5227_s21 }
0x26fc   :  { %v2595_v44 = vpop.permute.xlu0 %2594 }
0x26fd   :  { %2597 = vst.msk [vmem:[#allocation3 + $0xa] sm:$0x1] %vm1225_vm6, %v2595_v44  ;;  %v2600_v45 = vpop.permute.xlu1 %2599 }
0x26fe   :  { %2602 = vst.msk [vmem:[#allocation3 + $0x5] sm:$0x1] %vm1231_vm7, %v2600_v45  ;;  %v2603_v46 = vsel %vm130_vm0, %v2595_v44, %v2600_v45 }
0x26ff   :  { %4036 = vmatmul.mubr.msk.f32.vlgmr.msra.gmra.mrb[20].mxu0 %vm1096_vm8, %v2603_v46 }
0x2700   :  { %4635 = vmatpush1.bf16.msra.mxu0 %v5611_v21  ;;  %2947 = vmatprep.mubr.f32.mxu0 %v5229_v18 }
0x2701   :  { %4637 = vmatprep.subr.bf16.mxu0 %v5622_v25 }
0x2704   :  { %4639 = vmatpush1.bf16.msra.mxu0 %v5633_v31 }
0x2705   :  { %4641 = vmatprep.subr.bf16.mxu0 %v5644_v34 }
0x2708   :  { %4643 = vmatpush1.bf16.msra.mxu0 %v5652_v36 }
0x2709   :  { %4645 = vmatprep.subr.bf16.mxu0 %v5662_v39 }
0x270c   :  { %4647 = vmatpush1.bf16.msra.mxu0 %v5670_v42 }
0x270d   :  { %4665 = vmatprep.subr.bf16.mxu0 %v5598_v15 }
0x27d2   :  { %v2675_v30 = vpop.f32.mrb[20].mxu0 }
0x27d3   :  { %v2680_v47 = vadd.f32 %v2675_v30, %v2604_v29  ;;  %v2677_v49 = vpop.f32.mrb[21].mxu0 }
0x27d4   :  { %v2681_v50 = vadd.f32 %v2677_v49, %v2605_v48 }
0x27d5   :  { %4973 = vtanh.f32 %v2680_v47  ;;  %v4037_v53 = vmul.f32 -1.442695, %v2680_v47 }
0x27d6   :  { %4975 = vtanh.f32 %v2681_v50  ;;  %v4038_v54 = vmul.f32 -1.442695, %v2681_v50 }
0x27d7   :  { %4977 = vpow2.f32 %v4037_v53 }
0x27d8   :  { %4979 = vpow2.f32 %v4038_v54 }
0x27df   :  { %v4974_v51 = vpop.eup %4973 }
0x27e0   :  { %v4976_v52 = vpop.eup %4975  ;;  %2698 = vrot.lane.b32.xlu0 %v4974_v51, %s5227_s21 }
0x27e1   :  { %2709 = vrot.lane.b32.xlu1 %v4976_v52, %s5227_s21  ;;  %v4978_v55 = vpop.eup %4977 }
0x27e2   :  { %v4980_v15 = vpop.eup %4979  ;;  %v2688_v56 = vadd.f32 1.0, %v4978_v55 }
0x27e3   :  { %v2689_v57 = vadd.f32 1.0, %v4980_v15 }
0x27e4   :  { %4981 = vrcp.f32 %v2688_v56 }
0x27e5   :  { %4983 = vrcp.f32 %v2689_v57 }
0x27ee   :  { %v4982_v58 = vpop.eup %4981 }
0x27ef   :  { %v4984_v62 = vpop.eup %4983  ;;  %v2696_v2 = vmul.f32 %v4982_v58, %v2569_v32 }
0x27f0   :  { %v2707_v4 = vmul.f32 %v4984_v62, %v2580_v35 }
0x2852   :  { %v2699_v59 = vpop.permute.xlu0 %2698 }
0x2853   :  { %v2701_v63 = vmul.f32 %v4982_v58, %v2699_v59  ;;  %v2710_v0 = vpop.permute.xlu1 %2709 }
0x2854   :  { %v2712_v1 = vmul.f32 %v4984_v62, %v2710_v0 }
0x2855   :  { %2703 = vrot.lane.b32.xlu0 %v2701_v63, %s5230_s6 }
0x2856   :  { %2714 = vrot.lane.b32.xlu1 %v2712_v1, %s5230_s6  ;;  %v2878_v1 = vld [vmem:[#allocation2 + $0x15] ss:$0 sm:$0xff] }
0x28c7   :  { %v2704_v3 = vpop.permute.xlu0 %2703 }
0x28c8   :  { %v2706_v5 = vadd.f32 %v2704_v3, %v2696_v2  ;;  %v2715_v8 = vpop.permute.xlu1 %2714 }
0x28c9   :  { %v2717_v9 = vadd.f32 %v2715_v8, %v2707_v4  ;;  %v2879_v4 = vld [vmem:[#allocation2 + $0xa] ss:$0 sm:$0xff] }
0x28ca   :  { %4985 = vtanh.f32 %v2706_v5 }
0x28cb   :  { %4987 = vtanh.f32 %v2717_v9 }
0x28d4   :  { %v4986_v10 = vpop.eup %4985 }
0x28d5   :  { %v4988_v11 = vpop.eup %4987  ;;  %2720 = vrot.lane.b32.xlu0 %v4986_v10, %s5227_s21 }
0x28d6   :  { %2726 = vrot.lane.b32.xlu1 %v4988_v11, %s5227_s21 }
0x2947   :  { %v2721_v12 = vpop.permute.xlu0 %2720 }
0x2948   :  { %v2723_v13 = vmul.f32 %v4982_v58, %v2721_v12  ;;  %v2727_v14 = vpop.permute.xlu1 %2726 }
0x2949   :  { %v2729_v16 = vmul.f32 %v4984_v62, %v2727_v14 }
0x294a   :  { %2731 = vrot.lane.b32.xlu0 %v2723_v13, %s5230_s6 }
0x294b   :  { %2736 = vrot.lane.b32.xlu1 %v2729_v16, %s5227_s21 }
0x29bc   :  { %v2732_v17 = vpop.permute.xlu0 %2731 }
0x29bd   :  { %2734 = vst.msk [vmem:[#allocation3 + $0xb] sm:$0x1] %vm1225_vm6, %v2732_v17  ;;  %v2737_v20 = vpop.permute.xlu1 %2736 }
0x29be   :  { %2739 = vst.msk [vmem:[#allocation3 + $0x4] sm:$0x1] %vm1231_vm7, %v2737_v20  ;;  %v2740_v22 = vsel %vm130_vm0, %v2732_v17, %v2737_v20 }
0x29bf   :  { %4039 = vmatmul.mubr.msk.f32.vlgmr.msra.gmra.mrb[24].mxu1 %vm1096_vm8, %v2740_v22 }
0x29c0   :  { %4651 = vmatpush1.bf16.msra.mxu1 %v5611_v21  ;;  %3084 = vmatprep.mubr.f32.mxu1 %v5229_v18 }
0x29c1   :  { %4653 = vmatprep.subr.bf16.mxu1 %v5622_v25 }
0x29c4   :  { %4655 = vmatpush1.bf16.msra.mxu1 %v5633_v31 }
0x29c5   :  { %4657 = vmatprep.subr.bf16.mxu1 %v5644_v34 }
0x29c8   :  { %4659 = vmatpush1.bf16.msra.mxu1 %v5652_v36 }
0x29c9   :  { %4661 = vmatprep.subr.bf16.mxu1 %v5662_v39 }
0x29cc   :  { %4663 = vmatpush1.bf16.msra.mxu1 %v5670_v42 }
0x2a92   :  { %v2812_v26 = vpop.f32.mrb[24].mxu1 }
0x2a93   :  { %v2817_v27 = vadd.f32 %v2812_v26, %v2741_v23  ;;  %v2814_v32 = vpop.f32.mrb[25].mxu1 }
0x2a94   :  { %v2818_v33 = vadd.f32 %v2814_v32, %v2742_v28 }
0x2a95   :  { %4989 = vtanh.f32 %v2817_v27  ;;  %v4040_v37 = vmul.f32 -1.442695, %v2817_v27 }
0x2a96   :  { %4991 = vtanh.f32 %v2818_v33  ;;  %v4041_v38 = vmul.f32 -1.442695, %v2818_v33  ;;  %v3292_v33 = vld [vmem:[%s6188_s8] sm:$0xff] }
0x2a97   :  { %4993 = vpow2.f32 %v4040_v37 }
0x2a98   :  { %4995 = vpow2.f32 %v4041_v38 }
0x2a9f   :  { %v4990_v35 = vpop.eup %4989 }
0x2aa0   :  { %v4992_v24 = vpop.eup %4991  ;;  %2835 = vrot.lane.b32.xlu0 %v4990_v35, %s5227_s21  ;;  %v3293_v35 = vld [vmem:[%s6188_s8 + $0x8] sm:$0xff] }
0x2aa1   :  { %2846 = vrot.lane.b32.xlu1 %v4992_v24, %s5227_s21  ;;  %v4994_v40 = vpop.eup %4993  ;;  %v4680_v24 = vpack.c.bf16 %v3293_v35, %v3292_v33 }
0x2aa2   :  { %v4996_v41 = vpop.eup %4995  ;;  %v2825_v43 = vadd.f32 1.0, %v4994_v40 }
0x2aa3   :  { %v2826_v44 = vadd.f32 1.0, %v4996_v41  ;;  %4681 = vmatprep.subr.bf16.mxu1 %v4680_v24 }
0x2aa4   :  { %4997 = vrcp.f32 %v2825_v43  ;;  %v3294_v43 = vld [vmem:[%s6188_s8 + $0x10] sm:$0xff] }
0x2aa5   :  { %4999 = vrcp.f32 %v2826_v44  ;;  %v3295_v44 = vld [vmem:[%s6188_s8 + $0x18] sm:$0xff] }
0x2aae   :  { %v4998_v45 = vpop.eup %4997 }
0x2aaf   :  { %v5000_v29 = vpop.eup %4999  ;;  %v2833_v49 = vmul.f32 %v4998_v45, %v2706_v5 }
0x2ab0   :  { %v2844_v51 = vmul.f32 %v5000_v29, %v2717_v9 }
0x2b12   :  { %v2836_v46 = vpop.permute.xlu0 %2835 }
0x2b13   :  { %v2838_v30 = vmul.f32 %v4998_v45, %v2836_v46  ;;  %v2847_v47 = vpop.permute.xlu1 %2846 }
0x2b14   :  { %v2849_v48 = vmul.f32 %v5000_v29, %v2847_v47 }
0x2b15   :  { %2840 = vrot.lane.b32.xlu0 %v2838_v30, %s5230_s6  ;;  %v949_v30 = vadd.f32 %v5703_v61, %v5476_v6  ;;  %v3016_v6 = vld [vmem:[#allocation2 + $0x9] ss:$0 sm:$0xff] }
0x2b16   :  { %2851 = vrot.lane.b32.xlu1 %v2849_v48, %s5230_s6  ;;  %v950_v48 = vadd.f32 %v5701_v60, %v5478_v7 }
0x2b87   :  { %v2841_v50 = vpop.permute.xlu0 %2840 }
0x2b88   :  { %v2843_v52 = vadd.f32 %v2841_v50, %v2833_v49  ;;  %v2852_v53 = vpop.permute.xlu1 %2851  ;;  %v3015_v49 = vld [vmem:[#allocation2 + $0x16] ss:$0 sm:$0xff] }
0x2b89   :  { %v2854_v54 = vadd.f32 %v2852_v53, %v2844_v51  ;;  %v6020_v53 = vld [vmem:[#allocation7] ss:$0 sm:$0xff] }
0x2b8a   :  { %5001 = vtanh.f32 %v2843_v52 }
0x2b8b   :  { %5003 = vtanh.f32 %v2854_v54 }
0x2b94   :  { %v5002_v55 = vpop.eup %5001 }
0x2b95   :  { %v5004_v15 = vpop.eup %5003  ;;  %2857 = vrot.lane.b32.xlu0 %v5002_v55, %s5227_s21 }
0x2b96   :  { %2863 = vrot.lane.b32.xlu1 %v5004_v15, %s5227_s21 }
0x2c07   :  { %v2858_v56 = vpop.permute.xlu0 %2857 }
0x2c08   :  { %v2860_v57 = vmul.f32 %v4998_v45, %v2858_v56  ;;  %v2864_v58 = vpop.permute.xlu1 %2863 }
0x2c09   :  { %v2866_v59 = vmul.f32 %v5000_v29, %v2864_v58  ;;  %v4684_v29 = vpack.c.bf16 %v3295_v44, %v3294_v43 }
0x2c0a   :  { %2868 = vrot.lane.b32.xlu0 %v2860_v57, %s5230_s6 }
0x2c0b   :  { %2873 = vrot.lane.b32.xlu1 %v2866_v59, %s5227_s21 }
0x2c7c   :  { %v2869_v62 = vpop.permute.xlu0 %2868 }
0x2c7d   :  { %2871 = vst.msk [vmem:[#allocation3 + $0xc] sm:$0x1] %vm1225_vm6, %v2869_v62  ;;  %v2874_v63 = vpop.permute.xlu1 %2873 }
0x2c7e   :  { %2876 = vst.msk [vmem:[#allocation3 + $0x3] sm:$0x1] %vm1231_vm7, %v2874_v63  ;;  %v2877_v0 = vsel %vm130_vm0, %v2869_v62, %v2874_v63 }
0x2c7f   :  { %4042 = vmatmul.mubr.msk.f32.vlgmr.msra.gmra.mrb[22].mxu0 %vm1096_vm8, %v2877_v0 }
0x2c80   :  { %4667 = vmatpush1.bf16.msra.mxu0 %v5611_v21  ;;  %3221 = vmatprep.mubr.f32.mxu0 %v5229_v18 }
0x2c81   :  { %4669 = vmatprep.subr.bf16.mxu0 %v5622_v25 }
0x2c84   :  { %4671 = vmatpush1.bf16.msra.mxu0 %v5633_v31 }
0x2c85   :  { %4673 = vmatprep.subr.bf16.mxu0 %v5644_v34 }
0x2c88   :  { %4675 = vmatpush1.bf16.msra.mxu0 %v5652_v36 }
0x2c89   :  { %4677 = vmatprep.subr.bf16.mxu0 %v5662_v39 }
0x2c8c   :  { %4679 = vmatpush1.bf16.msra.mxu0 %v5670_v42 }
0x2d52   :  { %v2949_v2 = vpop.f32.mrb[22].mxu0 }
0x2d53   :  { %v2954_v3 = vadd.f32 %v2949_v2, %v2878_v1  ;;  %v2951_v5 = vpop.f32.mrb[23].mxu0 }
0x2d54   :  { %v2955_v21 = vadd.f32 %v2951_v5, %v2879_v4 }
0x2d55   :  { %5005 = vtanh.f32 %v2954_v3  ;;  %v4043_v31 = vmul.f32 -1.442695, %v2954_v3 }
0x2d56   :  { %5007 = vtanh.f32 %v2955_v21  ;;  %v4044_v34 = vmul.f32 -1.442695, %v2955_v21 }
0x2d57   :  { %5009 = vpow2.f32 %v4043_v31 }
0x2d58   :  { %5011 = vpow2.f32 %v4044_v34 }
0x2d5f   :  { %v5006_v8 = vpop.eup %5005 }
0x2d60   :  { %v5008_v25 = vpop.eup %5007  ;;  %2972 = vrot.lane.b32.xlu0 %v5006_v8, %s5227_s21 }
0x2d61   :  { %2983 = vrot.lane.b32.xlu1 %v5008_v25, %s5227_s21  ;;  %v5010_v36 = vpop.eup %5009 }
0x2d62   :  { %v5012_v39 = vpop.eup %5011  ;;  %v2962_v42 = vadd.f32 1.0, %v5010_v36 }
0x2d63   :  { %v2963_v9 = vadd.f32 1.0, %v5012_v39 }
0x2d64   :  { %5013 = vrcp.f32 %v2962_v42 }
0x2d65   :  { %5015 = vrcp.f32 %v2963_v9 }
0x2d6e   :  { %v5014_v10 = vpop.eup %5013 }
0x2d6f   :  { %v5016_v12 = vpop.eup %5015  ;;  %v2970_v17 = vmul.f32 %v5014_v10, %v2843_v52 }
0x2d70   :  { %v2981_v22 = vmul.f32 %v5016_v12, %v2854_v54 }
0x2dd2   :  { %v2973_v11 = vpop.permute.xlu0 %2972 }
0x2dd3   :  { %v2975_v13 = vmul.f32 %v5014_v10, %v2973_v11  ;;  %v2984_v14 = vpop.permute.xlu1 %2983 }
0x2dd4   :  { %v2986_v16 = vmul.f32 %v5016_v12, %v2984_v14 }
0x2dd5   :  { %2977 = vrot.lane.b32.xlu0 %v2975_v13, %s5230_s6 }
0x2dd6   :  { %2988 = vrot.lane.b32.xlu1 %v2986_v16, %s5230_s6 }
0x2e47   :  { %v2978_v20 = vpop.permute.xlu0 %2977 }
0x2e48   :  { %v5988_v23 = vadd.f32 %v2978_v20, %v2970_v17  ;;  %v2989_v26 = vpop.permute.xlu1 %2988  ;;  %v3152_v20 = vld [vmem:[#allocation2 + $0x17] ss:$0 sm:$0xff] }
0x2e49   :  { %v5990_v27 = vadd.f32 %v2989_v26, %v2981_v22  ;;  %v3153_v26 = vld [vmem:[#allocation2 + $0x8] ss:$0 sm:$0xff] }
0x2e4a   :  { %5017 = vtanh.f32 %v5988_v23 }
0x2e4b   :  { %5019 = vtanh.f32 %v5990_v27 }
0x2e54   :  { %v5018_v28 = vpop.eup %5017 }
0x2e55   :  { %v5020_v32 = vpop.eup %5019  ;;  %2994 = vrot.lane.b32.xlu0 %v5018_v28, %s5227_s21 }
0x2e56   :  { %3000 = vrot.lane.b32.xlu1 %v5020_v32, %s5227_s21 }
0x2ec7   :  { %v2995_v37 = vpop.permute.xlu0 %2994 }
0x2ec8   :  { %v2997_v38 = vmul.f32 %v5014_v10, %v2995_v37  ;;  %v3001_v40 = vpop.permute.xlu1 %3000 }
0x2ec9   :  { %v3003_v41 = vmul.f32 %v5016_v12, %v3001_v40 }
0x2eca   :  { %3005 = vrot.lane.b32.xlu0 %v2997_v38, %s5230_s6 }
0x2ecb   :  { %3010 = vrot.lane.b32.xlu1 %v3003_v41, %s5227_s21 }
0x2f3c   :  { %v3006_v45 = vpop.permute.xlu0 %3005 }
0x2f3d   :  { %3008 = vst.msk [vmem:[#allocation3 + $0xd] sm:$0x1] %vm1225_vm6, %v3006_v45  ;;  %v3011_v46 = vpop.permute.xlu1 %3010 }
0x2f3e   :  { %3013 = vst.msk [vmem:[#allocation3 + $0x2] sm:$0x1] %vm1231_vm7, %v3011_v46  ;;  %v3014_v47 = vsel %vm130_vm0, %v3006_v45, %v3011_v46 }
0x2f3f   :  { %4045 = vmatmul.mubr.msk.f32.vlgmr.msra.gmra.mrb[26].mxu1 %vm1096_vm8, %v3014_v47 }
0x2f40   :  { %4683 = vmatpush3.bf16.msra.mxu1 %v4680_v24  ;;  %4239 = vmatprep.mubr.msk.f32.mxu1 %vm130_vm0, %v949_v30 }
0x2f41   :  { %4685 = vmatprep.subr.bf16.mxu1 %v4684_v29 }
0x2f44   :  { %4687 = vmatpush3.bf16.msra.mxu1 %v4684_v29 }
0x2f47   :  { %4240 = vmatmul.mubr.msk.f32.vlgmr.msra.gmra.mrb[28].mxu1 %vm130_vm0, %v950_v48 }
0x3012   :  { %v3086_v50 = vpop.f32.mrb[26].mxu1 }
0x3013   :  { %v3091_v51 = vadd.f32 %v3086_v50, %v3015_v49  ;;  %v3088_v61 = vpop.f32.mrb[27].mxu1 }
0x3014   :  { %v3092_v52 = vadd.f32 %v3088_v61, %v3016_v6  ;;  %v3296_v61 = vld [vmem:[%s6188_s8 + $0x20] sm:$0xff] }
0x3015   :  { %5021 = vtanh.f32 %v3091_v51  ;;  %v4046_v57 = vmul.f32 -1.442695, %v3091_v51 }
0x3016   :  { %5023 = vtanh.f32 %v3092_v52  ;;  %v4047_v58 = vmul.f32 -1.442695, %v3092_v52  ;;  %v3297_v52 = vld [vmem:[%s6188_s8 + $0x28] sm:$0xff] }
0x3017   :  { %5025 = vpow2.f32 %v4046_v57  ;;  %v3298_v57 = vld [vmem:[%s6188_s8 + $0x30] sm:$0xff] }
0x3018   :  { %5027 = vpow2.f32 %v4047_v58  ;;  %v3299_v58 = vld [vmem:[%s6188_s8 + $0x38] sm:$0xff] }
0x301a   :  { %v6022_v54 = vpop.f32.mrb[28].mxu1 }
0x301b   :  { %v3383_v55 = vpop.f32.mrb[29].mxu1 }
0x301c   :  { %v6025_v15 = vadd.f32 %v6020_v53, %v3383_v55  ;;  %v4688_v55 = vpack.c.bf16 %v3297_v52, %v3296_v61  ;;  %v3767_v61 = vld [vmem:[#allocation9 + $0x50] sm:$0xff] }
0x301e   :  { %v3392_v7 = vmax.f32 %v6025_v15, 0.0  ;;  %4689 = vmatprep.subr.bf16.mxu0 %v4688_v55  ;;  %v3771_v15 = vld [vmem:[#allocation9 + $0x70] sm:$0xff] }
0x301f   :  { %v5022_v60 = vpop.eup %5021 }
0x3020   :  { %v5024_v56 = vpop.eup %5023  ;;  %4265 = vmatprep.mubr.msk.f32.mxu1 %vm130_vm0, %v3392_v7  ;;  %3109 = vrot.lane.b32.xlu0 %v5022_v60, %s5227_s21 }
0x3021   :  { %3120 = vrot.lane.b32.xlu1 %v5024_v56, %s5227_s21  ;;  %v5026_v59 = vpop.eup %5025 }
0x3022   :  { %v5028_v62 = vpop.eup %5027  ;;  %v3099_v63 = vadd.f32 1.0, %v5026_v59  ;;  %v4692_v59 = vpack.c.bf16 %v3299_v58, %v3298_v57  ;;  %v3770_v57 = vld [vmem:[#allocation9 + $0x68] sm:$0xff] }
0x3023   :  { %v3100_v0 = vadd.f32 1.0, %v5028_v62  ;;  %v3300_v62 = vld [vmem:[%s6188_s8 + $0x40] sm:$0xff] }
0x3024   :  { %5029 = vrcp.f32 %v3099_v63  ;;  %v3301_v63 = vld [vmem:[%s6188_s8 + $0x48] sm:$0xff] }
0x3025   :  { %5031 = vrcp.f32 %v3100_v0  ;;  %v3302_v0 = vld [vmem:[%s6188_s8 + $0x50] sm:$0xff] }
0x302e   :  { %v5030_v1 = vpop.eup %5029 }
0x302f   :  { %v5032_v3 = vpop.eup %5031  ;;  %v3107_v8 = vmul.f32 %v5030_v1, %v5988_v23 }
0x3030   :  { %v3118_v31 = vmul.f32 %v5032_v3, %v5990_v27 }
0x3092   :  { %v3110_v2 = vpop.permute.xlu0 %3109 }
0x3093   :  { %v3112_v4 = vmul.f32 %v5030_v1, %v3110_v2  ;;  %v3121_v5 = vpop.permute.xlu1 %3120  ;;  %v3303_v2 = vld [vmem:[%s6188_s8 + $0x58] sm:$0xff] }
0x3094   :  { %v3123_v21 = vmul.f32 %v5032_v3, %v3121_v5 }
0x3095   :  { %3114 = vrot.lane.b32.xlu0 %v3112_v4, %s5230_s6 }
0x3096   :  { %3125 = vrot.lane.b32.xlu1 %v3123_v21, %s5230_s6 }
0x3107   :  { %v3115_v25 = vpop.permute.xlu0 %3114 }
0x3108   :  { %v3117_v34 = vadd.f32 %v3115_v25, %v3107_v8  ;;  %v3126_v36 = vpop.permute.xlu1 %3125 }
0x3109   :  { %v3128_v39 = vadd.f32 %v3126_v36, %v3118_v31 }
0x310a   :  { %5033 = vtanh.f32 %v3117_v34 }
0x310b   :  { %5035 = vtanh.f32 %v3128_v39 }
0x3114   :  { %v5034_v42 = vpop.eup %5033 }
0x3115   :  { %v5036_v9 = vpop.eup %5035  ;;  %3131 = vrot.lane.b32.xlu0 %v5034_v42, %s5227_s21 }
0x3116   :  { %3137 = vrot.lane.b32.xlu1 %v5036_v9, %s5227_s21  ;;  %v5231_v9 = vmov 0.0|0.0  }
0x3187   :  { %v3132_v10 = vpop.permute.xlu0 %3131 }
0x3188   :  { %v3134_v11 = vmul.f32 %v5030_v1, %v3132_v10  ;;  %v3138_v12 = vpop.permute.xlu1 %3137  ;;  %v4696_v1 = vpack.c.bf16 %v3301_v63, %v3300_v62 }
0x3189   :  { %v3140_v13 = vmul.f32 %v5032_v3, %v3138_v12  ;;  %v4700_v3 = vpack.c.bf16 %v3303_v2, %v3302_v0 }
0x318a   :  { %3142 = vrot.lane.b32.xlu0 %v3134_v11, %s5230_s6 }
0x318b   :  { %3147 = vrot.lane.b32.xlu1 %v3140_v13, %s5227_s21 }
0x31fc   :  { %v3143_v14 = vpop.permute.xlu0 %3142 }
0x31fd   :  { %3145 = vst.msk [vmem:[#allocation3 + $0xe] sm:$0x1] %vm1225_vm6, %v3143_v14  ;;  %v3148_v16 = vpop.permute.xlu1 %3147 }
0x31fe   :  { %3150 = vst.msk [vmem:[#allocation3 + $0x1] sm:$0x1] %vm1231_vm7, %v3148_v16  ;;  %v3151_v17 = vsel %vm130_vm0, %v3143_v14, %v3148_v16 }
0x31ff   :  { %4048 = vmatmul.mubr.msk.f32.vlgmr.msra.gmra.mrb[24].mxu0 %vm1096_vm8, %v3151_v17 }
0x3200   :  { %4691 = vmatpush3.bf16.msra.mxu0 %v4688_v55  ;;  %v3768_v55 = vld [vmem:[#allocation9 + $0x58] sm:$0xff] }
0x3201   :  { %4693 = vmatprep.subr.bf16.mxu0 %v4692_v59 }
0x3204   :  { %4695 = vmatpush3.bf16.msra.mxu0 %v4692_v59 }
0x3205   :  { %4697 = vmatprep.subr.bf16.mxu0 %v4696_v1 }
0x3208   :  { %4699 = vmatpush3.bf16.msra.mxu0 %v4696_v1 }
0x3209   :  { %4701 = vmatprep.subr.bf16.mxu0 %v4700_v3 }
0x320c   :  { %4703 = vmatpush3.bf16.msra.mxu0 %v4700_v3 }
0x320d   :  { %4713 = vmatprep.subr.bf16.mxu0 %v5231_v9 }
0x32d2   :  { %v3223_v22 = vpop.f32.mrb[24].mxu0 }
0x32d3   :  { %v3228_v23 = vadd.f32 %v3223_v22, %v3152_v20  ;;  %v3225_v27 = vpop.f32.mrb[25].mxu0  ;;  %v6090_v22 = vadd.f32 %v6022_v54, %v6020_v53 }
0x32d4   :  { %v3229_v28 = vadd.f32 %v3225_v27, %v3153_v26 }
0x32d5   :  { %5037 = vtanh.f32 %v3228_v23  ;;  %v4049_v35 = vmul.f32 -1.442695, %v3228_v23  ;;  %v3393_v23 = vmax.f32 %v6090_v22, 0.0 }
0x32d6   :  { %5039 = vtanh.f32 %v3229_v28  ;;  %v4050_v24 = vmul.f32 -1.442695, %v3229_v28 }
0x32d7   :  { %5041 = vpow2.f32 %v4049_v35 }
0x32d8   :  { %5043 = vpow2.f32 %v4050_v24 }
0x32df   :  { %v5038_v32 = vpop.eup %5037 }
0x32e0   :  { %v5040_v33 = vpop.eup %5039  ;;  %3246 = vrot.lane.b32.xlu1 %v5038_v32, %s5227_s21 }
0x32e1   :  { %3257 = vrot.lane.b32.xlu0 %v5040_v33, %s5227_s21  ;;  %v5042_v37 = vpop.eup %5041 }
0x32e2   :  { %v5044_v38 = vpop.eup %5043  ;;  %v3236_v40 = vadd.f32 1.0, %v5042_v37 }
0x32e3   :  { %v3237_v41 = vadd.f32 1.0, %v5044_v38 }
0x32e4   :  { %5045 = vrcp.f32 %v3236_v40  ;;  %v3681_v40 = vld [vmem:[#allocation9] sm:$0xff] }
0x32e5   :  { %5047 = vrcp.f32 %v3237_v41  ;;  %v3682_v41 = vld [vmem:[#allocation9 + $0x8] sm:$0xff] }
0x32ee   :  { %v5046_v43 = vpop.eup %5045 }
0x32ef   :  { %v5048_v45 = vpop.eup %5047  ;;  %v3244_v47 = vmul.f32 %v5046_v43, %v3117_v34 }
0x32f0   :  { %v3255_v49 = vmul.f32 %v5048_v45, %v3128_v39 }
0x3352   :  { %v3247_v44 = vpop.permute.xlu1 %3246 }
0x3353   :  { %v3249_v46 = vmul.f32 %v5046_v43, %v3247_v44  ;;  %v3258_v29 = vpop.permute.xlu0 %3257  ;;  %v4714_v44 = vpack.c.bf16 %v3682_v41, %v3681_v40 }
0x3354   :  { %v3260_v30 = vmul.f32 %v5048_v45, %v3258_v29  ;;  %v3685_v29 = vld [vmem:[#allocation9 + $0x20] sm:$0xff] }
0x3355   :  { %3251 = vrot.lane.b32.xlu1 %v3249_v46, %s5230_s6 }
0x3356   :  { %3262 = vrot.lane.b32.xlu0 %v3260_v30, %s5230_s6  ;;  %v3686_v30 = vld [vmem:[#allocation9 + $0x28] sm:$0xff] }
0x33c7   :  { %v3252_v48 = vpop.permute.xlu1 %3251 }
0x33c8   :  { %v3254_v50 = vadd.f32 %v3252_v48, %v3244_v47  ;;  %v3263_v51 = vpop.permute.xlu0 %3262  ;;  %v4720_v47 = vpack.c.bf16 %v3686_v30, %v3685_v29  ;;  %v3687_v48 = vld [vmem:[#allocation9 + $0x30] sm:$0xff] }
0x33c9   :  { %v3265_v6 = vadd.f32 %v3263_v51, %v3255_v49  ;;  %v3688_v49 = vld [vmem:[#allocation9 + $0x38] sm:$0xff]  ;;  %v3765_v51 = vld [vmem:[#allocation9 + $0x40] sm:$0xff] }
0x33ca   :  { %5049 = vtanh.f32 %v3254_v50  ;;  %v4723_v50 = vpack.c.bf16 %v3688_v49, %v3687_v48 }
0x33cb   :  { %5051 = vtanh.f32 %v3265_v6  ;;  %v3766_v6 = vld [vmem:[#allocation9 + $0x48] sm:$0xff] }
0x33cc   :  { %v4726_v52 = vpack.c.bf16 %v3766_v6, %v3765_v51 }
0x33d4   :  { %v5050_v60 = vpop.eup %5049 }
0x33d5   :  { %v5052_v56 = vpop.eup %5051  ;;  %3268 = vrot.lane.b32.xlu1 %v5050_v60, %s5227_s21  ;;  %v4729_v60 = vpack.c.bf16 %v3768_v55, %v3767_v61 }
0x33d6   :  { %3274 = vrot.lane.b32.xlu0 %v5052_v56, %s5227_s21  ;;  %v3769_v56 = vld [vmem:[#allocation9 + $0x60] sm:$0xff] }
0x33d7   :  { %v4732_v58 = vpack.c.bf16 %v3770_v57, %v3769_v56 }
0x3447   :  { %v3269_v4 = vpop.permute.xlu1 %3268 }
0x3448   :  { %v3271_v5 = vmul.f32 %v5046_v43, %v3269_v4  ;;  %v3275_v21 = vpop.permute.xlu0 %3274  ;;  %v3683_v43 = vld [vmem:[#allocation9 + $0x10] sm:$0xff] }
0x3449   :  { %v3277_v8 = vmul.f32 %v5048_v45, %v3275_v21  ;;  %v3684_v45 = vld [vmem:[#allocation9 + $0x18] sm:$0xff] }
0x344a   :  { %3279 = vrot.lane.b32.xlu1 %v3271_v5, %s5230_s6  ;;  %v4717_v46 = vpack.c.bf16 %v3684_v45, %v3683_v43 }
0x344b   :  { %3284 = vrot.lane.b32.xlu0 %v3277_v8, %s5227_s21 }
0x344f   :  { %3394 = vrot.lane.b32.xlu0 %v6020_v53, %s5226_s18 }
0x34bc   :  { %v3280_v25 = vpop.permute.xlu1 %3279 }
0x34bd   :  { %3282 = vst.msk [vmem:[#allocation3 + $0xf] sm:$0x1] %vm1225_vm6, %v3280_v25  ;;  %v3285_v31 = vpop.permute.xlu0 %3284 }
0x34be   :  { %3287 = vst.msk [vmem:[#allocation3] sm:$0x1] %vm1231_vm7, %v3285_v31 }
0x34c1   :  { %v3395_v10 = vpop.permute.xlu0 %3394 }
0x34c4   :  { %v3289_v34 = vld [vmem:[#allocation3 + $0x8] sm:$0xff] }
0x34c5   :  { %v3288_v36 = vld [vmem:[#allocation3] sm:$0xff]  ;;  %v3291_v42 = vmax.f32 %v3289_v34, 0.0 }
0x34c6   :  { %v3290_v39 = vmax.f32 %v3288_v36, 0.0 }
0x34c8   :  { %4258 = vmatprep.mubr.msk.f32.mxu0 %vm1096_vm8, %v3290_v39 }
0x34c9   :  { %4259 = vmatmul.mubr.msk.f32.vlgmr.msra.gmra.mrb[26].mxu0 %vm1096_vm8, %v3291_v42 }
0x34ca   :  { %4291 = vmatprep.mubr.msk.f32.mxu0 %vm5232_vm9, %v5229_v18  ;;  %4715 = vmatpush3.bf16.msra.mxu0 %v4714_v44 }
0x34cb   :  { %4716 = vmatprep.subr.bf16.mxu0 %v5231_v9 }
0x34ce   :  { %4718 = vmatpush3.bf16.msra.mxu0 %v4717_v46 }
0x34cf   :  { %4719 = vmatprep.subr.bf16.mxu0 %v5231_v9 }
0x34d2   :  { %4721 = vmatpush3.bf16.msra.mxu0 %v4720_v47 }
0x34d3   :  { %4722 = vmatprep.subr.bf16.mxu0 %v5231_v9 }
0x34d6   :  { %4724 = vmatpush3.bf16.msra.mxu0 %v4723_v50 }
0x34d7   :  { %4737 = vmatprep.subr.bf16.mxu0 %v5231_v9 }
0x359c   :  { %v4260_v11 = vpop.f32.mrb[26].mxu0 }
0x359d   :  { %v3475_v12 = vadd.f32 %v4260_v11, %v3395_v10  ;;  %v3469_v13 = vpop.f32.mrb[27].mxu0 }
0x359e   :  { %v3470_v14 = vadd.f32 %v3469_v13, %v3395_v10 }
0x359f   :  { %v3479_v16 = vmax.f32 %v3475_v12, 0.0 }
0x35a0   :  { %v3478_v17 = vmax.f32 %v3470_v14, 0.0 }
0x35a2   :  { %v4704_v20 = vpack.c.bf16 %v3479_v16, %v3478_v17  ;;  %v3849_v16 = vld [vmem:[%s6192_s12] sm:$0xff]  ;;  %v3850_v17 = vld [vmem:[%s6192_s12 + $0x8] sm:$0xff] }
0x35a3   :  { %v4738_v22 = vpack.c.bf16 %v3850_v17, %v3849_v16 }
0x35a4   :  { %4706 = vmatprep.subr.msk.bf16.mxu1 %vm5403_vm1, %v4704_v20 }
0x35a5   :  { %4709 = vmatpush3.bf16.xpose.msk.msra.mxu1 %vm5403_vm1, %v4704_v20 }
0x35a6   :  { %4710 = vmatprep.subr.bf16.mxu1 %v5231_v9 }
0x35ac   :  { %4266 = vmatmul.mubr.msk.f32.vlgmr.msra.gmra.mrb[30].mxu1 %vm130_vm0, %v3393_v23 }
0x35ad   :  { %4712 = vmatpush3.bf16.msra.mxu1 %v4704_v20  ;;  %4272 = vmatprep.mubr.msk.f32.mxu1 %vm5232_vm9, %v5229_v18  ;;  %v3851_v20 = vld [vmem:[%s6192_s12 + $0x10] sm:$0xff] }
0x35ae   :  { %4725 = vmatprep.subr.bf16.mxu1 %v5231_v9 }
0x367f   :  { %v4267_v19 = vpop.f32.mrb[30].mxu1 }
0x3680   :  { %3570 = vst.msk [vmem:[#allocation14 + $0x8] sm:$0xf] %vm3569_vm10, %v4267_v19  ;;  %v3558_v53 = vpop.f32.mrb[31].mxu1  ;;  %v3574_v54 = vsel %vm3569_vm10, %v4267_v19, 0.0  ;;  %v3853_v19 = vld [vmem:[%s6192_s12 + $0x20] sm:$0xff] }
0x3681   :  { %3568 = vst.msk [vmem:[#allocation14] sm:$0xff] %vm3567_vm11, %v3558_v53  ;;  %3575 = vadd.xlane.f32.xlu0 %v3574_v54  ;;  %v3571_v26 = vsel %vm3567_vm11, %v3558_v53, 0.0  ;;  %v3854_v53 = vld [vmem:[%s6192_s12 + $0x28] sm:$0xff] }
0x3682   :  { %3572 = vadd.xlane.f32.xlu1 %v3571_v26  ;;  %v3580_v27 = vadd.f32 %v3574_v54, %v3571_v26  ;;  %v4744_v54 = vpack.c.bf16 %v3854_v53, %v3853_v19  ;;  %v3689_v26 = vld [vmem:[#allocation10] sm:$0x1] }
0x3684   :  { %v3581_v28 = vrot.slane %v3580_v27, 4 }
0x3686   :  { %v3582_v32 = vadd.f32 %v3581_v28, %v3580_v27 }
0x3688   :  { %v3583_v33 = vrot.slane %v3582_v32, 2 }
0x368a   :  { %v3584_v35 = vadd.f32 %v3583_v33, %v3582_v32 }
0x368c   :  { %v3585_v24 = vrot.slane %v3584_v35, 1 }
0x368e   :  { %v3586_v37 = vadd.f32 %v3585_v24, %v3584_v35  ;;  %v3855_v35 = vld [vmem:[%s6192_s12 + $0x30] sm:$0xff]  ;;  %v3856_v24 = vld [vmem:[%s6192_s12 + $0x38] sm:$0xff] }
0x3690   :  { %v3588_v38 = vmul.f32 0.083333336, %v3586_v37  ;;  %v4747_v37 = vpack.c.bf16 %v3856_v24, %v3855_v35 }
0x3692   :  { %4273 = vmatmul.mubr.msk.f32.vlgmr.msra.gmra.mrb[32].mxu1 %vm3567_vm11, %v3588_v38  ;;  %v3774_v38 = vld [vmem:[#allocation10 + $0x1] sm:$0x1] }
0x3693   :  { %4310 = vmatprep.mubr.msk.f32.mxu1 %vm5232_vm9, %v5229_v18  ;;  %4727 = vmatpush3.bf16.msra.mxu1 %v4726_v52 }
0x3694   :  { %4728 = vmatprep.subr.bf16.mxu1 %v5231_v9 }
0x3697   :  { %4730 = vmatpush3.bf16.msra.mxu1 %v4729_v60 }
0x3698   :  { %4731 = vmatprep.subr.bf16.mxu1 %v5231_v9 }
0x369b   :  { %4733 = vmatpush3.bf16.msra.mxu1 %v4732_v58 }
0x369c   :  { %4734 = vmatprep.subr.bf16.mxu1 %v5231_v9 }
0x370e   :  { %v3576_v0 = vpop.xlane.xlu0 %3575 }
0x370f   :  { %v3573_v1 = vpop.xlane.xlu1 %3572  ;;  %v3579_v2 = vmul.f32 0.0625, %v3576_v0 }
0x3710   :  { %v3578_v3 = vmul.f32 0.0625, %v3573_v1 }
0x3711   :  { %v3590_v4 = vmul.f32 %v3579_v2, %v3393_v23 }
0x3712   :  { %v3589_v5 = vmul.f32 %v3578_v3, %v3392_v7  ;;  %v3772_v7 = vld [vmem:[#allocation9 + $0x78] sm:$0xff] }
0x3713   :  { %v3593_v21 = vsel %vm3592_vm12, %v3590_v4, 0.0  ;;  %v4735_v14 = vpack.c.bf16 %v3772_v7, %v3771_v15 }
0x3714   :  { %v3591_v8 = vsel %vm130_vm0, %v3589_v5, 0.0 }
0x3715   :  { %v3594_v25 = vadd.f32 %v3593_v21, %v3591_v8  ;;  %4736 = vmatpush3.bf16.msra.mxu1 %v4735_v14 }
0x3717   :  { %v3595_v31 = vrot.slane %v3594_v25, 4 }
0x3719   :  { %v3596_v34 = vadd.f32 %v3595_v31, %v3594_v25 }
0x371b   :  { %v3597_v36 = vrot.slane %v3596_v34, 2 }
0x371d   :  { %v3598_v39 = vadd.f32 %v3597_v36, %v3596_v34 }
0x371f   :  { %v3599_v42 = vrot.slane %v3598_v39, 1 }
0x3721   :  { %v3600_v10 = vadd.f32 %v3599_v42, %v3598_v39 }
0x3723   :  { %v3601_v11 = vmul.f32 0.083333336, %v3600_v10 }
0x3765   :  { %v3671_v59 = vpop.f32.mrb[32].mxu1 }
0x3766   :  { %v3675_v62 = vmul.f32 0.0625, %v3671_v59  ;;  %v4274_v63 = vpop.f32.mrb[33].mxu1 }
0x3768   :  { %3677 = vrot.lane.b32.xlu0 %v3675_v62, %s5230_s6 }
0x37da   :  { %v3678_v12 = vpop.permute.xlu0 %3677 }
0x37db   :  { %v3680_v13 = vsel %vm130_vm0, %v3601_v11, %v3678_v12 }
0x37dc   :  { %4292 = vmatmul.mubr.msk.f32.vlgmr.msra.gmra.mrb[28].mxu0 %vm1096_vm8, %v3680_v13 }
0x37dd   :  { %4329 = vmatprep.mubr.msk.f32.mxu0 %vm5232_vm9, %v5229_v18  ;;  %v3852_v18 = vld [vmem:[%s6192_s12 + $0x18] sm:$0xff]  ;;  %4739 = vmatpush3.bf16.msra.mxu0 %v4738_v22 }
0x37de   :  { %v4741_v23 = vpack.c.bf16 %v3852_v18, %v3851_v20  ;;  %4740 = vmatprep.subr.bf16.mxu0 %v5231_v9 }
0x37e1   :  { %4742 = vmatpush3.bf16.msra.mxu0 %v4741_v23 }
0x37e2   :  { %4743 = vmatprep.subr.bf16.mxu0 %v5231_v9 }
0x37e5   :  { %4745 = vmatpush3.bf16.msra.mxu0 %v4744_v54 }
0x37e6   :  { %4746 = vmatprep.subr.bf16.mxu0 %v5231_v9 }
0x37e9   :  { %4748 = vmatpush3.bf16.msra.mxu0 %v4747_v37 }
0x38af   :  { %v3759_v27 = vpop.f32.mrb[28].mxu0 }
0x38b0   :  { %v3760_v28 = vadd.f32 %v3759_v27, %v3689_v26  ;;  %v4293_v32 = vpop.f32.mrb[29].mxu0 }
0x38b2   :  { %v3763_v33 = vmax.f32 %v3760_v28, 0.0 }
0x38b4   :  { %4311 = vmatmul.mubr.msk.f32.vlgmr.msra.gmra.mrb[34].mxu1 %vm1096_vm8, %v3763_v33 }
0x3987   :  { %v3844_v40 = vpop.f32.mrb[34].mxu1 }
0x3988   :  { %v3845_v9 = vadd.f32 %v3844_v40, %v3774_v38  ;;  %v4312_v41 = vpop.f32.mrb[35].mxu1 }
0x398a   :  { %v3848_v43 = vmax.f32 %v3845_v9, 0.0 }
0x398c   :  { %4330 = vmatmul.mubr.msk.f32.vlgmr.msra.gmra.mrb[30].mxu0 %vm1096_vm8, %v3848_v43 }
0x398d   :  { %5174 = shalt.err (!%p5171_p2)
}
0x398e   :  { %s5175_s2 = scalar_lea.hbm %s6195_s15, 256 }
0x398f   :  { %p5176_p3 = scmp.ne.s32.totalorder %s6195_s15, %s5175_s2  ;;  %p5179_p4 = scmp.lt.u32.totalorder %s5175_s2, %s6195_s15 }
0x3991   :  { %p5181_p5 = pnand %p5179_p4, %p5176_p3 }
0x3993   :  { %5184 = shalt.err (!%p5181_p5)
}
0x3994   :  { %3954 = dma.vmem_to_hbm [thread:$0]  %s3949_s16, 256, %s6195_s15, [#allocation15], %s5223_s3, %s5223_s3, %s5224_s20   ;;  %v3857_v44 = vld [vmem:[#allocation12] sm:$0x1]  ;;  %vm3931_vm13 = vcmask 8192  }
0x3995   :  { %s5234_s18 = smov [#allocation13]  }
0x3996   :  { %s3939_s21 = sshll.u32 %s5234_s18, 4  ;;  %s3940_s21 = int_to_ptr.vmem [resolvable:$true] %s3939_s21 }
0x3997   :  { %s5185_s6 = scalar_lea.vmem %s3940_s21, 16  ;;  %s5189_s25 = scalar_lea.vmem %s3940_s21, 32 }
0x3998   :  { %p5186_p6 = scmp.ne.s32.totalorder %s3940_s21, %s5185_s6  ;;  %p5190_p7 = scmp.lt.s32.totalorder %s3940_s21, %s3940_s21 }
0x3999   :  { %p5191_p8 = scmp.lt.s32.totalorder %s5189_s25, %s5185_s6 }
0x399b   :  { %p5192_p9 = por %p5191_p8, %p5190_p7 }
0x399d   :  { %p5193_p10 = pnand %p5192_p9, %p5186_p6 }
0x3a5f   :  { %v3927_v45 = vpop.f32.mrb[30].mxu0 }
0x3a60   :  { %v3928_v46 = vadd.f32 %v3927_v45, %v3857_v44  ;;  %v4331_v29 = vpop.f32.mrb[31].mxu0 }
0x3a62   :  { %3932 = vst.msk [vmem:[#allocation13] sm:$0x1] %vm3931_vm13, %v3928_v46 }
0x3a63   :  { %5196 = shalt.err (!%p5193_p10)
}
0x3a64   :  { %s5197_s15 = scalar_lea.hbm %s6194_s14, 16 }
0x3a65   :  { %p5198_p11 = scmp.ne.s32.totalorder %s6194_s14, %s5197_s15  ;;  %p5201_p12 = scmp.lt.u32.totalorder %s5197_s15, %s6194_s14 }
0x3a67   :  { %p5203_p13 = pnand %p5201_p12, %p5198_p11 }
0x3a69   :  { %5206 = shalt.err (!%p5203_p13)
}
0x3a6a   :  { %3942 = dma.vmem_to_hbm [thread:$0]  %s3940_s21, 16, %s6194_s14, [#allocation6]  }
0x3a6b   :  { %5213 = dma.done.wait [#allocation6], 16  }
0x3a6c   :  { %5214 = vsyncadd [#allocation6], 4294967280 }
0x3a6d   :  { %5215 = dma.done.wait [#allocation15], 256  }
0x3a6e   :  { %5216 = vsyncadd [#allocation15], 4294967040 }
0x3a6f   :  { %3961 = vsyncpa [#allocation5], 1 }
0x3a70   :  { %3962 = vsyncpa [#allocation8], 1 }
0x3a71   :  { %3963 = vsyncpa [#allocation11], 1 }
0x3a72   :  { %3964 = vsyncpa [#allocation6], 1 }
0x3a73   :  { %3965 = vsyncpa [#allocation15], 1 }

</bundles_post_ra>
